<compile_context>
chip_gen: v5e
topology: v5e:2x2
jax: 0.10.0
libtpu: 0.0.40
codegen_flags: <defaults>
</compile_context>

<pallas_src>
import functools
import math

import jax
import jax.numpy as jnp
from jax import lax
from jax.experimental import pallas as pl
from jax.experimental.pallas import tpu as pltpu

# 48 MiB scoped VMEM: safe on v7x (64 MiB physical) per the review, and leaves
# plenty of headroom on v5e/v6e (128 MiB physical).
_VMEM_LIMIT_BYTES = 48 * 1024 * 1024
# Target cap for the double-buffered working set when auto-picking tiles.
_VMEM_BUDGET_BYTES = 40 * 1024 * 1024


def _round_up(x, m):
    return (x + m - 1) // m * m


# --------------------------------------------------------------------------- #
# Fused kernel: normalize (weight once per C tile, embeddings per step),
# cosine matmul on the MXU, clamp, angular margin on the label column, scale.
# --------------------------------------------------------------------------- #
def _arcface_kernel(emb_ref, w_ref, lab_ref, out_ref, wn_ref,
                    *, cos_m, sin_m, scale, eps, c_tile):
    j = pl.program_id(0)   # class-tile index (outer, "parallel")
    i = pl.program_id(1)   # batch-tile index (inner, "arbitrary")

    # Normalize + bf16-cast the weight tile once per class tile. The weight
    # block index depends only on j, so the tile is resident across the whole
    # inner batch loop; cache the normalized version in persistent scratch.
    @pl.when(i == 0)
    def _():
        w = w_ref[...].astype(jnp.float32)
        # x / max(||x||, 1e-12)  ==  x * rsqrt(max(||x||^2, 1e-24))
        inv_w = lax.rsqrt(jnp.maximum(jnp.sum(w * w, axis=1, keepdims=True), 1e-24))
        wn_ref[...] = (w * inv_w).astype(wn_ref.dtype)

    # Normalize the (small) embedding tile every step; cost is ~tb*D VPU ops.
    e = emb_ref[...].astype(jnp.float32)
    inv_e = lax.rsqrt(jnp.maximum(jnp.sum(e * e, axis=1, keepdims=True), 1e-24))
    e_n = (e * inv_e).astype(wn_ref.dtype)

    # bf16 operands, f32 accumulation; contract D of both operands (A @ B^T).
    cosine = lax.dot_general(
        e_n, wn_ref[...],
        dimension_numbers=(((1,), (1,)), ((), ())),
        preferred_element_type=jnp.float32,
    )  # [tb, tc] float32
    cosine = jnp.clip(cosine, -1.0 + eps, 1.0 - eps)

    tb, tc = cosine.shape
    col_ids = lax.broadcasted_iota(jnp.int32, (tb, tc), 1)
    local_lab = lab_ref[...] - j * c_tile          # [tb, 1] label column in this tile
    is_label = col_ids == local_lab                # bool mask (no f32 one_hot)

    # Only the label column needs phi: masked reduce to a [tb, 1] vector.
    # jnp.where is a select, so garbage / NaN in out-of-bounds tail columns of
    # a partially-OOB weight block can never reach label_cos or valid logits.
    label_cos = jnp.sum(jnp.where(is_label, cosine, 0.0), axis=1, keepdims=True)
    sine = jnp.sqrt(jnp.maximum(1.0 - label_cos * label_cos, 0.0))
    phi = label_cos * cos_m - sine * sin_m

    out_ref[...] = (jnp.where(is_label, phi, cosine) * scale).astype(out_ref.dtype)


# --------------------------------------------------------------------------- #
# Wrapper: tile selection, grid/BlockSpec plumbing, no host-side padding.
# --------------------------------------------------------------------------- #
def arcface_forward(embeddings, weight, labels, *, margin=0.5, scale=64.0,
                    eps=1e-8, block_b=None, block_c=None, out_dtype=jnp.float32):
    """ArcFace forward: returns scaled logits [B, num_classes]."""
    B, D = embeddings.shape
    C, D2 = weight.shape
    assert D == D2, "embedding_dim mismatch between embeddings and weight"

    # Tile sizes: batch tile up to 512 rows, class tile up to 2048 (lane-dense,
    # multiples of 256 for the 256x256 MXU). Auto-shrink if the double-buffered
    # footprint would exceed the v7x-safe budget.
    tb = block_b if block_b is not None else min(512, _round_up(B, 8))
    tc = block_c if block_c is not None else min(2048, _round_up(C, 256))
    assert tb % 8 == 0 and tc % 128 == 0, "block_b must be %8==0, block_c %128==0"

    def _footprint(tb_, tc_):
        return (2 * tc_ * D * 4      # raw weight tile (f32, double-buffered)
                + 2 * tb_ * D * 4    # embedding tile (f32, double-buffered)
                + 2 * tb_ * tc_ * 4  # output tile (f32, double-buffered)
                + tc_ * D * 2)       # normalized-weight scratch (bf16)

    while block_c is None and tc > 256 and _footprint(tb, tc) > _VMEM_BUDGET_BYTES:
        tc //= 2
    while block_b is None and tb > 8 and _footprint(tb, tc) > _VMEM_BUDGET_BYTES:
        tb = max(8, (tb // 2 // 8) * 8)

    nc = pl.cdiv(C, tc)   # class tiles  (grid axis 0, "parallel" -> megacore)
    nb = pl.cdiv(B, tb)   # batch tiles  (grid axis 1, innermost, "arbitrary")

    emb_f32 = embeddings.astype(jnp.float32)
    w_f32 = weight.astype(jnp.float32)
    lab = labels.reshape(B, 1).astype(jnp.int32)

    kernel = functools.partial(
        _arcface_kernel,
        cos_m=math.cos(margin), sin_m=math.sin(margin),
        scale=float(scale), eps=float(eps), c_tile=tc,
    )

    out = pl.pallas_call(
        kernel,
        out_shape=jax.ShapeDtypeStruct((nb * tb, nc * tc), out_dtype),
        grid=(nc, nb),
        in_specs=[
            pl.BlockSpec((tb, D), lambda j, i: (i, 0)),   # embeddings tile
            pl.BlockSpec((tc, D), lambda j, i: (j, 0)),   # weight tile (constant over i)
            pl.BlockSpec((tb, 1), lambda j, i: (i, 0)),   # labels tile
        ],
        out_specs=pl.BlockSpec((tb, tc), lambda j, i: (i, j)),
        scratch_shapes=[pltpu.VMEM((tc, D), jnp.bfloat16)],  # normalized weight cache
        compiler_params=pltpu.CompilerParams(
            # C axis parallel (v7x megacore splits the many-tile axis); B axis
            # must stay sequential for the normalize-once scratch pattern.
            dimension_semantics=("parallel", "arbitrary"),
            vmem_limit_bytes=_VMEM_LIMIT_BYTES,
        ),
    )(emb_f32, w_f32, lab)

    return out[:B, :C]


# --------------------------------------------------------------------------- #
# Pure-JAX references for correctness checking.
# --------------------------------------------------------------------------- #
def _reference(embeddings, weight, labels, margin, scale, eps, *, bf16_operands):
    inv_e = lax.rsqrt(
        jnp.maximum(jnp.sum(embeddings * embeddings, axis=1, keepdims=True), 1e-24))
    inv_w = lax.rsqrt(
        jnp.maximum(jnp.sum(weight * weight, axis=1, keepdims=True), 1e-24))
    emb_n = embeddings * inv_e
    w_n = weight * inv_w
    if bf16_operands:
        emb_n = emb_n.astype(jnp.bfloat16)
        w_n = w_n.astype(jnp.bfloat16)
    cosine = jnp.dot(emb_n, w_n.T, preferred_element_type=jnp.float32)
    cosine = jnp.clip(cosine, -1.0 + eps, 1.0 - eps)
    one_hot = jax.nn.one_hot(labels, weight.shape[0], dtype=jnp.float32)
    sine = jnp.sqrt(jnp.maximum(1.0 - cosine * cosine, 0.0))
    phi = cosine * math.cos(margin) - sine * math.sin(margin)
    return (one_hot * phi + (1.0 - one_hot) * cosine) * scale


if __name__ == "__main__":
    # Small shapes consistent with the module's forward:
    #   embeddings [B, embedding_dim], labels [B], weight [num_classes, embedding_dim]
    B, EMBED_DIM, NUM_CLASSES = 16, 128, 1000
    MARGIN, SCALE, EPS = 0.5, 64.0, 1e-8

    key = jax.random.PRNGKey(0)
    k_emb, k_w, k_lab = jax.random.split(key, 3)

    embeddings = jax.random.normal(k_emb, (B, EMBED_DIM), dtype=jnp.float32)

    # Deterministic xavier_uniform_-style init for weight [num_classes, embedding_dim].
    bound = math.sqrt(6.0 / (EMBED_DIM + NUM_CLASSES))
    weight = jax.random.uniform(
        k_w, (NUM_CLASSES, EMBED_DIM), jnp.float32, minval=-bound, maxval=bound)

    labels = jax.random.randint(k_lab, (B,), 0, NUM_CLASSES, dtype=jnp.int32)

    # Default tiles: single (16, 1024) tile with a partially OOB class tail.
    out = arcface_forward(embeddings, weight, labels, margin=MARGIN, scale=SCALE, eps=EPS)
    out = jax.block_until_ready(out)
    assert out.shape == (B, NUM_CLASSES)

    # Primary check: reference mirroring the kernel's bf16 matmul operands
    # (f32 accumulation) -> agreement to accumulation-order noise.
    ref_bf16 = _reference(embeddings, weight, labels, MARGIN, SCALE, EPS,
                          bf16_operands=True)
    assert jnp.allclose(out, ref_bf16, atol=1e-2, rtol=1e-3), "mismatch vs bf16 reference"

    # Sanity check against the full-f32 reference (bounds bf16 rounding after x64 scale).
    ref_f32 = _reference(embeddings, weight, labels, MARGIN, SCALE, EPS,
                         bf16_operands=False)
    assert jnp.allclose(out, ref_f32, atol=2.0), "mismatch vs f32 reference (sanity)"

    # Also exercise the multi-tile path: several C tiles (incl. a partially
    # out-of-bounds tail block) and several B tiles revisiting the cached
    # normalized-weight scratch.
    out_small = arcface_forward(embeddings, weight, labels, margin=MARGIN,
                                scale=SCALE, eps=EPS, block_b=8, block_c=256)
    out_small = jax.block_until_ready(out_small)
    assert out_small.shape == (B, NUM_CLASSES)
    assert jnp.allclose(out_small, ref_bf16, atol=1e-2, rtol=1e-3), \
        "multi-tile mismatch vs bf16 reference"

    print("KERNEL_OK")
</pallas_src>

<mosaic_0001>
module attributes {stable_mosaic.version = 11 : i64} {
  func.func @_arcface_kernel(%arg0: i32, %arg1: i32, %arg2: memref<16x128xf32, #tpu.memory_space<vmem>>, %arg3: memref<1024x128xf32, #tpu.memory_space<vmem>>, %arg4: memref<16x1xi32, #tpu.memory_space<vmem>>, %arg5: memref<16x1024xf32, #tpu.memory_space<vmem>>, %arg6: memref<1024x128xbf16, #tpu.memory_space<vmem>>) attributes {dimension_semantics = [#tpu.dimension_semantics<parallel>, #tpu.dimension_semantics<arbitrary>], iteration_bounds = array<i64: 1, 1>, scalar_prefetch = 0 : i64, scratch_operands = 1 : i64, tpu.core_type = #tpu.core_type<tc>, window_params = [{transform_indices = @transform_0, window_bounds = array<i64: 16, 128>}, {transform_indices = @transform_1, window_bounds = array<i64: 1024, 128>}, {transform_indices = @transform_2, window_bounds = array<i64: 16, 1>}, {transform_indices = @transform_3, window_bounds = array<i64: 16, 1024>}]} {
    %c0_i32 = arith.constant 0 : i32
    %0 = arith.cmpi eq, %arg1, %c0_i32 : i32
    %1 = arith.extui %0 : i1 to i32
    %c0_i32_0 = arith.constant 0 : i32
    %2 = arith.cmpi ne, %1, %c0_i32_0 : i32
    scf.if %2 {
      %c0_19 = arith.constant 0 : index
      %c0_20 = arith.constant 0 : index
      %47 = vector.load %arg3[%c0_19, %c0_20] : memref<1024x128xf32, #tpu.memory_space<vmem>>, vector<1024x128xf32>
      %48 = arith.mulf %47, %47 : vector<1024x128xf32>
      %cst_21 = arith.constant dense<0.000000e+00> : vector<1024xf32>
      %49 = vector.multi_reduction <add>, %48, %cst_21 [1] : vector<1024x128xf32> to vector<1024xf32>
      %50 = vector.shape_cast %49 : vector<1024xf32> to vector<1024x1xf32>
      %cst_22 = arith.constant 1.000000e-24 : f32
      %51 = vector.broadcast %cst_22 : f32 to vector<1024x1xf32>
      %52 = arith.maximumf %50, %51 : vector<1024x1xf32>
      %53 = math.rsqrt %52 : vector<1024x1xf32>
      %54 = vector.broadcast %53 : vector<1024x1xf32> to vector<1024x128xf32>
      %55 = arith.mulf %47, %54 : vector<1024x128xf32>
      %56 = arith.truncf %55 : vector<1024x128xf32> to vector<1024x128xbf16>
      %c0_23 = arith.constant 0 : index
      %c0_24 = arith.constant 0 : index
      %57 = vector.load %arg6[%c0_23, %c0_24] : memref<1024x128xbf16, #tpu.memory_space<vmem>>, vector<1024x128xbf16>
      tpu.vector_store %arg6[%c0_23, %c0_24], %56 {strides = array<i32>} : memref<1024x128xbf16, #tpu.memory_space<vmem>>, vector<1024x128xbf16>,
    } else {
    }
    %c0 = arith.constant 0 : index
    %c0_1 = arith.constant 0 : index
    %3 = vector.load %arg2[%c0, %c0_1] : memref<16x128xf32, #tpu.memory_space<vmem>>, vector<16x128xf32>
    %4 = arith.mulf %3, %3 : vector<16x128xf32>
    %cst = arith.constant dense<0.000000e+00> : vector<16xf32>
    %5 = vector.multi_reduction <add>, %4, %cst [1] : vector<16x128xf32> to vector<16xf32>
    %6 = vector.shape_cast %5 : vector<16xf32> to vector<16x1xf32>
    %cst_2 = arith.constant 1.000000e-24 : f32
    %7 = vector.broadcast %cst_2 : f32 to vector<16x1xf32>
    %8 = arith.maximumf %6, %7 : vector<16x1xf32>
    %9 = math.rsqrt %8 : vector<16x1xf32>
    %10 = vector.broadcast %9 : vector<16x1xf32> to vector<16x128xf32>
    %11 = arith.mulf %3, %10 : vector<16x128xf32>
    %12 = arith.truncf %11 : vector<16x128xf32> to vector<16x128xbf16>
    %c0_3 = arith.constant 0 : index
    %c0_4 = arith.constant 0 : index
    %13 = vector.load %arg6[%c0_3, %c0_4] : memref<1024x128xbf16, #tpu.memory_space<vmem>>, vector<1024x128xbf16>
    %cst_5 = arith.constant dense<0.000000e+00> : vector<16x1024xf32>
    %14 = tpu.matmul %12, %13, %cst_5 {dimension_numbers = #tpu.dot_dimension_numbers<[1], [1], [0], [0], [0, 0, 1, 0], [], []>} : vector<16x128xbf16>, vector<1024x128xbf16>, vector<16x1024xf32> -> vector<16x1024xf32>
    %cst_6 = arith.constant -1.000000e+00 : f32
    %cst_7 = arith.constant 1.000000e+00 : f32
    %15 = vector.broadcast %cst_6 : f32 to vector<16x1024xf32>
    %16 = arith.maximumf %15, %14 : vector<16x1024xf32>
    %17 = vector.broadcast %cst_7 : f32 to vector<16x1024xf32>
    %18 = arith.minimumf %17, %16 : vector<16x1024xf32>
    %19 = tpu.iota {dimensions = array<i32: 1>} : vector<16x1024xi32>
    %c0_8 = arith.constant 0 : index
    %c0_9 = arith.constant 0 : index
    %20 = vector.load %arg4[%c0_8, %c0_9] : memref<16x1xi32, #tpu.memory_space<vmem>>, vector<16x1xi32>
    %c1024_i32 = arith.constant 1024 : i32
    %21 = arith.muli %arg0, %c1024_i32 : i32
    %22 = vector.broadcast %21 : i32 to vector<16x1xi32>
    %23 = arith.subi %20, %22 : vector<16x1xi32>
    %24 = vector.broadcast %23 : vector<16x1xi32> to vector<16x1024xi32>
    %25 = arith.cmpi eq, %19, %24 : vector<16x1024xi32>
    %cst_10 = arith.constant 0.000000e+00 : f32
    %26 = vector.broadcast %cst_10 : f32 to vector<16x1024xf32>
    %27 = arith.select %25, %18, %26 : vector<16x1024xi1>, vector<16x1024xf32>
    %cst_11 = arith.constant dense<0.000000e+00> : vector<16xf32>
    %28 = vector.multi_reduction <add>, %27, %cst_11 [1] : vector<16x1024xf32> to vector<16xf32>
    %29 = vector.shape_cast %28 : vector<16xf32> to vector<16x1xf32>
    %30 = arith.mulf %29, %29 : vector<16x1xf32>
    %cst_12 = arith.constant 1.000000e+00 : f32
    %31 = vector.broadcast %cst_12 : f32 to vector<16x1xf32>
    %32 = arith.subf %31, %30 : vector<16x1xf32>
    %cst_13 = arith.constant 0.000000e+00 : f32
    %33 = vector.broadcast %cst_13 : f32 to vector<16x1xf32>
    %34 = arith.maximumf %32, %33 : vector<16x1xf32>
    %35 = math.sqrt %34 : vector<16x1xf32>
    %cst_14 = arith.constant 0.87758255 : f32
    %36 = vector.broadcast %cst_14 : f32 to vector<16x1xf32>
    %37 = arith.mulf %29, %36 : vector<16x1xf32>
    %cst_15 = arith.constant 0.47942555 : f32
    %38 = vector.broadcast %cst_15 : f32 to vector<16x1xf32>
    %39 = arith.mulf %35, %38 : vector<16x1xf32>
    %40 = arith.subf %37, %39 : vector<16x1xf32>
    %41 = vector.shape_cast %40 : vector<16x1xf32> to vector<16x1xf32>
    %42 = vector.broadcast %41 : vector<16x1xf32> to vector<16x1024xf32>
    %43 = arith.select %25, %42, %18 : vector<16x1024xi1>, vector<16x1024xf32>
    %cst_16 = arith.constant 6.400000e+01 : f32
    %44 = vector.broadcast %cst_16 : f32 to vector<16x1024xf32>
    %45 = arith.mulf %43, %44 : vector<16x1024xf32>
    %c0_17 = arith.constant 0 : index
    %c0_18 = arith.constant 0 : index
    %46 = vector.load %arg5[%c0_17, %c0_18] : memref<16x1024xf32, #tpu.memory_space<vmem>>, vector<16x1024xf32>
    tpu.vector_store %arg5[%c0_17, %c0_18], %45 {strides = array<i32>} : memref<16x1024xf32, #tpu.memory_space<vmem>>, vector<16x1024xf32>,
    return
  }
  func.func @transform_0(%arg0: i32, %arg1: i32) -> (i32, i32) {
    %c0_i32 = arith.constant 0 : i32
    %c0_i32_0 = arith.constant 0 : i32
    return %arg1, %c0_i32 : i32, i32
  }
  func.func @transform_1(%arg0: i32, %arg1: i32) -> (i32, i32) {
    %c0_i32 = arith.constant 0 : i32
    %c0_i32_0 = arith.constant 0 : i32
    return %arg0, %c0_i32 : i32, i32
  }
  func.func @transform_2(%arg0: i32, %arg1: i32) -> (i32, i32) {
    %c0_i32 = arith.constant 0 : i32
    %c0_i32_0 = arith.constant 0 : i32
    return %arg1, %c0_i32 : i32, i32
  }
  func.func @transform_3(%arg0: i32, %arg1: i32) -> (i32, i32) {
    %c0_i32 = arith.constant 0 : i32
    return %arg1, %arg0 : i32, i32
  }
}

</mosaic_0001>

<bundles_post_ra>
// kernel: tpu_custom_call.1
= control target key start
LH: loop header
LB: loop body
LE: loop exit
PB: predicated region body
PF: predicated region fallthrough
CT: control target
= control target key end

     0   :  { %8 = vsyncpa [#allocation4], 0  ;;  %s7379_s0 = inlined_call_operand.vmem [shape: f32[16,128], index: 0, kind: input, shape index: {}]   ;;  %s7380_s1 = inlined_call_operand.hbm [shape: f32[1000,128], index: 1, kind: input, shape index: {}]   ;;  %s7381_s2 = inlined_call_operand.vmem [shape: s32[16,1], index: 2, kind: input, shape index: {}]   ;;  %s7382_s3 = inlined_call_operand.hbm [shape: f32[16,1024], index: 3, kind: output, shape index: {}]  }
   0x1   :  { %9 = vsyncpa [#allocation5], 0 }
   0x2   :  { %15 = vsyncadd [#allocation4], 384  ;;  %s16_s14 = sshll.u32 %s7380_s1, 4  ;;  %s4357_s15 = smov [#allocation3]   ;;  %s17_s14 = int_to_ptr.hbm [resolvable:$true] %s16_s14 }
   0x3   :  { %s18_s16 = sshll.u32 %s4357_s15, 4  ;;  %s4358_s17 = smov 128   ;;  %s19_s16 = int_to_ptr.vmem [resolvable:$true] %s18_s16 }
   0x4   :  { %s4359_s18 = smov 8  }
   0x5   :  { %24 = dma.hbm_to_vmem [thread:$0]  %s17_s14, 16000, %s19_s16, [#allocation4], %s4358_s17, %s4358_s17, %s4359_s18  }
   0x6   :  { %4353 = dma.done.wait [#allocation4], 16384  }
   0x7   :  { %4354 = vsyncadd [#allocation4], 4294950912  ;;  %v4387_v0 = vld [vmem:[#allocation3 + $0x20] sm:$0xff]  ;;  %v4389_v1 = vld [vmem:[#allocation3 + $0x10] sm:$0xff]  ;;  %s3189_s5 = sshll.u32 %s7382_s3, 4  ;;  %s4362_s6 = smov 1024   ;;  %s3190_s5 = int_to_ptr.hbm [resolvable:$true] %s3189_s5 }
   0x8   :  { %v4391_v2 = vld [vmem:[#allocation3] sm:$0xff]  ;;  %v167_v3 = vmul.f32 %v4387_v0, %v4387_v0  ;;  %v165_v4 = vmul.f32 %v4389_v1, %v4389_v1  ;;  %v4399_v6 = vld [vmem:[#allocation3 + $0x28] sm:$0xff]  ;;  %v4401_v7 = vld [vmem:[#allocation3 + $0x18] sm:$0xff]  ;;  %s4363_s7 = smov 64  }
   0x9   :  { %v163_v5 = vmul.f32 %v4391_v2, %v4391_v2  ;;  %v4403_v8 = vld [vmem:[#allocation3 + $0x8] sm:$0xff]  ;;  %v168_v9 = vmul.f32 %v4399_v6, %v4399_v6  ;;  %v166_v10 = vmul.f32 %v4401_v7, %v4401_v7  ;;  %v4411_v12 = vld [vmem:[#allocation3 + $0x40] sm:$0xff]  ;;  %v4413_v13 = vld [vmem:[#allocation3 + $0x38] sm:$0xff] }
   0xa   :  { %299 = vadd.xlane.f32.xlu2 %v167_v3  ;;  %295 = vadd.xlane.f32.xlu1 %v165_v4  ;;  %v164_v11 = vmul.f32 %v4403_v8, %v4403_v8  ;;  %v4415_v14 = vld [vmem:[#allocation3 + $0x30] sm:$0xff]  ;;  %v171_v15 = vmul.f32 %v4411_v12, %v4411_v12  ;;  %v170_v16 = vmul.f32 %v4413_v13, %v4413_v13  ;;  %v4423_v18 = vld [vmem:[#allocation3 + $0x58] sm:$0xff]  ;;  %v4427_v20 = vld [vmem:[#allocation3 + $0x48] sm:$0xff] }
   0xb   :  { %291 = vadd.xlane.f32.xlu0 %v163_v5  ;;  %v169_v17 = vmul.f32 %v4415_v14, %v4415_v14  ;;  %v4425_v19 = vld [vmem:[#allocation3 + $0x50] sm:$0xff]  ;;  %v174_v21 = vmul.f32 %v4423_v18, %v4423_v18  ;;  %v172_v23 = vmul.f32 %v4427_v20, %v4427_v20  ;;  %v4437_v25 = vld [vmem:[#allocation3 + $0x68] sm:$0xff]  ;;  %v4439_v26 = vld [vmem:[#allocation3 + $0x60] sm:$0xff] }
   0xc   :  { %v173_v22 = vmul.f32 %v4425_v19, %v4425_v19  ;;  %v4435_v24 = vld [vmem:[#allocation3 + $0x70] sm:$0xff]  ;;  %v176_v28 = vmul.f32 %v4437_v25, %v4437_v25  ;;  %v175_v29 = vmul.f32 %v4439_v26, %v4439_v26  ;;  %v4447_v30 = vld [vmem:[#allocation3 + $0x88] sm:$0xff]  ;;  %v4449_v31 = vld [vmem:[#allocation3 + $0x80] sm:$0xff] }
   0xd   :  { %v177_v27 = vmul.f32 %v4435_v24, %v4435_v24  ;;  %v4451_v32 = vld [vmem:[#allocation3 + $0x78] sm:$0xff]  ;;  %v180_v33 = vmul.f32 %v4447_v30, %v4447_v30  ;;  %v179_v34 = vmul.f32 %v4449_v31, %v4449_v31  ;;  %v97_v36 = vld [vmem:[#allocation3 + $0x1f0] sm:$0xff]  ;;  %v95_v48 = vld [vmem:[#allocation3 + $0x1e0] sm:$0xff] }
   0xe   :  { %v178_v35 = vmul.f32 %v4451_v32, %v4451_v32  ;;  %v4459_v37 = vld [vmem:[#allocation3 + $0x178] sm:$0xff]  ;;  %v4461_v38 = vld [vmem:[#allocation3 + $0x170] sm:$0xff]  ;;  %v225_v39 = vmul.f32 %v97_v36, %v97_v36  ;;  %v80_v49 = vld [vmem:[#allocation3 + $0x168] sm:$0xff]  ;;  %v223_v51 = vmul.f32 %v95_v48, %v95_v48 }
   0xf   :  { %v210_v40 = vmul.f32 %v4459_v37, %v4459_v37  ;;  %v209_v41 = vmul.f32 %v4461_v38, %v4461_v38  ;;  %v66_v42 = vld [vmem:[#allocation3 + $0xf8] sm:$0xff]  ;;  %v65_v43 = vld [vmem:[#allocation3 + $0xf0] sm:$0xff]  ;;  %v79_v50 = vld [vmem:[#allocation3 + $0x160] sm:$0xff]  ;;  %v208_v52 = vmul.f32 %v80_v49, %v80_v49 }
  0x10   :  { %v98_v44 = vld [vmem:[#allocation3 + $0x1f8] sm:$0xff]  ;;  %v194_v45 = vmul.f32 %v66_v42, %v66_v42  ;;  %v193_v46 = vmul.f32 %v65_v43, %v65_v43  ;;  %v207_v53 = vmul.f32 %v79_v50, %v79_v50  ;;  %v64_v54 = vld [vmem:[#allocation3 + $0xe8] sm:$0xff]  ;;  %v63_v55 = vld [vmem:[#allocation3 + $0xe0] sm:$0xff] }
  0x11   :  { %v226_v47 = vmul.f32 %v98_v44, %v98_v44  ;;  %v96_v56 = vld [vmem:[#allocation3 + $0x1e8] sm:$0xff]  ;;  %v192_v57 = vmul.f32 %v64_v54, %v64_v54  ;;  %v191_v58 = vmul.f32 %v63_v55, %v63_v55  ;;  %v145_v60 = vld [vmem:[#allocation3 + $0x370] sm:$0xff]  ;;  %v78_v61 = vld [vmem:[#allocation3 + $0x158] sm:$0xff] }
  0x12   :  { %301 = vadd.xlane.f32.xlu2 %v168_v9  ;;  %297 = vadd.xlane.f32.xlu1 %v166_v10  ;;  %v224_v59 = vmul.f32 %v96_v56, %v96_v56  ;;  %v77_v62 = vld [vmem:[#allocation3 + $0x150] sm:$0xff]  ;;  %v273_v63 = vmul.f32 %v145_v60, %v145_v60  ;;  %v206_v3 = vmul.f32 %v78_v61, %v78_v61  ;;  %v94_v5 = vld [vmem:[#allocation3 + $0x1d8] sm:$0xff]  ;;  %v76_v48 = vld [vmem:[#allocation3 + $0x148] sm:$0xff] }
  0x13   :  { %293 = vadd.xlane.f32.xlu0 %v164_v11  ;;  %v205_v4 = vmul.f32 %v77_v62, %v77_v62  ;;  %v93_v9 = vld [vmem:[#allocation3 + $0x1d0] sm:$0xff]  ;;  %v146_v10 = vld [vmem:[#allocation3 + $0x378] sm:$0xff]  ;;  %v222_v11 = vmul.f32 %v94_v5, %v94_v5  ;;  %v91_v60 = vld [vmem:[#allocation3 + $0x1c0] sm:$0xff] }
  0x14   :  { %v129_v42 = vld [vmem:[#allocation3 + $0x2f0] sm:$0xff] }
  0x1a   :  { %307 = vadd.xlane.f32.xlu2 %v171_v15  ;;  %305 = vadd.xlane.f32.xlu1 %v170_v16  ;;  %v221_v15 = vmul.f32 %v93_v9, %v93_v9  ;;  %v274_v16 = vmul.f32 %v146_v10, %v146_v10 }
  0x1b   :  { %303 = vadd.xlane.f32.xlu0 %v169_v17  ;;  %v161_v17 = vld [vmem:[#allocation3 + $0x3f0] sm:$0xff] }
  0x22   :  { %313 = vadd.xlane.f32.xlu2 %v174_v21  ;;  %311 = vadd.xlane.f32.xlu1 %v173_v22  ;;  %v114_v21 = vld [vmem:[#allocation3 + $0x278] sm:$0xff]  ;;  %v113_v22 = vld [vmem:[#allocation3 + $0x270] sm:$0xff] }
  0x23   :  { %309 = vadd.xlane.f32.xlu0 %v172_v23  ;;  %v289_v23 = vmul.f32 %v161_v17, %v161_v17  ;;  %v219_v17 = vmul.f32 %v91_v60, %v91_v60 }
  0x2a   :  { %319 = vadd.xlane.f32.xlu2 %v177_v27  ;;  %317 = vadd.xlane.f32.xlu1 %v176_v28  ;;  %v242_v27 = vmul.f32 %v114_v21, %v114_v21  ;;  %v241_v28 = vmul.f32 %v113_v22, %v113_v22 }
  0x2b   :  { %315 = vadd.xlane.f32.xlu0 %v175_v29  ;;  %v62_v29 = vld [vmem:[#allocation3 + $0xd8] sm:$0xff] }
  0x32   :  { %325 = vadd.xlane.f32.xlu2 %v180_v33  ;;  %323 = vadd.xlane.f32.xlu1 %v179_v34  ;;  %v61_v33 = vld [vmem:[#allocation3 + $0xd0] sm:$0xff]  ;;  %v162_v34 = vld [vmem:[#allocation3 + $0x3f8] sm:$0xff] }
  0x33   :  { %321 = vadd.xlane.f32.xlu0 %v178_v35  ;;  %v190_v35 = vmul.f32 %v62_v29, %v62_v29  ;;  %v189_v36 = vmul.f32 %v61_v33, %v61_v33  ;;  %v159_v29 = vld [vmem:[#allocation3 + $0x3e0] sm:$0xff]  ;;  %v112_v33 = vld [vmem:[#allocation3 + $0x268] sm:$0xff] }
  0x3a   :  { %415 = vadd.xlane.f32.xlu2 %v225_v39  ;;  %385 = vadd.xlane.f32.xlu1 %v210_v40  ;;  %v290_v39 = vmul.f32 %v162_v34, %v162_v34  ;;  %v75_v40 = vld [vmem:[#allocation3 + $0x140] sm:$0xff] }
  0x3b   :  { %383 = vadd.xlane.f32.xlu0 %v209_v41  ;;  %v130_v41 = vld [vmem:[#allocation3 + $0x2f8] sm:$0xff]  ;;  %v203_v43 = vmul.f32 %v75_v40, %v75_v40 }
  0x3c   :  { %v258_v44 = vmul.f32 %v130_v41, %v130_v41  ;;  %v60_v41 = vld [vmem:[#allocation3 + $0xc8] sm:$0xff] }
  0x42   :  { %353 = vadd.xlane.f32.xlu2 %v194_v45  ;;  %351 = vadd.xlane.f32.xlu1 %v193_v46  ;;  %v257_v45 = vmul.f32 %v129_v42, %v129_v42  ;;  %v144_v46 = vld [vmem:[#allocation3 + $0x368] sm:$0xff]  ;;  %v59_v42 = vld [vmem:[#allocation3 + $0xc0] sm:$0xff] }
  0x43   :  { %417 = vadd.xlane.f32.xlu0 %v226_v47  ;;  %v143_v47 = vld [vmem:[#allocation3 + $0x360] sm:$0xff]  ;;  %v272_v54 = vmul.f32 %v144_v46, %v144_v46 }
  0x44   :  { %v271_v55 = vmul.f32 %v143_v47, %v143_v47 }
  0x4a   :  { %411 = vadd.xlane.f32.xlu2 %v223_v51  ;;  %381 = vadd.xlane.f32.xlu1 %v208_v52 }
  0x4b   :  { %379 = vadd.xlane.f32.xlu0 %v207_v53 }
  0x52   :  { %349 = vadd.xlane.f32.xlu2 %v192_v57  ;;  %347 = vadd.xlane.f32.xlu1 %v191_v58  ;;  %v204_v57 = vmul.f32 %v76_v48, %v76_v48  ;;  %v111_v58 = vld [vmem:[#allocation3 + $0x260] sm:$0xff] }
  0x53   :  { %413 = vadd.xlane.f32.xlu0 %v224_v59  ;;  %v92_v59 = vld [vmem:[#allocation3 + $0x1c8] sm:$0xff]  ;;  %v239_v9 = vmul.f32 %v111_v58, %v111_v58  ;;  %v4512_v58 = vmul.f32 %v59_v42, %v59_v42 }
  0x54   :  { %v220_v10 = vmul.f32 %v92_v59, %v92_v59 }
  0x5a   :  { %511 = vadd.xlane.f32.xlu2 %v273_v63  ;;  %377 = vadd.xlane.f32.xlu1 %v206_v3 }
  0x5b   :  { %375 = vadd.xlane.f32.xlu0 %v205_v4 }
  0x62   :  { %409 = vadd.xlane.f32.xlu2 %v222_v11  ;;  %407 = vadd.xlane.f32.xlu1 %v221_v15 }
  0x63   :  { %513 = vadd.xlane.f32.xlu0 %v274_v16 }
  0x6a   :  { %543 = vadd.xlane.f32.xlu2 %v289_v23  ;;  %449 = vadd.xlane.f32.xlu1 %v242_v27  ;;  %v160_v23 = vld [vmem:[#allocation3 + $0x3e8] sm:$0xff] }
  0x6b   :  { %447 = vadd.xlane.f32.xlu0 %v241_v28  ;;  %v288_v40 = vmul.f32 %v160_v23, %v160_v23 }
  0x72   :  { %345 = vadd.xlane.f32.xlu2 %v190_v35  ;;  %343 = vadd.xlane.f32.xlu1 %v189_v36  ;;  %v127_v35 = vld [vmem:[#allocation3 + $0x2e0] sm:$0xff] }
  0x73   :  { %545 = vadd.xlane.f32.xlu0 %v290_v39 }
  0x7a   :  { %371 = vadd.xlane.f32.xlu2 %v203_v43  ;;  %481 = vadd.xlane.f32.xlu1 %v258_v44  ;;  %v287_v44 = vmul.f32 %v159_v29, %v159_v29 }
  0x7b   :  { %479 = vadd.xlane.f32.xlu0 %v257_v45  ;;  %v240_v45 = vmul.f32 %v112_v33, %v112_v33 }
  0x7d   :  { %v300_v49 = vpop.xlane.xlu2 %299  ;;  %v296_v50 = vpop.xlane.xlu1 %295 }
  0x7e   :  { %v4467_v51 = vmax.f32 %v300_v49, 1e-24  ;;  %v4469_v52 = vmax.f32 %v296_v50, 1e-24  ;;  %v292_v53 = vpop.xlane.xlu0 %291  ;;  %v4502_v50 = vmul.f32 %v127_v35, %v127_v35 }
  0x7f   :  { %v4471_v56 = vmax.f32 %v292_v53, 1e-24 }
  0x80   :  { %3931 = vrsqrt.f32 %v4467_v51  ;;  %vm721_vm0 = vweird.f32 %v4467_v51  ;;  %vm701_vm1 = vweird.f32 %v4469_v52 }
  0x81   :  { %3933 = vrsqrt.f32 %v4469_v52  ;;  %vm681_vm3 = vweird.f32 %v4471_v56 }
  0x82   :  { %3935 = vrsqrt.f32 %v4471_v56  ;;  %509 = vadd.xlane.f32.xlu2 %v272_v54  ;;  %507 = vadd.xlane.f32.xlu1 %v271_v55 }
  0x83   :  { %373 = vadd.xlane.f32.xlu0 %v204_v57  ;;  %v4510_v57 = vmul.f32 %v60_v41, %v60_v41 }
  0x85   :  { %v302_v61 = vpop.xlane.xlu2 %301  ;;  %v298_v62 = vpop.xlane.xlu1 %297 }
  0x86   :  { %v4476_v63 = vpop.eup %3931  ;;  %v4478_v3 = vmax.f32 %v302_v61, 1e-24  ;;  %v4480_v4 = vmax.f32 %v298_v62, 1e-24  ;;  %v294_v5 = vpop.xlane.xlu0 %293  ;;  %v74_v62 = vld [vmem:[#allocation3 + $0x138] sm:$0xff] }
  0x87   :  { %v4482_v11 = vpop.eup %3933  ;;  %v716_v15 = vmul.f32 %v4476_v63, %v4467_v51  ;;  %v4486_v16 = vmax.f32 %v294_v5, 1e-24  ;;  %vm722_vm2 = vweird.f32 %v4476_v63  ;;  %v4535_v29 = vmul.f32 %v74_v62, %v74_v62 }
  0x88   :  { %v4488_v21 = vpop.eup %3935  ;;  %v696_v22 = vmul.f32 %v4482_v11, %v4469_v52  ;;  %3937 = vrsqrt.f32 %v4478_v3  ;;  %vm702_vm4 = vweird.f32 %v4482_v11  ;;  %vm731_vm5 = vweird.f32 %v4478_v3  ;;  %vm4541_vm9 = vmor %vm721_vm0, %vm722_vm2 }
  0x89   :  { %v717_v27 = vmul.f32 %v4476_v63, %v716_v15  ;;  %v676_v28 = vmul.f32 %v4488_v21, %v4471_v56  ;;  %3939 = vrsqrt.f32 %v4480_v4  ;;  %vm682_vm6 = vweird.f32 %v4488_v21  ;;  %vm4563_vm11 = vmor %vm701_vm1, %vm702_vm4 }
  0x8a   :  { %v697_v34 = vmul.f32 %v4482_v11, %v696_v22  ;;  %3941 = vrsqrt.f32 %v4486_v16  ;;  %443 = vadd.xlane.f32.xlu2 %v239_v9  ;;  %405 = vadd.xlane.f32.xlu1 %v220_v10  ;;  %vm711_vm7 = vweird.f32 %v4480_v4  ;;  %vm691_vm8 = vweird.f32 %v4486_v16  ;;  %vm4576_vm13 = vmor %vm681_vm3, %vm682_vm6 }
  0x8b   :  { %v718_v36 = vmul.f32 0.5, %v717_v27  ;;  %v677_v39 = vmul.f32 %v4488_v21, %v676_v28  ;;  %403 = vadd.xlane.f32.xlu0 %v219_v17  ;;  %v73_v17 = vld [vmem:[#allocation3 + $0x130] sm:$0xff] }
  0x8c   :  { %v698_v43 = vmul.f32 0.5, %v697_v34 }
  0x8d   :  { %v719_v46 = vsub.f32 1.5, %v718_v36  ;;  %v678_v47 = vmul.f32 0.5, %v677_v39  ;;  %v308_v48 = vpop.xlane.xlu2 %307  ;;  %v306_v49 = vpop.xlane.xlu1 %305  ;;  %v4547_v36 = vmul.f32 %v73_v17, %v73_v17 }
  0x8e   :  { %v4504_v53 = vpop.eup %3937  ;;  %v4508_v54 = vmax.f32 %v308_v48, 1e-24  ;;  %v304_v55 = vpop.xlane.xlu0 %303  ;;  %v699_v60 = vsub.f32 1.5, %v698_v43  ;;  %v4526_v15 = vmax.f32 %v306_v49, 1e-24 }
  0x8f   :  { %v4514_v59 = vpop.eup %3939  ;;  %v726_v61 = vmul.f32 %v4504_v53, %v4478_v3  ;;  %v720_v9 = vmul.f32 %v4476_v63, %v719_v46  ;;  %v679_v22 = vsub.f32 1.5, %v678_v47  ;;  %vm732_vm10 = vweird.f32 %v4504_v53 }
  0x90   :  { %v4520_v5 = vpop.eup %3941  ;;  %v706_v10 = vmul.f32 %v4514_v59, %v4480_v4  ;;  %3943 = vrsqrt.f32 %v4508_v54  ;;  %vm712_vm12 = vweird.f32 %v4514_v59  ;;  %vm733_vm15 = vmor %vm731_vm5, %vm732_vm10  ;;  %v128_v4 = vld [vmem:[#allocation3 + $0x2e8] sm:$0xff]  ;;  %vm751_vm2 = vweird.f32 %v4526_v15 }
  0x91   :  { %v727_v23 = vmul.f32 %v4504_v53, %v726_v61  ;;  %v686_v27 = vmul.f32 %v4520_v5, %v4486_v16  ;;  %v724_v39 = vsel %vm4541_vm9, %v4476_v63, %v720_v9  ;;  %3945 = vrsqrt.f32 %v4526_v15  ;;  %vm713_vm0 = vmor %vm711_vm7, %vm712_vm12 }
  0x92   :  { %v707_v28 = vmul.f32 %v4514_v59, %v706_v10  ;;  %541 = vadd.xlane.f32.xlu2 %v288_v40  ;;  %539 = vadd.xlane.f32.xlu1 %v287_v44  ;;  %v700_v40 = vmul.f32 %v4482_v11, %v699_v60  ;;  %v680_v51 = vmul.f32 %v4488_v21, %v679_v22  ;;  %v4555_v44 = vmax.f32 %v304_v55, 1e-24 }
  0x93   :  { %v728_v34 = vmul.f32 0.5, %v727_v23  ;;  %v687_v35 = vmul.f32 %v4520_v5, %v686_v27  ;;  %445 = vadd.xlane.f32.xlu0 %v240_v45  ;;  %vm692_vm14 = vweird.f32 %v4520_v5  ;;  %v1959_v10 = vmul.f32 %v724_v39, %v4387_v0 }
  0x94   :  { %v708_v41 = vmul.f32 0.5, %v707_v28  ;;  %v704_v17 = vsel %vm4563_vm11, %v4482_v11, %v700_v40  ;;  %3947 = vrsqrt.f32 %v4555_v44  ;;  %v684_v22 = vsel %vm4576_vm13, %v4488_v21, %v680_v51  ;;  %vm693_vm1 = vmor %vm691_vm8, %vm692_vm14 }
  0x95   :  { %v729_v42 = vsub.f32 1.5, %v728_v34  ;;  %v688_v43 = vmul.f32 0.5, %v687_v35  ;;  %v314_v46 = vpop.xlane.xlu2 %313  ;;  %v312_v47 = vpop.xlane.xlu1 %311  ;;  %v1955_v16 = vmul.f32 %v684_v22, %v4391_v2  ;;  %v256_v39 = vmul.f32 %v128_v4, %v128_v4 }
  0x96   :  { %v4557_v45 = vpop.eup %3943  ;;  %v709_v48 = vsub.f32 1.5, %v708_v41  ;;  %v4568_v49 = vmax.f32 %v314_v46, 1e-24  ;;  %v4570_v60 = vmax.f32 %v312_v47, 1e-24  ;;  %v310_v55 = vpop.xlane.xlu0 %309  ;;  %vm741_vm3 = vweird.f32 %v4555_v44  ;;  %v142_v47 = vld [vmem:[#allocation3 + $0x358] sm:$0xff] }
  0x97   :  { %v730_v52 = vmul.f32 %v4504_v53, %v729_v42  ;;  %v689_v62 = vsub.f32 1.5, %v688_v43  ;;  %v756_v9 = vmul.f32 %v4557_v45, %v4508_v54  ;;  %v4604_v3 = vpop.eup %3945  ;;  %vm761_vm4 = vweird.f32 %v4508_v54 }
  0x98   :  { %v710_v56 = vmul.f32 %v4514_v59, %v709_v48  ;;  %3949 = vrsqrt.f32 %v4568_v49  ;;  %v746_v28 = vmul.f32 %v4604_v3, %v4526_v15  ;;  %vm762_vm5 = vweird.f32 %v4557_v45 }
  0x99   :  { %v734_v23 = vsel %vm733_vm15, %v4504_v53, %v730_v52  ;;  %v690_v0 = vmul.f32 %v4520_v5, %v689_v62  ;;  %v757_v21 = vmul.f32 %v4557_v45, %v756_v9  ;;  %3951 = vrsqrt.f32 %v4570_v60 }
  0x9a   :  { %v1960_v11 = vmul.f32 %v734_v23, %v4399_v6  ;;  %v714_v27 = vsel %vm713_vm0, %v4514_v59, %v710_v56  ;;  %475 = vadd.xlane.f32.xlu2 %v4502_v50  ;;  %341 = vadd.xlane.f32.xlu1 %v4510_v57  ;;  %v1957_v53 = vmul.f32 %v704_v17, %v4389_v1  ;;  %v4624_v50 = vmax.f32 %v310_v55, 1e-24  ;;  %v89_v57 = vld [vmem:[#allocation3 + $0x1b0] sm:$0xff]  ;;  %v4628_v40 = vpop.eup %3947 }
  0x9b   :  { %v1958_v6 = vmul.f32 %v714_v27, %v4401_v7  ;;  %v694_v59 = vsel %vm693_vm1, %v4520_v5, %v690_v0  ;;  %339 = vadd.xlane.f32.xlu0 %v4512_v58  ;;  %v747_v1 = vmul.f32 %v4604_v3, %v746_v28  ;;  %v758_v41 = vmul.f32 0.5, %v757_v21 }
  0x9c   :  { %v3551_v33 = vpack.c.bf16 %v1960_v11, %v1959_v10  ;;  %v1956_v34 = vmul.f32 %v694_v59, %v4403_v8  ;;  %3953 = vrsqrt.f32 %v4624_v50  ;;  %v736_v43 = vmul.f32 %v4628_v40, %v4555_v44  ;;  %v141_v11 = vld [vmem:[#allocation3 + $0x350] sm:$0xff] }
  0x9d   :  { %v3546_v35 = vpack.c.bf16 %v1958_v6, %v1957_v53  ;;  %v320_v7 = vpop.xlane.xlu2 %319  ;;  %v318_v5 = vpop.xlane.xlu1 %317  ;;  %v748_v42 = vmul.f32 0.5, %v747_v1  ;;  %v4638_v46 = vmul.f32 %v89_v57, %v89_v57  ;;  %vm791_vm6 = vweird.f32 %v4568_v49 }
  0x9e   :  { %3859 = vst [vmem:[#allocation2 + $0xd8] sm:$0xff] %v3551_v33   ;;  %v3541_v58 = vpack.c.bf16 %v1956_v34, %v1955_v16  ;;  %v4631_v2 = vmax.f32 %v320_v7, 1e-24  ;;  %v316_v8 = vpop.xlane.xlu0 %315  ;;  %v4633_v51 = vpop.eup %3949  ;;  %vm781_vm7 = vweird.f32 %v4570_v60  ;;  %vm752_vm8 = vweird.f32 %v4604_v3 }
  0x9f   :  { %3858 = vst [vmem:[#allocation2 + $0x1b0] sm:$0xff] %v3546_v35   ;;  %v4640_v63 = vpop.eup %3951  ;;  %v786_v48 = vmul.f32 %v4633_v51, %v4568_v49  ;;  %v749_v55 = vsub.f32 1.5, %v748_v42  ;;  %v737_v61 = vmul.f32 %v4628_v40, %v736_v43  ;;  %v759_v62 = vsub.f32 1.5, %v758_v41  ;;  %vm4668_vm9 = vmor %vm751_vm2, %vm752_vm8 }
  0xa0   :  { %3542 = vst [vmem:[#allocation2 + $0xb0] sm:$0xff] %v3541_v58   ;;  %3955 = vrsqrt.f32 %v4631_v2  ;;  %v776_v52 = vmul.f32 %v4640_v63, %v4570_v60  ;;  %v4654_v10 = vmax.f32 %v318_v5, 1e-24  ;;  %v270_v17 = vmul.f32 %v142_v47, %v142_v47  ;;  %vm4720_vm2 = vmor %vm761_vm4, %vm762_vm5 }
  0xa1   :  { %v787_v9 = vmul.f32 %v4633_v51, %v786_v48  ;;  %v750_v56 = vmul.f32 %v4604_v3, %v749_v55  ;;  %v738_v22 = vmul.f32 0.5, %v737_v61  ;;  %v4660_v0 = vmax.f32 %v316_v8, 1e-24 }
  0xa2   :  { %369 = vadd.xlane.f32.xlu2 %v4535_v29  ;;  %367 = vadd.xlane.f32.xlu1 %v4547_v36  ;;  %v777_v23 = vmul.f32 %v4640_v63, %v776_v52  ;;  %v4662_v27 = vpop.eup %3953  ;;  %vm742_vm10 = vweird.f32 %v4628_v40  ;;  %vm792_vm11 = vweird.f32 %v4633_v51  ;;  %3957 = vrsqrt.f32 %v4654_v10 }
  0xa3   :  { %477 = vadd.xlane.f32.xlu0 %v256_v39  ;;  %v788_v36 = vmul.f32 0.5, %v787_v9  ;;  %v754_v21 = vsel %vm4668_vm9, %v4604_v3, %v750_v56  ;;  %v739_v4 = vsub.f32 1.5, %v738_v22  ;;  %v766_v15 = vmul.f32 %v4662_v27, %v4624_v50  ;;  %vm743_vm14 = vmor %vm741_vm3, %vm742_vm10 }
  0xa4   :  { %v778_v53 = vmul.f32 0.5, %v777_v23  ;;  %vm771_vm12 = vweird.f32 %v4624_v50  ;;  %vm782_vm13 = vweird.f32 %v4640_v63  ;;  %3959 = vrsqrt.f32 %v4660_v0  ;;  %vm793_vm15 = vmor %vm791_vm6, %vm792_vm11 }
  0xa5   :  { %v326_v6 = vpop.xlane.xlu2 %325  ;;  %v324_v59 = vpop.xlane.xlu1 %323  ;;  %v789_v16 = vsub.f32 1.5, %v788_v36  ;;  %v269_v34 = vmul.f32 %v141_v11, %v141_v11  ;;  %v740_v3 = vmul.f32 %v4628_v40, %v739_v4  ;;  %v767_v35 = vmul.f32 %v4662_v27, %v766_v15  ;;  %vm783_vm0 = vmor %vm781_vm7, %vm782_vm13 }
  0xa6   :  { %v4681_v28 = vpop.eup %3955  ;;  %v322_v33 = vpop.xlane.xlu0 %321  ;;  %v779_v57 = vsub.f32 1.5, %v778_v53  ;;  %v760_v7 = vmul.f32 %v4557_v45, %v759_v62  ;;  %v1962_v5 = vmul.f32 %v754_v21, %v4413_v13  ;;  %v4696_v58 = vmax.f32 %v326_v6, 1e-24 }
  0xa7   :  { %v816_v1 = vmul.f32 %v4681_v28, %v4631_v2  ;;  %v790_v39 = vmul.f32 %v4633_v51, %v789_v16  ;;  %v744_v41 = vsel %vm743_vm14, %v4628_v40, %v740_v3  ;;  %v768_v42 = vmul.f32 0.5, %v767_v35 }
  0xa8   :  { %v780_v8 = vmul.f32 %v4640_v63, %v779_v57  ;;  %v4705_v43 = vpop.eup %3957  ;;  %v1961_v44 = vmul.f32 %v744_v41, %v4415_v14  ;;  %vm772_vm1 = vweird.f32 %v4662_v27  ;;  %3961 = vrsqrt.f32 %v4696_v58 }
  0xa9   :  { %v817_v13 = vmul.f32 %v4681_v28, %v816_v1  ;;  %v794_v47 = vsel %vm793_vm15, %v4633_v51, %v790_v39  ;;  %v769_v40 = vsub.f32 1.5, %v768_v42  ;;  %v806_v61 = vmul.f32 %v4705_v43, %v4654_v10  ;;  %vm773_vm4 = vmor %vm771_vm12, %vm772_vm1  ;;  %v90_v39 = vld [vmem:[#allocation3 + $0x1b8] sm:$0xff] }
  0xaa   :  { %399 = vadd.xlane.f32.xlu2 %v4638_v46  ;;  %505 = vadd.xlane.f32.xlu1 %v270_v17  ;;  %v1966_v49 = vmul.f32 %v794_v47, %v4423_v18  ;;  %v784_v60 = vsel %vm783_vm0, %v4640_v63, %v780_v8  ;;  %v4726_v48 = vpop.eup %3959  ;;  %v764_v46 = vsel %vm4720_vm2, %v4557_v45, %v760_v7  ;;  %vm821_vm3 = vweird.f32 %v4631_v2 }
  0xab   :  { %v818_v51 = vmul.f32 0.5, %v817_v13  ;;  %503 = vadd.xlane.f32.xlu0 %v269_v34  ;;  %v3556_v55 = vpack.c.bf16 %v1962_v5, %v1961_v44  ;;  %v1965_v54 = vmul.f32 %v784_v60, %v4425_v19  ;;  %v770_v52 = vmul.f32 %v4662_v27, %v769_v40 }
  0xac   :  { %v796_v63 = vmul.f32 %v4726_v48, %v4660_v0  ;;  %v807_v19 = vmul.f32 %v4705_v43, %v806_v61  ;;  %v4743_v45 = vmax.f32 %v324_v59, 1e-24  ;;  %v4745_v56 = vmax.f32 %v322_v33, 1e-24  ;;  %v109_v59 = vld [vmem:[#allocation3 + $0x250] sm:$0xff] }
  0xad   :  { %v819_v18 = vsub.f32 1.5, %v818_v51  ;;  %v416_v62 = vpop.xlane.xlu2 %415  ;;  %v386_v9 = vpop.xlane.xlu1 %385  ;;  %3860 = vst [vmem:[#allocation2 + $0x18] sm:$0xff] %v3556_v55   ;;  %v3566_v17 = vpack.c.bf16 %v1966_v49, %v1965_v54  ;;  %v1963_v23 = vmul.f32 %v764_v46, %v4411_v12  ;;  %v774_v11 = vsel %vm773_vm4, %v4662_v27, %v770_v52 }
  0xae   :  { %v384_v22 = vpop.xlane.xlu0 %383  ;;  %v797_v29 = vmul.f32 %v4726_v48, %v796_v63  ;;  %v4750_v36 = vmax.f32 %v416_v62, 1e-24  ;;  %v4752_v21 = vpop.eup %3961  ;;  %v1964_v50 = vmul.f32 %v774_v11, %v4427_v20  ;;  %v808_v4 = vmul.f32 0.5, %v807_v19  ;;  %v110_v20 = vld [vmem:[#allocation3 + $0x258] sm:$0xff] }
  0xaf   :  { %3862 = vst [vmem:[#allocation2 + $0x168] sm:$0xff] %v3566_v17   ;;  %vm811_vm5 = vweird.f32 %v4654_v10  ;;  %3963 = vrsqrt.f32 %v4743_v45  ;;  %vm822_vm6 = vweird.f32 %v4681_v28  ;;  %vm812_vm7 = vweird.f32 %v4705_v43 }
  0xb0   :  { %v798_v12 = vmul.f32 0.5, %v797_v29  ;;  %v846_v27 = vmul.f32 %v4752_v21, %v4696_v58  ;;  %v3561_v53 = vpack.c.bf16 %v1964_v50, %v1963_v23  ;;  %v820_v15 = vmul.f32 %v4681_v28, %v819_v18  ;;  %vm4770_vm9 = vmor %vm821_vm3, %vm822_vm6 }
  0xb1   :  { %v809_v6 = vsub.f32 1.5, %v808_v4  ;;  %3965 = vrsqrt.f32 %v4745_v56  ;;  %vm802_vm8 = vweird.f32 %v4726_v48  ;;  %vm801_vm10 = vweird.f32 %v4660_v0  ;;  %vm813_vm11 = vmor %vm811_vm5, %vm812_vm7 }
  0xb2   :  { %v799_v16 = vsub.f32 1.5, %v798_v12  ;;  %v847_v33 = vmul.f32 %v4752_v21, %v846_v27  ;;  %3967 = vrsqrt.f32 %v4750_v36  ;;  %3861 = vst [vmem:[#allocation2 + $0x50] sm:$0xff] %v3561_v53   ;;  %v4776_v57 = vmax.f32 %v386_v9, 1e-24  ;;  %vm803_vm12 = vmor %vm801_vm10, %vm802_vm8 }
  0xb3   :  { %v810_v3 = vmul.f32 %v4705_v43, %v809_v6  ;;  %v4778_v35 = vmax.f32 %v384_v22, 1e-24  ;;  %v238_v7 = vmul.f32 %v110_v20, %v110_v20  ;;  %v237_v5 = vmul.f32 %v109_v59, %v109_v59  ;;  %v158_v6 = vld [vmem:[#allocation3 + $0x3d8] sm:$0xff] }
  0xb4   :  { %v800_v1 = vmul.f32 %v4726_v48, %v799_v16  ;;  %v848_v2 = vmul.f32 0.5, %v847_v33  ;;  %v824_v0 = vsel %vm4770_vm9, %v4681_v28, %v820_v15  ;;  %vm851_vm13 = vweird.f32 %v4696_v58  ;;  %v57_v15 = vld [vmem:[#allocation3 + $0xb0] sm:$0xff] }
  0xb5   :  { %v354_v41 = vpop.xlane.xlu2 %353  ;;  %v352_v8 = vpop.xlane.xlu1 %351  ;;  %v814_v13 = vsel %vm813_vm11, %v4705_v43, %v810_v3  ;;  %3969 = vrsqrt.f32 %v4776_v57  ;;  %441 = vadd.xlane.f32.xlu2 %v238_v7  ;;  %439 = vadd.xlane.f32.xlu1 %v237_v5  ;;  %vm841_vm14 = vweird.f32 %v4743_v45  ;;  %v218_v60 = vmul.f32 %v90_v39, %v90_v39 }
  0xb6   :  { %v4785_v42 = vpop.eup %3963  ;;  %v418_v10 = vpop.xlane.xlu0 %417  ;;  %v1968_v44 = vmul.f32 %v814_v13, %v4437_v25  ;;  %v804_v47 = vsel %vm803_vm12, %v4726_v48, %v800_v1  ;;  %v849_v14 = vsub.f32 1.5, %v848_v2  ;;  %3971 = vrsqrt.f32 %v4778_v35 }
  0xb7   :  { %v836_v49 = vmul.f32 %v4785_v42, %v4743_v45  ;;  %v4799_v28 = vpop.eup %3965  ;;  %v1967_v43 = vmul.f32 %v804_v47, %v4439_v26  ;;  %vm852_vm15 = vweird.f32 %v4752_v21  ;;  %v4812_v46 = vmul.f32 %v824_v0, %v4435_v24  ;;  %401 = vadd.xlane.f32.xlu0 %v218_v60  ;;  %v126_v24 = vld [vmem:[#allocation3 + $0x2d8] sm:$0xff] }
  0xb8   :  { %v4804_v40 = vpop.eup %3967  ;;  %v850_v25 = vmul.f32 %v4752_v21, %v849_v14  ;;  %v826_v48 = vmul.f32 %v4799_v28, %v4745_v56  ;;  %v4816_v54 = vmax.f32 %v354_v41, 1e-24  ;;  %vm831_vm0 = vweird.f32 %v4745_v56  ;;  %vm4826_vm1 = vmor %vm851_vm13, %vm852_vm15 }
  0xb9   :  { %v837_v51 = vmul.f32 %v4785_v42, %v836_v49  ;;  %v3571_v26 = vpack.c.bf16 %v1968_v44, %v1967_v43  ;;  %v1296_v55 = vmul.f32 %v4804_v40, %v4750_v36  ;;  %v4820_v18 = vmax.f32 %v352_v8, 1e-24 }
  0xba   :  { %v827_v52 = vmul.f32 %v4799_v28, %v826_v48  ;;  %vm842_vm2 = vweird.f32 %v4785_v42  ;;  %vm1151_vm3 = vweird.f32 %v4776_v57  ;;  %3973 = vrsqrt.f32 %v4816_v54 }
  0xbb   :  { %v838_v61 = vmul.f32 0.5, %v837_v51  ;;  %v4822_v63 = vpop.eup %3969  ;;  %3863 = vst [vmem:[#allocation2 + $0x130] sm:$0xff] %v3571_v26   ;;  %v1297_v62 = vmul.f32 %v4804_v40, %v1296_v55  ;;  %v854_v9 = vsel %vm4826_vm1, %v4752_v21, %v850_v25  ;;  %vm832_vm4 = vweird.f32 %v4799_v28  ;;  %vm843_vm5 = vmor %vm841_vm14, %vm842_vm2 }
  0xbc   :  { %v828_v19 = vmul.f32 0.5, %v827_v52  ;;  %v1146_v58 = vmul.f32 %v4822_v63, %v4776_v57  ;;  %v4843_v11 = vpop.eup %3971  ;;  %3975 = vrsqrt.f32 %v4820_v18  ;;  %v4847_v50 = vmax.f32 %v418_v10, 1e-24  ;;  %vm833_vm8 = vmor %vm831_vm0, %vm832_vm4 }
  0xbd   :  { %v839_v17 = vsub.f32 1.5, %v838_v61  ;;  %v4839_v22 = vpop.xlane.xlu2 %411  ;;  %v4841_v23 = vpop.xlane.xlu1 %381  ;;  %v1298_v29 = vmul.f32 0.5, %v1297_v62  ;;  %v1136_v53 = vmul.f32 %v4843_v11, %v4778_v35  ;;  %v1972_v20 = vmul.f32 %v854_v9, %v4447_v30  ;;  %v125_v9 = vld [vmem:[#allocation3 + $0x2d0] sm:$0xff] }
  0xbe   :  { %v4849_v4 = vpop.xlane.xlu0 %379  ;;  %v829_v12 = vsub.f32 1.5, %v828_v19  ;;  %v1147_v27 = vmul.f32 %v4822_v63, %v1146_v58  ;;  %vm1152_vm6 = vweird.f32 %v4822_v63  ;;  %vm1141_vm7 = vweird.f32 %v4778_v35 }
  0xbf   :  { %v840_v21 = vmul.f32 %v4785_v42, %v839_v17  ;;  %3977 = vrsqrt.f32 %v4847_v50  ;;  %v1137_v34 = vmul.f32 %v4843_v11, %v1136_v53  ;;  %v1299_v45 = vsub.f32 1.5, %v1298_v29  ;;  %vm1153_vm14 = vmor %vm1151_vm3, %vm1152_vm6  ;;  %v58_v17 = vld [vmem:[#allocation3 + $0xb8] sm:$0xff] }
  0xc0   :  { %v830_v16 = vmul.f32 %v4799_v28, %v829_v12  ;;  %v1148_v33 = vmul.f32 0.5, %v1147_v27  ;;  %v4866_v3 = vpop.eup %3973  ;;  %vm1301_vm9 = vweird.f32 %v4750_v36  ;;  %vm1302_vm10 = vweird.f32 %v4804_v40 }
  0xc1   :  { %v844_v59 = vsel %vm843_vm5, %v4785_v42, %v840_v21  ;;  %v185_v1 = vmul.f32 %v57_v15, %v57_v15  ;;  %v286_v2 = vmul.f32 %v158_v6, %v158_v6  ;;  %v1138_v39 = vmul.f32 0.5, %v1137_v34  ;;  %vm4938_vm4 = vmor %vm1301_vm9, %vm1302_vm10 }
  0xc2   :  { %v1971_v30 = vmul.f32 %v844_v59, %v4449_v31  ;;  %v834_v7 = vsel %vm833_vm8, %v4799_v28, %v830_v16  ;;  %v1149_v5 = vsub.f32 1.5, %v1148_v33  ;;  %v986_v41 = vmul.f32 %v4866_v3, %v4816_v54  ;;  %v157_v31 = vld [vmem:[#allocation3 + $0x3d0] sm:$0xff]  ;;  %v4878_v8 = vpop.eup %3975  ;;  %v4195_v59 = vld [vmem:[#allocation3 + $0xf8] sm:$0xff] }
  0xc3   :  { %v1970_v56 = vmul.f32 %v834_v7, %v4451_v32  ;;  %vm991_vm11 = vweird.f32 %v4816_v54  ;;  %vm981_vm12 = vweird.f32 %v4820_v18  ;;  %335 = vadd.xlane.f32.xlu2 %v185_v1  ;;  %537 = vadd.xlane.f32.xlu1 %v286_v2  ;;  %v1139_v13 = vsub.f32 1.5, %v1138_v39  ;;  %v72_v2 = vld [vmem:[#allocation3 + $0x128] sm:$0xff] }
  0xc4   :  { %v3581_v42 = vpack.c.bf16 %v1972_v20, %v1971_v30  ;;  %v1150_v0 = vmul.f32 %v4822_v63, %v1149_v5  ;;  %vm1142_vm13 = vweird.f32 %v4843_v11  ;;  %v987_v10 = vmul.f32 %v4866_v3, %v986_v41  ;;  %v4196_v5 = vld [vmem:[#allocation3 + $0x1f0] sm:$0xff] }
  0xc5   :  { %v350_v44 = vpop.xlane.xlu2 %349  ;;  %v348_v47 = vpop.xlane.xlu1 %347  ;;  %v3576_v32 = vpack.c.bf16 %v1970_v56, %v4812_v46  ;;  %v4890_v49 = vmul.f32 %v4804_v40, %v1299_v45  ;;  %v976_v28 = vmul.f32 %v4878_v8, %v4820_v18  ;;  %v285_v43 = vmul.f32 %v157_v31, %v157_v31  ;;  %vm1143_vm15 = vmor %vm1141_vm7, %vm1142_vm13  ;;  %v4197_v41 = vld [vmem:[#allocation3 + $0xf0] sm:$0xff] }
  0xc6   :  { %v4886_v14 = vpop.eup %3977  ;;  %3865 = vst [vmem:[#allocation2 + $0x180] sm:$0xff] %v3581_v42   ;;  %v414_v60 = vpop.xlane.xlu0 %413  ;;  %v1154_v25 = vsel %vm1153_vm14, %v4822_v63, %v1150_v0  ;;  %v1140_v51 = vmul.f32 %v4843_v11, %v1139_v13  ;;  %v988_v48 = vmul.f32 0.5, %v987_v10  ;;  %vm992_vm0 = vweird.f32 %v4866_v3  ;;  %v4198_v0 = vld [vmem:[#allocation3 + $0x1f8] sm:$0xff] }
  0xc7   :  { %v1306_v46 = vmul.f32 %v4886_v14, %v4847_v50  ;;  %3864 = vst [vmem:[#allocation2 + $0x48] sm:$0xff] %v3576_v32   ;;  %v2002_v26 = vmul.f32 %v1154_v25, %v4459_v37  ;;  %v977_v57 = vmul.f32 %v4878_v8, %v976_v28  ;;  %535 = vadd.xlane.f32.xlu0 %v285_v43  ;;  %v4910_v55 = vmax.f32 %v4839_v22, 1e-24  ;;  %vm4927_vm3 = vmor %vm991_vm11, %vm992_vm0 }
  0xc8   :  { %v1144_v61 = vsel %vm1143_vm15, %v4843_v11, %v1140_v51  ;;  %v989_v52 = vsub.f32 1.5, %v988_v48  ;;  %v4915_v37 = vmax.f32 %v4841_v23, 1e-24  ;;  %vm982_vm1 = vweird.f32 %v4878_v8 }
  0xc9   :  { %v1307_v63 = vmul.f32 %v4886_v14, %v1306_v46  ;;  %v2001_v35 = vmul.f32 %v1144_v61, %v4461_v38  ;;  %v978_v62 = vmul.f32 0.5, %v977_v57  ;;  %3979 = vrsqrt.f32 %v4910_v55  ;;  %vm4958_vm6 = vmor %vm981_vm12, %vm982_vm1  ;;  %v88_v46 = vld [vmem:[#allocation3 + $0x1a8] sm:$0xff] }
  0xca   :  { %v990_v19 = vmul.f32 %v4866_v3, %v989_v52  ;;  %vm1312_vm2 = vweird.f32 %v4886_v14  ;;  %3981 = vrsqrt.f32 %v4915_v37  ;;  %v4932_v11 = vmax.f32 %v4849_v4, 1e-24 }
  0xcb   :  { %v1308_v58 = vmul.f32 0.5, %v1307_v63  ;;  %v3656_v22 = vpack.c.bf16 %v2002_v26, %v2001_v35  ;;  %v979_v23 = vsub.f32 1.5, %v978_v62  ;;  %v254_v29 = vmul.f32 %v126_v24, %v126_v24 }
  0xcc   :  { %v994_v54 = vsel %vm4927_vm3, %v4866_v3, %v990_v19  ;;  %v253_v27 = vmul.f32 %v125_v9, %v125_v9  ;;  %v186_v53 = vmul.f32 %v58_v17, %v58_v17  ;;  %v1304_v4 = vsel %vm4938_vm4, %v4804_v40, %v4890_v49  ;;  %v139_v3 = vld [vmem:[#allocation3 + $0x340] sm:$0xff]  ;;  %v3480_v19 = vld [vmem:[#allocation2 + $0x130] sm:$0xff] }
  0xcd   :  { %v1309_v12 = vsub.f32 1.5, %v1308_v58  ;;  %v512_v15 = vpop.xlane.xlu2 %511  ;;  %v378_v6 = vpop.xlane.xlu1 %377  ;;  %3880 = vst [vmem:[#allocation2 + $0x28] sm:$0xff] %v3656_v22   ;;  %v980_v36 = vmul.f32 %v4878_v8, %v979_v23  ;;  %vm1311_vm5 = vweird.f32 %v4847_v50  ;;  %3983 = vrsqrt.f32 %v4932_v11  ;;  %473 = vadd.xlane.f32.xlu2 %v254_v29  ;;  %v87_v58 = vld [vmem:[#allocation3 + $0x1a0] sm:$0xff] }
  0xce   :  { %v4952_v20 = vpop.xlane.xlu0 %375  ;;  %v1986_v16 = vmul.f32 %v4195_v59, %v994_v54  ;;  %471 = vadd.xlane.f32.xlu1 %v253_v27  ;;  %v4963_v34 = vmax.f32 %v350_v44, 1e-24  ;;  %v4965_v50 = vmax.f32 %v348_v47, 1e-24  ;;  %vm1313_vm7 = vmor %vm1311_vm5, %vm1312_vm2  ;;  %v4974_v18 = vmax.f32 %v414_v60, 1e-24 }
  0xcf   :  { %v1310_v40 = vmul.f32 %v4886_v14, %v1309_v12  ;;  %v4967_v30 = vpop.eup %3979  ;;  %v984_v45 = vsel %vm4958_vm6, %v4878_v8, %v980_v36  ;;  %337 = vadd.xlane.f32.xlu0 %v186_v53  ;;  %v3481_v1 = vld [vmem:[#allocation2 + $0x48] sm:$0xff]  ;;  %v2017_v39 = vmul.f32 %v4196_v5, %v1304_v4  ;;  %v71_v8 = vld [vmem:[#allocation3 + $0x120] sm:$0xff]  ;;  %v267_v44 = vmul.f32 %v139_v3, %v139_v3 }
  0xd0   :  { %v4976_v7 = vpop.eup %3981  ;;  %v1985_v31 = vmul.f32 %v4197_v41, %v984_v45  ;;  %v1276_v56 = vmul.f32 %v4967_v30, %v4910_v55  ;;  %3985 = vrsqrt.f32 %v4963_v34  ;;  %2884 = vmatpush.bf16.xpose.msra.mxu0 %v3481_v1  ;;  %v200_v49 = vmul.f32 %v72_v2, %v72_v2 }
  0xd1   :  { %v1314_v42 = vsel %vm1313_vm7, %v4886_v14, %v1310_v40  ;;  %v1126_v10 = vmul.f32 %v4976_v7, %v4915_v37  ;;  %3987 = vrsqrt.f32 %v4965_v50  ;;  %v199_v60 = vmul.f32 %v71_v8, %v71_v8 }
  0xd2   :  { %v2018_v13 = vmul.f32 %v4198_v0, %v1314_v42  ;;  %v3616_v47 = vpack.c.bf16 %v1986_v16, %v1985_v31  ;;  %v1277_v32 = vmul.f32 %v4967_v30, %v1276_v56  ;;  %3989 = vrsqrt.f32 %v4974_v18 }
  0xd3   :  { %v4986_v14 = vpop.eup %3983  ;;  %v1127_v43 = vmul.f32 %v4976_v7, %v1126_v10  ;;  %vm1131_vm8 = vweird.f32 %v4915_v37  ;;  %vm1281_vm9 = vweird.f32 %v4910_v55  ;;  %vm1121_vm10 = vweird.f32 %v4932_v11 }
  0xd4   :  { %v3696_v28 = vpack.c.bf16 %v2018_v13, %v2017_v39  ;;  %3872 = vst [vmem:[#allocation2 + $0x60] sm:$0xff] %v3616_v47   ;;  %v1278_v25 = vmul.f32 0.5, %v1277_v32  ;;  %v1116_v51 = vmul.f32 %v4986_v14, %v4932_v11  ;;  %v3497_v48 = vld [vmem:[#allocation2 + $0x28] sm:$0xff]  ;;  %v4999_v52 = vmax.f32 %v512_v15, 1e-24  ;;  %v4200_v11 = vld [vmem:[#allocation3 + $0x160] sm:$0xff] }
  0xd5   :  { %v4993_v26 = vpop.xlane.xlu2 %409  ;;  %v4995_v57 = vpop.xlane.xlu1 %407  ;;  %v1128_v61 = vmul.f32 0.5, %v1127_v43  ;;  %499 = vadd.xlane.f32.xlu2 %v267_v44  ;;  %v5001_v63 = vmax.f32 %v378_v6, 1e-24  ;;  %vm1282_vm11 = vweird.f32 %v4967_v30  ;;  %vm1132_vm12 = vweird.f32 %v4976_v7  ;;  %2912 = vmatpush.bf16.xpose.msra.mxu2 %v3497_v48 }
  0xd6   :  { %3888 = vst [vmem:[#allocation2 + $0x8] sm:$0xff] %v3696_v28   ;;  %v5003_v24 = vpop.xlane.xlu0 %513  ;;  %v1117_v35 = vmul.f32 %v4986_v14, %v1116_v51  ;;  %vm971_vm13 = vweird.f32 %v4963_v34  ;;  %365 = vadd.xlane.f32.xlu1 %v200_v49  ;;  %v5009_v62 = vpop.eup %3985  ;;  %v1279_v9 = vsub.f32 1.5, %v1278_v25  ;;  %vm961_vm14 = vweird.f32 %v4965_v50  ;;  %vm5031_vm0 = vmor %vm1131_vm8, %vm1132_vm12  ;;  %v3479_v28 = vld [vmem:[#allocation2 + $0x168] sm:$0xff] }
  0xd7   :  { %v1129_v17 = vsub.f32 1.5, %v1128_v61  ;;  %363 = vadd.xlane.f32.xlu0 %v199_v60  ;;  %3991 = vrsqrt.f32 %v4999_v52  ;;  %v5013_v22 = vpop.eup %3987  ;;  %vm1122_vm15 = vweird.f32 %v4986_v14  ;;  %v966_v23 = vmul.f32 %v5009_v62, %v4963_v34  ;;  %vm5074_vm6 = vmor %vm1281_vm9, %vm1282_vm11  ;;  %v4201_v34 = vld [vmem:[#allocation3 + $0xe8] sm:$0xff] }
  0xd8   :  { %v1118_v38 = vmul.f32 0.5, %v1117_v35  ;;  %v216_v29 = vmul.f32 %v88_v46, %v88_v46  ;;  %v5018_v21 = vpop.eup %3989  ;;  %v956_v12 = vmul.f32 %v5013_v22, %v4965_v50  ;;  %3993 = vrsqrt.f32 %v5001_v63  ;;  %2885 = vmatpush.bf16.xpose.msra.mxu0 %v3480_v19  ;;  %vm1123_vm4 = vmor %vm1121_vm10, %vm1122_vm15 }
  0xd9   :  { %v1130_v54 = vmul.f32 %v4976_v7, %v1129_v17  ;;  %v5025_v27 = vmax.f32 %v4952_v20, 1e-24  ;;  %v967_v6 = vmul.f32 %v5009_v62, %v966_v23  ;;  %v1286_v4 = vmul.f32 %v5018_v21, %v4974_v18  ;;  %v140_v20 = vld [vmem:[#allocation3 + $0x348] sm:$0xff] }
  0xda   :  { %v1119_v15 = vsub.f32 1.5, %v1118_v38  ;;  %vm1291_vm1 = vweird.f32 %v4974_v18  ;;  %v215_v36 = vmul.f32 %v87_v58, %v87_v58  ;;  %v1280_v59 = vmul.f32 %v4967_v30, %v1279_v9  ;;  %v4203_v38 = vld [vmem:[#allocation3 + $0xe0] sm:$0xff] }
  0xdb   :  { %v1134_v37 = vsel %vm5031_vm0, %v4976_v7, %v1130_v54  ;;  %vm972_vm2 = vweird.f32 %v5009_v62  ;;  %v957_v16 = vmul.f32 %v5013_v22, %v956_v12  ;;  %v3489_v33 = vld [vmem:[#allocation2 + $0x60] sm:$0xff]  ;;  %v968_v3 = vmul.f32 0.5, %v967_v6  ;;  %v4199_v7 = vld [vmem:[#allocation3 + $0x168] sm:$0xff] }
  0xdc   :  { %v1120_v40 = vmul.f32 %v4986_v14, %v1119_v15  ;;  %vm962_vm3 = vweird.f32 %v5013_v22  ;;  %v1287_v45 = vmul.f32 %v5018_v21, %v1286_v4  ;;  %v2000_v41 = vmul.f32 %v4199_v7, %v1134_v37  ;;  %2898 = vmatpush.bf16.xpose.msra.mxu1 %v3489_v33  ;;  %vm973_vm7 = vmor %vm971_vm13, %vm972_vm2  ;;  %v155_v12 = vld [vmem:[#allocation3 + $0x3c0] sm:$0xff]  ;;  %v4204_v15 = vld [vmem:[#allocation3 + $0x1e8] sm:$0xff] }
  0xdd   :  { %v3505_v1 = vld [vmem:[#allocation2 + $0x8] sm:$0xff]  ;;  %v5048_v2 = vpop.xlane.xlu2 %543  ;;  %v5050_v5 = vpop.xlane.xlu1 %449  ;;  %v958_v31 = vmul.f32 0.5, %v957_v16  ;;  %3995 = vrsqrt.f32 %v5025_v27  ;;  %397 = vadd.xlane.f32.xlu2 %v216_v29  ;;  %v268_v42 = vmul.f32 %v140_v20, %v140_v20  ;;  %v969_v0 = vsub.f32 1.5, %v968_v3  ;;  %vm963_vm8 = vmor %vm961_vm14, %vm962_vm3  ;;  %v107_v3 = vld [vmem:[#allocation3 + $0x240] sm:$0xff] }
  0xde   :  { %v5052_v39 = vpop.eup %3991  ;;  %v5059_v56 = vpop.xlane.xlu0 %447  ;;  %v1124_v8 = vsel %vm1123_vm4, %v4986_v14, %v1120_v40  ;;  %v1288_v13 = vmul.f32 0.5, %v1287_v45  ;;  %395 = vadd.xlane.f32.xlu1 %v215_v36  ;;  %2926 = vmatpush.bf16.xpose.msra.mxu3 %v3505_v1  ;;  %vm1292_vm5 = vweird.f32 %v5018_v21  ;;  %v5068_v49 = vmax.f32 %v4993_v26, 1e-24  ;;  %v108_v40 = vld [vmem:[#allocation3 + $0x248] sm:$0xff]  ;;  %v3478_v45 = vld [vmem:[#allocation2 + $0x50] sm:$0xff] }
  0xdf   :  { %v1776_v10 = vmul.f32 %v5052_v39, %v4999_v52  ;;  %v5064_v44 = vpop.eup %3993  ;;  %v1999_v47 = vmul.f32 %v4200_v11, %v1124_v8  ;;  %v959_v32 = vsub.f32 1.5, %v958_v31  ;;  %501 = vadd.xlane.f32.xlu0 %v268_v42  ;;  %v970_v43 = vmul.f32 %v5009_v62, %v969_v0  ;;  %vm1293_vm9 = vmor %vm1291_vm1, %vm1292_vm5 }
  0xe0   :  { %v1289_v60 = vsub.f32 1.5, %v1288_v13  ;;  %v1106_v51 = vmul.f32 %v5064_v44, %v5001_v63  ;;  %v1284_v48 = vsel %vm5074_vm6, %v4967_v30, %v1280_v59  ;;  %3997 = vrsqrt.f32 %v5068_v49  ;;  %2886 = vmatpush.bf16.xpose.msra.mxu0 %v3479_v28 }
  0xe1   :  { %v1777_v25 = vmul.f32 %v5052_v39, %v1776_v10  ;;  %v3651_v46 = vpack.c.bf16 %v2000_v41, %v1999_v47  ;;  %v960_v55 = vmul.f32 %v5013_v22, %v959_v32  ;;  %v974_v26 = vsel %vm973_vm7, %v5009_v62, %v970_v43  ;;  %v4202_v62 = vld [vmem:[#allocation3 + $0x1e0] sm:$0xff] }
  0xe2   :  { %v1290_v30 = vmul.f32 %v5018_v21, %v1289_v60  ;;  %v1107_v35 = vmul.f32 %v5064_v44, %v1106_v51  ;;  %v1984_v17 = vmul.f32 %v4201_v34, %v974_v26  ;;  %vm1781_vm10 = vweird.f32 %v4999_v52 }
  0xe3   :  { %v1778_v61 = vmul.f32 0.5, %v1777_v25  ;;  %v5098_v9 = vpop.eup %3995  ;;  %3879 = vst [vmem:[#allocation2 + $0x1b8] sm:$0xff] %v3651_v46   ;;  %v964_v19 = vsel %vm963_vm8, %v5013_v22, %v960_v55  ;;  %v5107_v50 = vmax.f32 %v4995_v57, 1e-24  ;;  %v2015_v58 = vmul.f32 %v4202_v62, %v1284_v48  ;;  %v4205_v48 = vld [vmem:[#allocation3 + $0x158] sm:$0xff]  ;;  %v4206_v62 = vld [vmem:[#allocation3 + $0x150] sm:$0xff] }
  0xe4   :  { %v1983_v23 = vmul.f32 %v4203_v38, %v964_v19  ;;  %v1294_v29 = vsel %vm1293_vm9, %v5018_v21, %v1290_v30  ;;  %v1108_v54 = vmul.f32 0.5, %v1107_v35  ;;  %v1096_v4 = vmul.f32 %v5098_v9, %v5025_v27 }
  0xe5   :  { %v5110_v53 = vpop.xlane.xlu2 %345  ;;  %v5112_v22 = vpop.xlane.xlu1 %343  ;;  %v2016_v18 = vmul.f32 %v4204_v15, %v1294_v29  ;;  %v1779_v6 = vsub.f32 1.5, %v1778_v61  ;;  %3999 = vrsqrt.f32 %v5107_v50  ;;  %vm1111_vm11 = vweird.f32 %v5001_v63 }
  0xe6   :  { %v5117_v57 = vpop.xlane.xlu0 %545  ;;  %v3611_v36 = vpack.c.bf16 %v1984_v17, %v1983_v23  ;;  %v1109_v20 = vsub.f32 1.5, %v1108_v54  ;;  %vm1112_vm12 = vweird.f32 %v5064_v44  ;;  %v5121_v21 = vpop.eup %3997  ;;  %v1097_v37 = vmul.f32 %v5098_v9, %v1096_v4  ;;  %v3477_v17 = vld [vmem:[#allocation2 + $0x18] sm:$0xff] }
  0xe7   :  { %v3691_v59 = vpack.c.bf16 %v2016_v18, %v2015_v58  ;;  %v5125_v16 = vmax.f32 %v5003_v24, 1e-24  ;;  %v283_v33 = vmul.f32 %v155_v12, %v155_v12  ;;  %vm1782_vm13 = vweird.f32 %v5052_v39  ;;  %vm5141_vm0 = vmor %vm1111_vm11, %vm1112_vm12 }
  0xe8   :  { %3871 = vst [vmem:[#allocation2 + $0x108] sm:$0xff] %v3611_v36   ;;  %v1110_v1 = vmul.f32 %v5064_v44, %v1109_v20  ;;  %vm1101_vm14 = vweird.f32 %v5025_v27  ;;  %v1266_v7 = vmul.f32 %v5121_v21, %v5068_v49  ;;  %v5133_v41 = vmul.f32 %v5052_v39, %v1779_v6  ;;  %2887 = vmatpush.bf16.xpose.msra.mxu0 %v3478_v45  ;;  %vm5162_vm2 = vmor %vm1781_vm10, %vm1782_vm13  ;;  %v4207_v20 = vld [vmem:[#allocation3 + $0x370] sm:$0xff]  ;;  %v4208_v45 = vld [vmem:[#allocation3 + $0x1d8] sm:$0xff] }
  0xe9   :  { %3887 = vst [vmem:[#allocation2 + $0xf0] sm:$0xff] %v3691_v59   ;;  %v1098_v24 = vmul.f32 0.5, %v1097_v37  ;;  %vm1271_vm15 = vweird.f32 %v5068_v49  ;;  %4001 = vrsqrt.f32 %v5125_v16  ;;  %531 = vadd.xlane.f32.xlu2 %v283_v33  ;;  %vm1102_vm1 = vweird.f32 %v5098_v9 }
  0xea   :  { %v1267_v42 = vmul.f32 %v5121_v21, %v1266_v7  ;;  %v236_v8 = vmul.f32 %v108_v40, %v108_v40  ;;  %v235_v0 = vmul.f32 %v107_v3, %v107_v3  ;;  %v3496_v13 = vld [vmem:[#allocation2 + $0x1b8] sm:$0xff]  ;;  %v1114_v11 = vsel %vm5141_vm0, %v5064_v44, %v1110_v1  ;;  %v55_v44 = vld [vmem:[#allocation3 + $0xa0] sm:$0xff]  ;;  %vm1103_vm5 = vmor %vm1101_vm14, %vm1102_vm1 }
  0xeb   :  { %v5147_v10 = vpop.eup %3999  ;;  %v1099_v47 = vsub.f32 1.5, %v1098_v24  ;;  %v5153_v63 = vmax.f32 %v5048_v2, 1e-24  ;;  %v5156_v32 = vmax.f32 %v5050_v5, 1e-24  ;;  %vm1261_vm3 = vweird.f32 %v5107_v50  ;;  %v56_v5 = vld [vmem:[#allocation3 + $0xa8] sm:$0xff]  ;;  %2913 = vmatpush.bf16.xpose.msra.mxu2 %v3496_v13 }
  0xec   :  { %v1268_v14 = vmul.f32 0.5, %v1267_v42  ;;  %v1256_v43 = vmul.f32 %v5147_v10, %v5107_v50  ;;  %437 = vadd.xlane.f32.xlu1 %v236_v8  ;;  %435 = vadd.xlane.f32.xlu0 %v235_v0  ;;  %v5170_v2 = vmax.f32 %v5059_v56, 1e-24  ;;  %v1784_v25 = vsel %vm5162_vm2, %v5052_v39, %v5133_v41  ;;  %v156_v39 = vld [vmem:[#allocation3 + $0x3c8] sm:$0xff]  ;;  %v69_v50 = vld [vmem:[#allocation3 + $0x110] sm:$0xff] }
  0xed   :  { %v5172_v60 = vpop.xlane.xlu2 %371  ;;  %v5174_v52 = vpop.xlane.xlu1 %481  ;;  %v1100_v51 = vmul.f32 %v5098_v9, %v1099_v47  ;;  %vm1272_vm4 = vweird.f32 %v5121_v21  ;;  %4003 = vrsqrt.f32 %v5153_v63  ;;  %v1998_v46 = vmul.f32 %v4205_v48, %v1114_v11  ;;  %v124_v13 = vld [vmem:[#allocation3 + $0x2c8] sm:$0xff]  ;;  %v4209_v11 = vld [vmem:[#allocation3 + $0x1d0] sm:$0xff] }
  0xee   :  { %v5183_v56 = vpop.xlane.xlu0 %479  ;;  %v1269_v55 = vsub.f32 1.5, %v1268_v14  ;;  %v1257_v26 = vmul.f32 %v5147_v10, %v1256_v43  ;;  %4005 = vrsqrt.f32 %v5156_v32  ;;  %v184_v35 = vmul.f32 %v56_v5, %v56_v5  ;;  %vm5202_vm6 = vmor %vm1271_vm15, %vm1272_vm4  ;;  %v123_v5 = vld [vmem:[#allocation3 + $0x2c0] sm:$0xff] }
  0xef   :  { %v5191_v30 = vpop.eup %4001  ;;  %v1104_v61 = vsel %vm1103_vm5, %v5098_v9, %v1100_v51  ;;  %4007 = vrsqrt.f32 %v5170_v2  ;;  %v183_v34 = vmul.f32 %v55_v44, %v55_v44  ;;  %v3488_v19 = vld [vmem:[#allocation2 + $0x108] sm:$0xff]  ;;  %vm1262_vm7 = vweird.f32 %v5147_v10 }
  0xf0   :  { %v1997_v58 = vmul.f32 %v4206_v62, %v1104_v61  ;;  %v1270_v27 = vmul.f32 %v5121_v21, %v1269_v55  ;;  %v1258_v38 = vmul.f32 0.5, %v1257_v26  ;;  %v1786_v23 = vmul.f32 %v5191_v30, %v5125_v16  ;;  %v3504_v29 = vld [vmem:[#allocation2 + $0xf0] sm:$0xff]  ;;  %2888 = vmatpush.bf16.xpose.msra.mxu0 %v3477_v17  ;;  %2899 = vmatpush.bf16.xpose.msra.mxu1 %v3488_v19  ;;  %vm1263_vm11 = vmor %vm1261_vm3, %vm1262_vm7 }
  0xf1   :  { %333 = vadd.xlane.f32.xlu2 %v184_v35  ;;  %v284_v54 = vmul.f32 %v156_v39, %v156_v39  ;;  %v5208_v12 = vmax.f32 %v5110_v53, 1e-24  ;;  %v5211_v15 = vmax.f32 %v5112_v22, 1e-24  ;;  %2927 = vmatpush.bf16.xpose.msra.mxu3 %v3504_v29  ;;  %v5219_v59 = vmul.f32 %v4207_v20, %v1784_v25  ;;  %v4210_v35 = vld [vmem:[#allocation3 + $0x378] sm:$0xff] }
  0xf2   :  { %v3646_v18 = vpack.c.bf16 %v1998_v46, %v1997_v58  ;;  %v1274_v49 = vsel %vm5202_vm6, %v5121_v21, %v1270_v27  ;;  %v1259_v6 = vsub.f32 1.5, %v1258_v38  ;;  %v1787_v4 = vmul.f32 %v5191_v30, %v1786_v23 }
  0xf3   :  { %v5217_v36 = vpop.eup %4003  ;;  %vm1791_vm8 = vweird.f32 %v5125_v16  ;;  %vm1471_vm9 = vweird.f32 %v5156_v32  ;;  %4009 = vrsqrt.f32 %v5208_v12  ;;  %vm1792_vm10 = vweird.f32 %v5191_v30 }
  0xf4   :  { %v5224_v53 = vpop.eup %4005  ;;  %3878 = vst [vmem:[#allocation2 + $0x1a8] sm:$0xff] %v3646_v18   ;;  %v1260_v22 = vmul.f32 %v5147_v10, %v1259_v6  ;;  %v1788_v21 = vmul.f32 0.5, %v1787_v4  ;;  %v1936_v37 = vmul.f32 %v5217_v36, %v5153_v63  ;;  %331 = vadd.xlane.f32.xlu1 %v183_v34  ;;  %533 = vadd.xlane.f32.xlu0 %v284_v54  ;;  %4011 = vrsqrt.f32 %v5211_v15  ;;  %vm1793_vm14 = vmor %vm1791_vm8, %vm1792_vm10 }
  0xf5   :  { %v5230_v33 = vpop.xlane.xlu2 %509  ;;  %v5232_v40 = vpop.xlane.xlu1 %507  ;;  %v2014_v1 = vmul.f32 %v4208_v45, %v1274_v49  ;;  %v1466_v7 = vmul.f32 %v5224_v53, %v5156_v32  ;;  %v5244_v41 = vmax.f32 %v5117_v57, 1e-24  ;;  %vm1461_vm12 = vweird.f32 %v5170_v2  ;;  %v3476_v57 = vld [vmem:[#allocation2 + $0xd8] sm:$0xff] }
  0xf6   :  { %v5234_v3 = vpop.eup %4007  ;;  %v5246_v24 = vpop.xlane.xlu0 %373  ;;  %v1264_v31 = vsel %vm1263_vm11, %v5147_v10, %v1260_v22  ;;  %v1789_v42 = vsub.f32 1.5, %v1788_v21  ;;  %v1937_v8 = vmul.f32 %v5217_v36, %v1936_v37  ;;  %vm951_vm13 = vweird.f32 %v5208_v12  ;;  %v3475_v22 = vld [vmem:[#allocation2 + $0x1b0] sm:$0xff]  ;;  %v4211_v21 = vld [vmem:[#allocation3 + $0x278] sm:$0xff] }
  0xf7   :  { %v1456_v0 = vmul.f32 %v5234_v3, %v5170_v2  ;;  %v2013_v47 = vmul.f32 %v4209_v11, %v1264_v31  ;;  %v1467_v28 = vmul.f32 %v5224_v53, %v1466_v7  ;;  %4013 = vrsqrt.f32 %v5244_v41  ;;  %v138_v31 = vld [vmem:[#allocation3 + $0x338] sm:$0xff] }
  0xf8   :  { %v1790_v14 = vmul.f32 %v5191_v30, %v1789_v42  ;;  %v1938_v10 = vmul.f32 0.5, %v1937_v8  ;;  %v197_v48 = vmul.f32 %v69_v50, %v69_v50  ;;  %v252_v46 = vmul.f32 %v124_v13, %v124_v13  ;;  %2889 = vmatpush.bf16.xpose.msra.mxu0 %v3476_v57  ;;  %v137_v42 = vld [vmem:[#allocation3 + $0x330] sm:$0xff] }
  0xf9   :  { %v1457_v43 = vmul.f32 %v5234_v3, %v1456_v0  ;;  %v5258_v44 = vpop.eup %4009  ;;  %v3686_v25 = vpack.c.bf16 %v2014_v1, %v2013_v47  ;;  %v1468_v51 = vmul.f32 0.5, %v1467_v28  ;;  %vm1472_vm15 = vweird.f32 %v5224_v53 }
  0xfa   :  { %v1794_v55 = vsel %vm1793_vm14, %v5191_v30, %v1790_v14  ;;  %v946_v39 = vmul.f32 %v5258_v44, %v5208_v12  ;;  %v5268_v61 = vpop.eup %4011  ;;  %v1939_v17 = vsub.f32 1.5, %v1938_v10  ;;  %vm1941_vm0 = vweird.f32 %v5153_v63  ;;  %359 = vadd.xlane.f32.xlu2 %v197_v48  ;;  %vm1473_vm4 = vmor %vm1471_vm9, %vm1472_vm15  ;;  %v70_v10 = vld [vmem:[#allocation3 + $0x118] sm:$0xff] }
  0xfb   :  { %v1458_v26 = vmul.f32 0.5, %v1457_v43  ;;  %3886 = vst [vmem:[#allocation2] sm:$0xff] %v3686_v25   ;;  %v2066_v34 = vmul.f32 %v4210_v35, %v1794_v55  ;;  %v1469_v16 = vsub.f32 1.5, %v1468_v51  ;;  %v251_v19 = vmul.f32 %v123_v5, %v123_v5  ;;  %v3495_v62 = vld [vmem:[#allocation2 + $0x1a8] sm:$0xff] }
  0xfc   :  { %vm1462_vm1 = vweird.f32 %v5234_v3  ;;  %v947_v30 = vmul.f32 %v5258_v44, %v946_v39  ;;  %v936_v27 = vmul.f32 %v5268_v61, %v5211_v15  ;;  %469 = vadd.xlane.f32.xlu1 %v252_v46  ;;  %vm941_vm2 = vweird.f32 %v5211_v15  ;;  %2914 = vmatpush.bf16.xpose.msra.mxu2 %v3495_v62  ;;  %v105_v39 = vld [vmem:[#allocation3 + $0x230] sm:$0xff] }
  0xfd   :  { %v1459_v58 = vsub.f32 1.5, %v1458_v26  ;;  %v5275_v38 = vpop.xlane.xlu2 %443  ;;  %v5277_v23 = vpop.xlane.xlu1 %405  ;;  %v3816_v9 = vpack.c.bf16 %v2066_v34, %v5219_v59  ;;  %v1470_v54 = vmul.f32 %v5224_v53, %v1469_v16  ;;  %467 = vadd.xlane.f32.xlu0 %v251_v19  ;;  %v5285_v18 = vmax.f32 %v5172_v60, 1e-24  ;;  %vm1463_vm5 = vmor %vm1461_vm12, %vm1462_vm1  ;;  %v4214_v34 = vld [vmem:[#allocation3 + $0xd0] sm:$0xff] }
  0xfe   :  { %v5279_v29 = vpop.eup %4013  ;;  %vm1942_vm3 = vweird.f32 %v5217_v36  ;;  %v948_v6 = vmul.f32 0.5, %v947_v30  ;;  %v937_v4 = vmul.f32 %v5268_v61, %v936_v27  ;;  %v5294_v20 = vpop.xlane.xlu0 %403  ;;  %v5297_v59 = vmul.f32 %v5217_v36, %v1939_v17  ;;  %v85_v30 = vld [vmem:[#allocation3 + $0x190] sm:$0xff] }
  0xff   :  { %v1460_v49 = vmul.f32 %v5234_v3, %v1459_v58  ;;  %3912 = vst [vmem:[#allocation2 + $0x190] sm:$0xff] %v3816_v9   ;;  %v1474_v60 = vsel %vm1473_vm4, %v5224_v53, %v1470_v54  ;;  %vm952_vm6 = vweird.f32 %v5258_v44  ;;  %v1946_v32 = vmul.f32 %v5279_v29, %v5244_v41  ;;  %v4212_v53 = vld [vmem:[#allocation3 + $0x270] sm:$0xff]  ;;  %vm5344_vm12 = vmor %vm1941_vm0, %vm1942_vm3 }
 0x100   :  { %v2034_v37 = vmul.f32 %v4211_v21, %v1474_v60  ;;  %v949_v1 = vsub.f32 1.5, %v948_v6  ;;  %v938_v7 = vmul.f32 0.5, %v937_v4  ;;  %vm942_vm7 = vweird.f32 %v5268_v61  ;;  %2890 = vmatpush.bf16.xpose.msra.mxu0 %v3475_v22  ;;  %vm953_vm8 = vmor %vm951_vm13, %vm952_vm6  ;;  %v4215_v9 = vld [vmem:[#allocation3 + $0x3f0] sm:$0xff] }
 0x101   :  { %v1464_v45 = vsel %vm1463_vm5, %v5234_v3, %v1460_v49  ;;  %v1947_v2 = vmul.f32 %v5279_v29, %v1946_v32  ;;  %4015 = vrsqrt.f32 %v5285_v18  ;;  %v5313_v13 = vmax.f32 %v5174_v52, 1e-24  ;;  %vm5332_vm10 = vmor %vm941_vm2, %vm942_vm7  ;;  %v4216_v49 = vld [vmem:[#allocation3 + $0x3f8] sm:$0xff] }
 0x102   :  { %v2033_v8 = vmul.f32 %v4212_v53, %v1464_v45  ;;  %v950_v0 = vmul.f32 %v5258_v44, %v949_v1  ;;  %v939_v50 = vsub.f32 1.5, %v938_v7  ;;  %v5316_v3 = vmax.f32 %v5183_v56, 1e-24  ;;  %v3503_v11 = vld [vmem:[#allocation2] sm:$0xff]  ;;  %v4213_v56 = vld [vmem:[#allocation3 + $0xd8] sm:$0xff] }
 0x103   :  { %v1948_v28 = vmul.f32 0.5, %v1947_v2  ;;  %v266_v57 = vmul.f32 %v138_v31, %v138_v31  ;;  %v265_v14 = vmul.f32 %v137_v42, %v137_v42  ;;  %vm1951_vm9 = vweird.f32 %v5244_v41  ;;  %2928 = vmatpush.bf16.xpose.msra.mxu3 %v3503_v11  ;;  %v154_v31 = vld [vmem:[#allocation3 + $0x3b8] sm:$0xff]  ;;  %v153_v2 = vld [vmem:[#allocation3 + $0x3b0] sm:$0xff] }
 0x104   :  { %v3736_v47 = vpack.c.bf16 %v2034_v37, %v2033_v8  ;;  %v954_v43 = vsel %vm953_vm8, %v5258_v44, %v950_v0  ;;  %v940_v5 = vmul.f32 %v5268_v61, %v939_v50  ;;  %4017 = vrsqrt.f32 %v5313_v13 }
 0x105   :  { %v5326_v52 = vpop.xlane.xlu2 %541  ;;  %v1982_v25 = vmul.f32 %v4213_v56, %v954_v43  ;;  %v1949_v44 = vsub.f32 1.5, %v1948_v28  ;;  %vm1952_vm11 = vweird.f32 %v5279_v29  ;;  %4019 = vrsqrt.f32 %v5316_v3  ;;  %497 = vadd.xlane.f32.xlu2 %v266_v57  ;;  %495 = vadd.xlane.f32.xlu1 %v265_v14  ;;  %v5338_v51 = vpop.xlane.xlu1 %539 }
 0x106   :  { %3896 = vst [vmem:[#allocation2 + $0x128] sm:$0xff] %v3736_v47   ;;  %v944_v15 = vsel %vm5332_vm10, %v5268_v61, %v940_v5  ;;  %v198_v46 = vmul.f32 %v70_v10, %v70_v10  ;;  %v5352_v55 = vmax.f32 %v5230_v33, 1e-24  ;;  %v5355_v26 = vmax.f32 %v5232_v40, 1e-24  ;;  %v3474_v33 = vld [vmem:[#allocation2 + $0xb0] sm:$0xff]  ;;  %vm5371_vm13 = vmor %vm1951_vm9, %vm1952_vm11  ;;  %v5378_v62 = vpop.xlane.xlu0 %445 }
 0x107   :  { %v5357_v35 = vpop.eup %4015  ;;  %v1944_v63 = vsel %vm5344_vm12, %v5217_v36, %v5297_v59  ;;  %v1981_v17 = vmul.f32 %v4214_v34, %v944_v15  ;;  %v1950_v16 = vmul.f32 %v5279_v29, %v1949_v44  ;;  %v5365_v61 = vmax.f32 %v5246_v24, 1e-24  ;;  %v86_v36 = vld [vmem:[#allocation3 + $0x198] sm:$0xff] }
 0x108   :  { %v1076_v19 = vmul.f32 %v5357_v35, %v5285_v18  ;;  %361 = vadd.xlane.f32.xlu0 %v198_v46  ;;  %4021 = vrsqrt.f32 %v5352_v55  ;;  %v233_v41 = vmul.f32 %v105_v39, %v105_v39  ;;  %2891 = vmatpush.bf16.xpose.msra.mxu0 %v3474_v33  ;;  %v2081_v54 = vmul.f32 %v4215_v9, %v1944_v63 }
 0x109   :  { %v3606_v24 = vpack.c.bf16 %v1982_v25, %v1981_v17  ;;  %v1954_v58 = vsel %vm5371_vm13, %v5279_v29, %v1950_v16  ;;  %4023 = vrsqrt.f32 %v5355_v26  ;;  %vm1631_vm14 = vweird.f32 %v5313_v13 }
 0x10a   :  { %v5384_v27 = vpop.eup %4017  ;;  %v2082_v6 = vmul.f32 %v4216_v49, %v1954_v58  ;;  %v1077_v4 = vmul.f32 %v5357_v35, %v1076_v19  ;;  %4025 = vrsqrt.f32 %v5365_v61  ;;  %v214_v60 = vmul.f32 %v86_v36, %v86_v36  ;;  %v4217_v58 = vld [vmem:[#allocation3 + $0x2f8] sm:$0xff] }
 0x10b   :  { %v5388_v59 = vpop.eup %4019  ;;  %3870 = vst [vmem:[#allocation2 + $0x150] sm:$0xff] %v3606_v24   ;;  %v1626_v29 = vmul.f32 %v5384_v27, %v5313_v13  ;;  %vm1081_vm15 = vweird.f32 %v5285_v18  ;;  %vm1621_vm0 = vweird.f32 %v5316_v3  ;;  %v213_v37 = vmul.f32 %v85_v30, %v85_v30  ;;  %v106_v24 = vld [vmem:[#allocation3 + $0x238] sm:$0xff] }
 0x10c   :  { %v3856_v32 = vpack.c.bf16 %v2082_v6, %v2081_v54  ;;  %v1078_v22 = vmul.f32 0.5, %v1077_v4  ;;  %v1616_v21 = vmul.f32 %v5388_v59, %v5316_v3  ;;  %vm1082_vm1 = vweird.f32 %v5357_v35  ;;  %v4218_v54 = vld [vmem:[#allocation3 + $0x2f0] sm:$0xff] }
 0x10d   :  { %v3513_v45 = vld [vmem:[#allocation2 + $0x128] sm:$0xff]  ;;  %v1627_v1 = vmul.f32 %v5384_v27, %v1626_v29  ;;  %vm1771_vm2 = vweird.f32 %v5352_v55  ;;  %431 = vadd.xlane.f32.xlu2 %v233_v41  ;;  %393 = vadd.xlane.f32.xlu1 %v214_v60  ;;  %v5401_v7 = vmax.f32 %v5275_v38, 1e-24  ;;  %vm1632_vm3 = vweird.f32 %v5384_v27  ;;  %v5411_v0 = vpop.xlane.xlu2 %475  ;;  %v5418_v28 = vpop.xlane.xlu1 %341  ;;  %vm5467_vm11 = vmor %vm1081_vm15, %vm1082_vm1 }
 0x10e   :  { %v5403_v42 = vpop.eup %4021  ;;  %3920 = vst [vmem:[#allocation2 + $0xa0] sm:$0xff] %v3856_v32   ;;  %v1617_v53 = vmul.f32 %v5388_v59, %v1616_v21  ;;  %vm1761_vm4 = vweird.f32 %v5355_v26  ;;  %v5409_v8 = vmax.f32 %v5277_v23, 1e-24  ;;  %v1079_v38 = vsub.f32 1.5, %v1078_v22  ;;  %vm5443_vm8 = vmor %vm1631_vm14, %vm1632_vm3 }
 0x10f   :  { %v5413_v50 = vpop.eup %4023  ;;  %v1628_v11 = vmul.f32 0.5, %v1627_v1  ;;  %v1766_v47 = vmul.f32 %v5403_v42, %v5352_v55  ;;  %4027 = vrsqrt.f32 %v5401_v7  ;;  %v5425_v10 = vmax.f32 %v5294_v20, 1e-24  ;;  %v5434_v20 = vpop.xlane.xlu0 %339  ;;  %v4219_v1 = vld [vmem:[#allocation3 + $0x368] sm:$0xff] }
 0x110   :  { %2940 = vmatpush.bf16.xpose.msrb.mxu0 %v3513_v45  ;;  %v5420_v57 = vpop.eup %4025  ;;  %v1618_v14 = vmul.f32 0.5, %v1617_v53  ;;  %v1756_v23 = vmul.f32 %v5413_v50, %v5355_v26  ;;  %391 = vadd.xlane.f32.xlu0 %v213_v37  ;;  %v282_v43 = vmul.f32 %v154_v31, %v154_v31  ;;  %vm1091_vm5 = vweird.f32 %v5365_v61 }
 0x111   :  { %v1629_v5 = vsub.f32 1.5, %v1628_v11  ;;  %v1767_v56 = vmul.f32 %v5403_v42, %v1766_v47  ;;  %v1086_v25 = vmul.f32 %v5420_v57, %v5365_v61  ;;  %v281_v12 = vmul.f32 %v153_v2, %v153_v2  ;;  %v4220_v2 = vld [vmem:[#allocation3 + $0x360] sm:$0xff] }
 0x112   :  { %v1619_v44 = vsub.f32 1.5, %v1618_v14  ;;  %vm1622_vm6 = vweird.f32 %v5388_v59  ;;  %vm1772_vm7 = vweird.f32 %v5403_v42  ;;  %v1757_v48 = vmul.f32 %v5413_v50, %v1756_v23  ;;  %v3487_v15 = vld [vmem:[#allocation2 + $0x150] sm:$0xff]  ;;  %v4221_v47 = vld [vmem:[#allocation3 + $0x140] sm:$0xff]  ;;  %v4222_v23 = vld [vmem:[#allocation3 + $0x148] sm:$0xff] }
 0x113   :  { %v1080_v46 = vmul.f32 %v5357_v35, %v1079_v38  ;;  %v1630_v39 = vmul.f32 %v5384_v27, %v1629_v5  ;;  %v1768_v63 = vmul.f32 0.5, %v1767_v56  ;;  %v1087_v34 = vmul.f32 %v5420_v57, %v1086_v25  ;;  %2900 = vmatpush.bf16.xpose.msra.mxu1 %v3487_v15  ;;  %vm1623_vm10 = vmor %vm1621_vm0, %vm1622_vm6 }
 0x114   :  { %v1620_v16 = vmul.f32 %v5388_v59, %v1619_v44  ;;  %v1758_v33 = vmul.f32 0.5, %v1757_v48  ;;  %vm1762_vm9 = vweird.f32 %v5413_v50  ;;  %4029 = vrsqrt.f32 %v5409_v8  ;;  %vm1773_vm13 = vmor %vm1771_vm2, %vm1772_vm7  ;;  %v53_v44 = vld [vmem:[#allocation3 + $0x90] sm:$0xff] }
 0x115   :  { %v5450_v40 = vpop.eup %4027  ;;  %v1634_v19 = vsel %vm5443_vm8, %v5384_v27, %v1630_v39  ;;  %v1769_v13 = vsub.f32 1.5, %v1768_v63  ;;  %v1088_v36 = vmul.f32 0.5, %v1087_v34  ;;  %4031 = vrsqrt.f32 %v5425_v10  ;;  %529 = vadd.xlane.f32.xlu2 %v282_v43  ;;  %527 = vadd.xlane.f32.xlu1 %v281_v12  ;;  %v5482_v32 = vpop.xlane.xlu2 %369  ;;  %vm1763_vm14 = vmor %vm1761_vm4, %vm1762_vm9 }
 0x116   :  { %v2050_v41 = vmul.f32 %v4217_v58, %v1634_v19  ;;  %v1624_v30 = vsel %vm1623_vm10, %v5388_v59, %v1620_v16  ;;  %v1759_v9 = vsub.f32 1.5, %v1758_v33  ;;  %v1436_v27 = vmul.f32 %v5450_v40, %v5401_v7  ;;  %v5493_v37 = vpop.xlane.xlu1 %367 }
 0x117   :  { %v2049_v49 = vmul.f32 %v4218_v54, %v1624_v30  ;;  %v1770_v6 = vmul.f32 %v5403_v42, %v1769_v13  ;;  %v1089_v4 = vsub.f32 1.5, %v1088_v36  ;;  %vm1092_vm12 = vweird.f32 %v5420_v57  ;;  %v5512_v56 = vpop.xlane.xlu0 %477  ;;  %v68_v13 = vld [vmem:[#allocation3 + $0x108] sm:$0xff]  ;;  %v67_v36 = vld [vmem:[#allocation3 + $0x100] sm:$0xff]  ;;  %v122_v30 = vld [vmem:[#allocation3 + $0x2b8] sm:$0xff] }
 0x118   :  { %v1084_v59 = vsel %vm5467_vm11, %v5357_v35, %v1080_v46  ;;  %v1760_v18 = vmul.f32 %v5413_v50, %v1759_v9  ;;  %v1437_v29 = vmul.f32 %v5450_v40, %v1436_v27  ;;  %v234_v60 = vmul.f32 %v106_v24, %v106_v24  ;;  %vm1093_vm15 = vmor %vm1091_vm5, %vm1092_vm12 }
 0x119   :  { %v3776_v22 = vpack.c.bf16 %v2050_v41, %v2049_v49  ;;  %v1774_v21 = vsel %vm1773_vm13, %v5403_v42, %v1770_v6  ;;  %v1090_v35 = vmul.f32 %v5420_v57, %v1089_v4  ;;  %v5491_v55 = vmax.f32 %v5326_v52, 1e-24 }
 0x11a   :  { %v5495_v45 = vpop.eup %4029  ;;  %v2064_v31 = vmul.f32 %v4219_v1, %v1774_v21  ;;  %v1764_v53 = vsel %vm1763_vm14, %v5413_v50, %v1760_v18  ;;  %v1438_v26 = vmul.f32 0.5, %v1437_v29  ;;  %433 = vadd.xlane.f32.xlu0 %v234_v60  ;;  %v5503_v42 = vmax.f32 %v5338_v51, 1e-24  ;;  %v121_v51 = vld [vmem:[#allocation3 + $0x2b0] sm:$0xff] }
 0x11b   :  { %v5505_v52 = vpop.eup %4031  ;;  %3904 = vst [vmem:[#allocation2 + $0xd0] sm:$0xff] %v3776_v22   ;;  %v2063_v38 = vmul.f32 %v4220_v2, %v1764_v53  ;;  %v1094_v11 = vsel %vm1093_vm15, %v5420_v57, %v1090_v35  ;;  %v1246_v50 = vmul.f32 %v5495_v45, %v5409_v8  ;;  %v1995_v14 = vmul.f32 %v4221_v47, %v1084_v59  ;;  %v54_v57 = vld [vmem:[#allocation3 + $0x98] sm:$0xff]  ;;  %v4224_v35 = vld [vmem:[#allocation3 + $0x1c0] sm:$0xff] }
 0x11c   :  { %v1996_v61 = vmul.f32 %v4222_v23, %v1094_v11  ;;  %v1439_v43 = vsub.f32 1.5, %v1438_v26  ;;  %v1236_v5 = vmul.f32 %v5505_v52, %v5425_v10  ;;  %vm1441_vm0 = vweird.f32 %v5401_v7  ;;  %v4225_v53 = vld [vmem:[#allocation3 + $0x260] sm:$0xff] }
 0x11d   :  { %v3811_v25 = vpack.c.bf16 %v2064_v31, %v2063_v38  ;;  %v1247_v12 = vmul.f32 %v5495_v45, %v1246_v50  ;;  %4033 = vrsqrt.f32 %v5491_v55  ;;  %vm1442_vm1 = vweird.f32 %v5450_v40  ;;  %v5542_v9 = vpop.xlane.xlu2 %399 }
 0x11e   :  { %v3641_v48 = vpack.c.bf16 %v1996_v61, %v1995_v14  ;;  %v1237_v15 = vmul.f32 %v5505_v52, %v1236_v5  ;;  %4035 = vrsqrt.f32 %v5503_v42  ;;  %v1440_v46 = vmul.f32 %v5450_v40, %v1439_v43  ;;  %vm5531_vm4 = vmor %vm1441_vm0, %vm1442_vm1  ;;  %v83_v43 = vld [vmem:[#allocation3 + $0x180] sm:$0xff] }
 0x11f   :  { %3911 = vst [vmem:[#allocation2 + $0x68] sm:$0xff] %v3811_v25   ;;  %v1248_v39 = vmul.f32 0.5, %v1247_v12  ;;  %v5522_v63 = vmax.f32 %v5378_v62, 1e-24  ;;  %v249_v34 = vmul.f32 %v121_v51, %v121_v51  ;;  %v182_v16 = vmul.f32 %v54_v57, %v54_v57  ;;  %v5574_v22 = vpop.xlane.xlu0 %503 }
 0x120   :  { %3877 = vst [vmem:[#allocation2 + $0x80] sm:$0xff] %v3641_v48   ;;  %v1238_v17 = vmul.f32 0.5, %v1237_v15  ;;  %v181_v33 = vmul.f32 %v53_v44, %v53_v44  ;;  %vm1251_vm2 = vweird.f32 %v5409_v8  ;;  %vm1252_vm3 = vweird.f32 %v5495_v45  ;;  %v4223_v8 = vld [vmem:[#allocation3 + $0x1c8] sm:$0xff] }
 0x121   :  { %v1249_v19 = vsub.f32 1.5, %v1248_v39  ;;  %4037 = vrsqrt.f32 %v5522_v63  ;;  %463 = vadd.xlane.f32.xlu2 %v249_v34  ;;  %vm1242_vm5 = vweird.f32 %v5505_v52  ;;  %329 = vadd.xlane.f32.xlu1 %v182_v16  ;;  %v5537_v58 = vmax.f32 %v5411_v0, 1e-24  ;;  %v5554_v0 = vpop.xlane.xlu1 %505  ;;  %vm1253_vm7 = vmor %vm1251_vm2, %vm1252_vm3  ;;  %v4226_v16 = vld [vmem:[#allocation3 + $0x3e8] sm:$0xff] }
 0x122   :  { %v1239_v24 = vsub.f32 1.5, %v1238_v17  ;;  %327 = vadd.xlane.f32.xlu0 %v181_v33  ;;  %v5540_v41 = vmax.f32 %v5418_v28, 1e-24  ;;  %v1444_v7 = vsel %vm5531_vm4, %v5450_v40, %v1440_v46  ;;  %vm1241_vm6 = vweird.f32 %v5425_v10 }
 0x123   :  { %v5544_v27 = vpop.eup %4033  ;;  %v1250_v3 = vmul.f32 %v5495_v45, %v1249_v19  ;;  %v5552_v54 = vmax.f32 %v5434_v20, 1e-24  ;;  %4039 = vrsqrt.f32 %v5537_v58  ;;  %v196_v10 = vmul.f32 %v68_v13, %v68_v13  ;;  %vm1243_vm8 = vmor %vm1241_vm6, %vm1242_vm5 }
 0x124   :  { %v5556_v28 = vpop.eup %4035  ;;  %v1240_v49 = vmul.f32 %v5505_v52, %v1239_v24  ;;  %v1926_v40 = vmul.f32 %v5544_v27, %v5491_v55  ;;  %v195_v4 = vmul.f32 %v67_v36, %v67_v36  ;;  %v250_v59 = vmul.f32 %v122_v30, %v122_v30  ;;  %v4227_v36 = vld [vmem:[#allocation3 + $0x3e0] sm:$0xff] }
 0x125   :  { %v1254_v20 = vsel %vm1253_vm7, %v5495_v45, %v1250_v3  ;;  %v1916_v6 = vmul.f32 %v5556_v28, %v5503_v42  ;;  %4041 = vrsqrt.f32 %v5540_v41  ;;  %vm1931_vm9 = vweird.f32 %v5491_v55 }
 0x126   :  { %v2012_v18 = vmul.f32 %v4223_v8, %v1254_v20  ;;  %v1244_v29 = vsel %vm1243_vm8, %v5505_v52, %v1240_v49  ;;  %v1927_v60 = vmul.f32 %v5544_v27, %v1926_v40  ;;  %4043 = vrsqrt.f32 %v5552_v54 }
 0x127   :  { %v5576_v21 = vpop.eup %4037  ;;  %v2011_v45 = vmul.f32 %v4224_v35, %v1244_v29  ;;  %v1917_v1 = vmul.f32 %v5556_v28, %v1916_v6  ;;  %v3494_v31 = vld [vmem:[#allocation2 + $0x80] sm:$0xff]  ;;  %v5581_v26 = vmul.f32 %v4225_v53, %v1444_v7  ;;  %vm1921_vm10 = vweird.f32 %v5503_v42  ;;  %v136_v6 = vld [vmem:[#allocation3 + $0x328] sm:$0xff]  ;;  %v4231_v7 = vld [vmem:[#allocation3 + $0x138] sm:$0xff] }
 0x128   :  { %v1928_v52 = vmul.f32 0.5, %v1927_v60  ;;  %v1446_v2 = vmul.f32 %v5576_v21, %v5522_v63  ;;  %v5587_v50 = vmax.f32 %v5482_v32, 1e-24  ;;  %v5590_v47 = vmax.f32 %v5493_v37, 1e-24  ;;  %2915 = vmatpush.bf16.xpose.msra.mxu2 %v3494_v31  ;;  %v5608_v57 = vpop.xlane.xlu2 %441  ;;  %v135_v35 = vld [vmem:[#allocation3 + $0x320] sm:$0xff] }
 0x129   :  { %v3681_v38 = vpack.c.bf16 %v2012_v18, %v2011_v45  ;;  %v1918_v11 = vmul.f32 0.5, %v1917_v1  ;;  %357 = vadd.xlane.f32.xlu2 %v196_v10  ;;  %v5592_v14 = vpop.eup %4039  ;;  %vm1932_vm11 = vweird.f32 %v5544_v27  ;;  %vm1451_vm12 = vweird.f32 %v5522_v63  ;;  %355 = vadd.xlane.f32.xlu1 %v195_v4  ;;  %v5620_v34 = vpop.xlane.xlu1 %439 }
 0x12a   :  { %v1929_v23 = vsub.f32 1.5, %v1928_v52  ;;  %v1447_v61 = vmul.f32 %v5576_v21, %v1446_v2  ;;  %465 = vadd.xlane.f32.xlu0 %v250_v59  ;;  %vm1922_vm13 = vweird.f32 %v5556_v28  ;;  %v1596_v32 = vmul.f32 %v5592_v14, %v5537_v58  ;;  %vm1933_vm14 = vmor %vm1931_vm9, %vm1932_vm11  ;;  %v5636_v30 = vpop.xlane.xlu0 %401  ;;  %v4228_v59 = vld [vmem:[#allocation3 + $0x268] sm:$0xff] }
 0x12b   :  { %3885 = vst [vmem:[#allocation2 + $0x1e0] sm:$0xff] %v3681_v38   ;;  %v1919_v5 = vsub.f32 1.5, %v1918_v11  ;;  %4045 = vrsqrt.f32 %v5587_v50  ;;  %v5601_v37 = vpop.eup %4041  ;;  %v5606_v12 = vmax.f32 %v5512_v56, 1e-24  ;;  %v211_v39 = vmul.f32 %v83_v43, %v83_v43  ;;  %vm1923_vm15 = vmor %vm1921_vm10, %vm1922_vm13 }
 0x12c   :  { %v1930_v51 = vmul.f32 %v5544_v27, %v1929_v23  ;;  %v1448_v25 = vmul.f32 0.5, %v1447_v61  ;;  %4047 = vrsqrt.f32 %v5590_v47  ;;  %v5610_v44 = vpop.eup %4043  ;;  %v1597_v15 = vmul.f32 %v5592_v14, %v1596_v32 }
 0x12d   :  { %v1920_v48 = vmul.f32 %v5556_v28, %v1919_v5  ;;  %v926_v46 = vmul.f32 %v5601_v37, %v5540_v41  ;;  %vm1452_vm0 = vweird.f32 %v5576_v21  ;;  %v916_v55 = vmul.f32 %v5610_v44, %v5552_v54 }
 0x12e   :  { %v1934_v56 = vsel %vm1933_vm14, %v5544_v27, %v1930_v51  ;;  %v1449_v17 = vsub.f32 1.5, %v1448_v25  ;;  %vm931_vm1 = vweird.f32 %v5540_v41  ;;  %vm921_vm2 = vweird.f32 %v5552_v54  ;;  %vm5642_vm3 = vmor %vm1451_vm12, %vm1452_vm0  ;;  %v4229_v51 = vld [vmem:[#allocation3 + $0xc8] sm:$0xff]  ;;  %v4230_v54 = vld [vmem:[#allocation3 + $0xc0] sm:$0xff] }
 0x12f   :  { %v2080_v33 = vmul.f32 %v4226_v16, %v1934_v56  ;;  %v1924_v19 = vsel %vm1923_vm15, %v5556_v28, %v1920_v48  ;;  %v927_v13 = vmul.f32 %v5601_v37, %v926_v46  ;;  %v917_v42 = vmul.f32 %v5610_v44, %v916_v55 }
 0x130   :  { %v2079_v62 = vmul.f32 %v4227_v36, %v1924_v19  ;;  %v1450_v24 = vmul.f32 %v5576_v21, %v1449_v17  ;;  %v1598_v3 = vmul.f32 0.5, %v1597_v15  ;;  %vm1601_vm4 = vweird.f32 %v5537_v58 }
 0x131   :  { %v5638_v27 = vpop.eup %4045  ;;  %vm1602_vm5 = vweird.f32 %v5592_v14  ;;  %v928_v28 = vmul.f32 0.5, %v927_v13  ;;  %vm1071_vm6 = vweird.f32 %v5587_v50  ;;  %4049 = vrsqrt.f32 %v5606_v12  ;;  %387 = vadd.xlane.f32.xlu2 %v211_v39  ;;  %v84_v13 = vld [vmem:[#allocation3 + $0x188] sm:$0xff] }
 0x132   :  { %v5650_v49 = vpop.eup %4047  ;;  %v3851_v40 = vpack.c.bf16 %v2080_v33, %v2079_v62  ;;  %v1454_v63 = vsel %vm5642_vm3, %v5576_v21, %v1450_v24  ;;  %v918_v10 = vmul.f32 0.5, %v917_v42  ;;  %v1066_v20 = vmul.f32 %v5638_v27, %v5587_v50  ;;  %v3502_v4 = vld [vmem:[#allocation2 + $0x1e0] sm:$0xff]  ;;  %vm5715_vm15 = vmor %vm1601_vm4, %vm1602_vm5 }
 0x133   :  { %v2032_v8 = vmul.f32 %v4228_v59, %v1454_v63  ;;  %v929_v18 = vsub.f32 1.5, %v928_v28  ;;  %vm932_vm7 = vweird.f32 %v5601_v37  ;;  %vm922_vm8 = vweird.f32 %v5610_v44  ;;  %2929 = vmatpush.bf16.xpose.msra.mxu3 %v3502_v4 }
 0x134   :  { %3919 = vst [vmem:[#allocation2 + $0x58] sm:$0xff] %v3851_v40   ;;  %v919_v29 = vsub.f32 1.5, %v918_v10  ;;  %v1067_v60 = vmul.f32 %v5638_v27, %v1066_v20  ;;  %v1056_v21 = vmul.f32 %v5650_v49, %v5590_v47  ;;  %vm1061_vm9 = vweird.f32 %v5590_v47  ;;  %vm5667_vm10 = vmor %vm931_vm1, %vm932_vm7  ;;  %v4232_v20 = vld [vmem:[#allocation3 + $0x130] sm:$0xff] }
 0x135   :  { %v3731_v45 = vpack.c.bf16 %v2032_v8, %v5581_v26  ;;  %v1599_v1 = vsub.f32 1.5, %v1598_v3  ;;  %v930_v31 = vmul.f32 %v5601_v37, %v929_v18  ;;  %v264_v53 = vmul.f32 %v136_v6, %v136_v6  ;;  %vm923_vm12 = vmor %vm921_vm2, %vm922_vm8  ;;  %v152_v18 = vld [vmem:[#allocation3 + $0x3a8] sm:$0xff] }
 0x136   :  { %v920_v2 = vmul.f32 %v5610_v44, %v919_v29  ;;  %v1068_v38 = vmul.f32 0.5, %v1067_v60  ;;  %vm1072_vm11 = vweird.f32 %v5638_v27  ;;  %v1057_v11 = vmul.f32 %v5650_v49, %v1056_v21  ;;  %v5674_v23 = vpop.xlane.xlu2 %335  ;;  %v5691_v32 = vpop.xlane.xlu1 %537 }
 0x137   :  { %v5676_v26 = vpop.eup %4049  ;;  %3895 = vst [vmem:[#allocation2 + $0x20] sm:$0xff] %v3731_v45   ;;  %v934_v41 = vsel %vm5667_vm10, %v5601_v37, %v930_v31  ;;  %493 = vadd.xlane.f32.xlu1 %v264_v53  ;;  %v263_v61 = vmul.f32 %v135_v35, %v135_v35  ;;  %v5686_v43 = vmax.f32 %v5542_v9, 1e-24  ;;  %v5689_v5 = vmax.f32 %v5554_v0, 1e-24  ;;  %v104_v9 = vld [vmem:[#allocation3 + $0x228] sm:$0xff]  ;;  %vm1073_vm14 = vmor %vm1071_vm6, %vm1072_vm11 }
 0x138   :  { %v1980_v25 = vmul.f32 %v4229_v51, %v934_v41  ;;  %v924_v48 = vsel %vm923_vm12, %v5610_v44, %v920_v2  ;;  %v1069_v37 = vsub.f32 1.5, %v1068_v38  ;;  %v1058_v15 = vmul.f32 0.5, %v1057_v11  ;;  %v103_v0 = vld [vmem:[#allocation3 + $0x220] sm:$0xff]  ;;  %v4234_v11 = vld [vmem:[#allocation3 + $0x2e8] sm:$0xff] }
 0x139   :  { %v1600_v46 = vmul.f32 %v5592_v14, %v1599_v1  ;;  %v1979_v39 = vmul.f32 %v4230_v54, %v924_v48  ;;  %v1606_v56 = vmul.f32 %v5676_v26, %v5606_v12  ;;  %491 = vadd.xlane.f32.xlu0 %v263_v61  ;;  %4051 = vrsqrt.f32 %v5686_v43  ;;  %v151_v1 = vld [vmem:[#allocation3 + $0x3a0] sm:$0xff] }
 0x13a   :  { %v1070_v17 = vmul.f32 %v5638_v27, %v1069_v37  ;;  %v1059_v55 = vsub.f32 1.5, %v1058_v15  ;;  %vm1062_vm13 = vweird.f32 %v5650_v49  ;;  %4053 = vrsqrt.f32 %v5689_v5  ;;  %v5701_v44 = vpop.xlane.xlu0 %535 }
 0x13b   :  { %v3601_v16 = vpack.c.bf16 %v1980_v25, %v1979_v39  ;;  %v1607_v33 = vmul.f32 %v5676_v26, %v1606_v56  ;;  %v5709_v19 = vmax.f32 %v5574_v22, 1e-24  ;;  %v232_v50 = vmul.f32 %v104_v9, %v104_v9  ;;  %vm1063_vm0 = vmor %vm1061_vm9, %vm1062_vm13 }
 0x13c   :  { %v1074_v62 = vsel %vm1073_vm14, %v5638_v27, %v1070_v17  ;;  %v1060_v24 = vmul.f32 %v5650_v49, %v1059_v55  ;;  %v231_v42 = vmul.f32 %v103_v0, %v103_v0  ;;  %v1604_v22 = vsel %vm5715_vm15, %v5592_v14, %v1600_v46 }
 0x13d   :  { %3869 = vst [vmem:[#allocation2 + $0x120] sm:$0xff] %v3601_v16   ;;  %v1994_v3 = vmul.f32 %v4231_v7, %v1074_v62  ;;  %v1608_v58 = vmul.f32 0.5, %v1607_v33  ;;  %4055 = vrsqrt.f32 %v5709_v19  ;;  %429 = vadd.xlane.f32.xlu2 %v232_v50  ;;  %v212_v28 = vmul.f32 %v84_v13, %v84_v13 }
 0x13e   :  { %v1064_v27 = vsel %vm1063_vm0, %v5650_v49, %v1060_v24  ;;  %v5731_v40 = vmax.f32 %v5608_v57, 1e-24  ;;  %v5734_v14 = vmax.f32 %v5620_v34, 1e-24  ;;  %v3512_v63 = vld [vmem:[#allocation2 + $0x20] sm:$0xff]  ;;  %vm1612_vm1 = vweird.f32 %v5676_v26 }
 0x13f   :  { %v5736_v10 = vpop.eup %4051  ;;  %v1993_v6 = vmul.f32 %v4232_v20, %v1064_v27  ;;  %v1609_v47 = vsub.f32 1.5, %v1608_v58  ;;  %427 = vadd.xlane.f32.xlu1 %v231_v42  ;;  %v5740_v4 = vmax.f32 %v5636_v30, 1e-24  ;;  %v119_v49 = vld [vmem:[#allocation3 + $0x2a0] sm:$0xff]  ;;  %vm1611_vm2 = vweird.f32 %v5606_v12  ;;  %2941 = vmatpush.bf16.xpose.msrb.mxu0 %v3512_v63  ;;  %v4235_v20 = vld [vmem:[#allocation3 + $0x358] sm:$0xff] }
 0x140   :  { %v5742_v59 = vpop.eup %4053  ;;  %v4233_v57 = vld [vmem:[#allocation3 + $0x2e0] sm:$0xff]  ;;  %v1216_v34 = vmul.f32 %v5736_v10, %v5686_v43  ;;  %4057 = vrsqrt.f32 %v5731_v40  ;;  %v5748_v29 = vpop.xlane.xlu2 %473  ;;  %vm1221_vm3 = vweird.f32 %v5686_v43  ;;  %vm1613_vm4 = vmor %vm1611_vm2, %vm1612_vm1  ;;  %vm1751_vm5 = vweird.f32 %v5689_v5 }
 0x141   :  { %v2047_v8 = vmul.f32 %v4233_v57, %v1604_v22  ;;  %v3636_v60 = vpack.c.bf16 %v1994_v3, %v1993_v6  ;;  %v1610_v30 = vmul.f32 %v5676_v26, %v1609_v47  ;;  %v1746_v21 = vmul.f32 %v5742_v59, %v5689_v5  ;;  %389 = vadd.xlane.f32.xlu0 %v212_v28  ;;  %v5754_v35 = vpop.xlane.xlu1 %471 }
 0x142   :  { %v1217_v12 = vmul.f32 %v5736_v10, %v1216_v34  ;;  %4059 = vrsqrt.f32 %v5734_v14  ;;  %v247_v45 = vmul.f32 %v119_v49, %v119_v49  ;;  %v5761_v31 = vpop.xlane.xlu0 %337  ;;  %v280_v38 = vmul.f32 %v152_v18, %v152_v18 }
 0x143   :  { %v5763_v53 = vpop.eup %4055  ;;  %3876 = vst [vmem:[#allocation2 + $0x140] sm:$0xff] %v3636_v60   ;;  %v1614_v52 = vsel %vm1613_vm4, %v5676_v26, %v1610_v30  ;;  %v1747_v2 = vmul.f32 %v5742_v59, %v1746_v21  ;;  %4061 = vrsqrt.f32 %v5740_v4  ;;  %vm1222_vm6 = vweird.f32 %v5736_v10 }
 0x144   :  { %v2048_v41 = vmul.f32 %v4234_v11, %v1614_v52  ;;  %v1218_v61 = vmul.f32 0.5, %v1217_v12  ;;  %v1736_v51 = vmul.f32 %v5763_v53, %v5709_v19  ;;  %vm1741_vm7 = vweird.f32 %v5709_v19  ;;  %v3486_v25 = vld [vmem:[#allocation2 + $0x120] sm:$0xff]  ;;  %vm5799_vm11 = vmor %vm1221_vm3, %vm1222_vm6  ;;  %v4237_v19 = vld [vmem:[#allocation3 + $0x350] sm:$0xff] }
 0x145   :  { %v1748_v48 = vmul.f32 0.5, %v1747_v2  ;;  %v279_v37 = vmul.f32 %v151_v1, %v151_v1  ;;  %v5773_v26 = vmax.f32 %v5674_v23, 1e-24  ;;  %v5776_v15 = vmax.f32 %v5691_v32, 1e-24  ;;  %459 = vadd.xlane.f32.xlu2 %v247_v45  ;;  %2901 = vmatpush.bf16.xpose.msra.mxu1 %v3486_v25  ;;  %v133_v52 = vld [vmem:[#allocation3 + $0x310] sm:$0xff] }
 0x146   :  { %v5778_v46 = vpop.eup %4057  ;;  %v3771_v54 = vpack.c.bf16 %v2048_v41, %v2047_v8  ;;  %v1219_v39 = vsub.f32 1.5, %v1218_v61  ;;  %v1737_v56 = vmul.f32 %v5763_v53, %v1736_v51  ;;  %vm1431_vm8 = vweird.f32 %v5731_v40  ;;  %v4236_v8 = vld [vmem:[#allocation3 + $0x1b0] sm:$0xff]  ;;  %v120_v11 = vld [vmem:[#allocation3 + $0x2a8] sm:$0xff] }
 0x147   :  { %v1749_v9 = vsub.f32 1.5, %v1748_v48  ;;  %vm1752_vm9 = vweird.f32 %v5742_v59  ;;  %v1426_v23 = vmul.f32 %v5778_v46, %v5731_v40  ;;  %525 = vadd.xlane.f32.xlu1 %v280_v38  ;;  %4063 = vrsqrt.f32 %v5773_v26  ;;  %v4238_v48 = vld [vmem:[#allocation3 + $0x258] sm:$0xff] }
 0x148   :  { %v5786_v32 = vpop.eup %4059  ;;  %3903 = vst [vmem:[#allocation2 + $0x1d8] sm:$0xff] %v3771_v54   ;;  %v1220_v0 = vmul.f32 %v5736_v10, %v1219_v39  ;;  %v1738_v17 = vmul.f32 0.5, %v1737_v56  ;;  %vm1421_vm10 = vweird.f32 %v5734_v14  ;;  %4065 = vrsqrt.f32 %v5776_v15  ;;  %v5791_v55 = vpop.xlane.xlu2 %499  ;;  %vm5814_vm12 = vmor %vm1751_vm5, %vm1752_vm9 }
 0x149   :  { %v5793_v16 = vpop.eup %4061  ;;  %v1750_v13 = vmul.f32 %v5742_v59, %v1749_v9  ;;  %v1427_v36 = vmul.f32 %v5778_v46, %v1426_v23  ;;  %v1416_v62 = vmul.f32 %v5786_v32, %v5734_v14  ;;  %523 = vadd.xlane.f32.xlu0 %v279_v37  ;;  %v5808_v24 = vmax.f32 %v5701_v44, 1e-24  ;;  %v5830_v58 = vpop.xlane.xlu1 %365 }
 0x14a   :  { %v1739_v50 = vsub.f32 1.5, %v1738_v17  ;;  %vm1742_vm13 = vweird.f32 %v5763_v53  ;;  %vm1432_vm14 = vweird.f32 %v5778_v46  ;;  %v1226_v42 = vmul.f32 %v5793_v16, %v5740_v4  ;;  %v3493_v44 = vld [vmem:[#allocation2 + $0x140] sm:$0xff]  ;;  %v5832_v27 = vpop.xlane.xlu0 %363  ;;  %v4239_v17 = vld [vmem:[#allocation3 + $0x250] sm:$0xff] }
 0x14b   :  { %vm1231_vm15 = vweird.f32 %v5740_v4  ;;  %v1224_v22 = vsel %vm5799_vm11, %v5736_v10, %v1220_v0  ;;  %v1754_v5 = vsel %vm5814_vm12, %v5742_v59, %v1750_v13  ;;  %v1428_v7 = vmul.f32 0.5, %v1427_v36  ;;  %2916 = vmatpush.bf16.xpose.msra.mxu2 %v3493_v44  ;;  %vm1743_vm2 = vmor %vm1741_vm7, %vm1742_vm13  ;;  %v134_v59 = vld [vmem:[#allocation3 + $0x318] sm:$0xff] }
 0x14c   :  { %v1417_v3 = vmul.f32 %v5786_v32, %v1416_v62  ;;  %v1740_v28 = vmul.f32 %v5763_v53, %v1739_v50  ;;  %vm1422_vm0 = vweird.f32 %v5786_v32  ;;  %v1227_v63 = vmul.f32 %v5793_v16, %v1226_v42  ;;  %vm1433_vm4 = vmor %vm1431_vm8, %vm1432_vm14  ;;  %v149_v50 = vld [vmem:[#allocation3 + $0x390] sm:$0xff] }
 0x14d   :  { %vm1232_vm1 = vweird.f32 %v5793_v16  ;;  %v5838_v10 = vpop.eup %4063  ;;  %v2062_v6 = vmul.f32 %v4235_v20, %v1754_v5  ;;  %v1429_v47 = vsub.f32 1.5, %v1428_v7  ;;  %vm901_vm3 = vweird.f32 %v5773_v26  ;;  %vm1423_vm6 = vmor %vm1421_vm10, %vm1422_vm0 }
 0x14e   :  { %v1418_v49 = vmul.f32 0.5, %v1417_v3  ;;  %4067 = vrsqrt.f32 %v5808_v24  ;;  %v5846_v57 = vpop.eup %4065  ;;  %v5848_v34 = vmul.f32 %v4236_v8, %v1224_v22  ;;  %v1744_v18 = vsel %vm1743_vm2, %v5763_v53, %v1740_v28  ;;  %vm1233_vm7 = vmor %vm1231_vm15, %vm1232_vm1 }
 0x14f   :  { %v1228_v60 = vmul.f32 0.5, %v1227_v63  ;;  %v896_v30 = vmul.f32 %v5838_v10, %v5773_v26  ;;  %v2061_v21 = vmul.f32 %v4237_v19, %v1744_v18  ;;  %v1430_v12 = vmul.f32 %v5778_v46, %v1429_v47 }
 0x150   :  { %v1419_v45 = vsub.f32 1.5, %v1418_v49  ;;  %v1906_v1 = vmul.f32 %v5846_v57, %v5776_v15  ;;  %vm1911_vm5 = vweird.f32 %v5776_v15  ;;  %v262_v38 = vmul.f32 %v134_v59, %v134_v59  ;;  %v5870_v56 = vpop.xlane.xlu2 %397  ;;  %v101_v59 = vld [vmem:[#allocation3 + $0x210] sm:$0xff]  ;;  %v118_v15 = vld [vmem:[#allocation3 + $0x298] sm:$0xff] }
 0x151   :  { %v1229_v2 = vsub.f32 1.5, %v1228_v60  ;;  %v897_v53 = vmul.f32 %v5838_v10, %v896_v30  ;;  %v3806_v41 = vpack.c.bf16 %v2062_v6, %v2061_v21  ;;  %v1434_v61 = vsel %vm1433_vm4, %v5778_v46, %v1430_v12  ;;  %v5887_v42 = vpop.xlane.xlu1 %395  ;;  %v4241_v12 = vld [vmem:[#allocation3 + $0xb0] sm:$0xff] }
 0x152   :  { %v1420_v51 = vmul.f32 %v5786_v32, %v1419_v45  ;;  %v1907_v25 = vmul.f32 %v5846_v57, %v1906_v1  ;;  %v2030_v37 = vmul.f32 %v4238_v48, %v1434_v61  ;;  %489 = vadd.xlane.f32.xlu2 %v262_v38  ;;  %v261_v39 = vmul.f32 %v133_v52, %v133_v52  ;;  %v5889_v44 = vpop.xlane.xlu0 %501  ;;  %v4243_v38 = vld [vmem:[#allocation3 + $0x3d0] sm:$0xff] }
 0x153   :  { %v1230_v40 = vmul.f32 %v5793_v16, %v1229_v2  ;;  %v898_v54 = vmul.f32 0.5, %v897_v53  ;;  %3910 = vst [vmem:[#allocation2 + $0x178] sm:$0xff] %v3806_v41   ;;  %v248_v14 = vmul.f32 %v120_v11, %v120_v11  ;;  %v5880_v0 = vmax.f32 %v5748_v29, 1e-24  ;;  %v102_v29 = vld [vmem:[#allocation3 + $0x218] sm:$0xff] }
 0x154   :  { %v5872_v9 = vpop.eup %4067  ;;  %v1424_v46 = vsel %vm1423_vm6, %v5786_v32, %v1420_v51  ;;  %v1908_v23 = vmul.f32 0.5, %v1907_v25  ;;  %487 = vadd.xlane.f32.xlu1 %v261_v39  ;;  %v4240_v32 = vld [vmem:[#allocation3 + $0x1b8] sm:$0xff]  ;;  %vm902_vm8 = vweird.f32 %v5838_v10  ;;  %vm1912_vm9 = vweird.f32 %v5846_v57 }
 0x155   :  { %v2029_v33 = vmul.f32 %v4239_v17, %v1424_v46  ;;  %v1234_v13 = vsel %vm1233_vm7, %v5793_v16, %v1230_v40  ;;  %v899_v36 = vsub.f32 1.5, %v898_v54  ;;  %v1896_v62 = vmul.f32 %v5872_v9, %v5808_v24  ;;  %461 = vadd.xlane.f32.xlu0 %v248_v14  ;;  %vm5906_vm10 = vmor %vm901_vm3, %vm902_vm8  ;;  %v150_v2 = vld [vmem:[#allocation3 + $0x398] sm:$0xff] }
 0x156   :  { %v2010_v43 = vmul.f32 %v4240_v32, %v1234_v13  ;;  %v1909_v4 = vsub.f32 1.5, %v1908_v23  ;;  %4069 = vrsqrt.f32 %v5880_v0  ;;  %v5897_v28 = vmax.f32 %v5754_v35, 1e-24  ;;  %vm5912_vm11 = vmor %vm1911_vm5, %vm1912_vm9 }
 0x157   :  { %v3726_v16 = vpack.c.bf16 %v2030_v37, %v2029_v33  ;;  %v900_v22 = vmul.f32 %v5838_v10, %v899_v36  ;;  %v1897_v5 = vmul.f32 %v5872_v9, %v1896_v62  ;;  %v5900_v63 = vmax.f32 %v5761_v31, 1e-24  ;;  %v2339_v33 = vld [vmem:[%s7379_s0] sm:$0xff] }
 0x158   :  { %v3676_v7 = vpack.c.bf16 %v2010_v43, %v5848_v34  ;;  %v1910_v3 = vmul.f32 %v5846_v57, %v1909_v4  ;;  %v277_v47 = vmul.f32 %v149_v50, %v149_v50  ;;  %v230_v49 = vmul.f32 %v102_v29, %v102_v29 }
 0x159   :  { %3894 = vst [vmem:[#allocation2 + $0x1f8] sm:$0xff] %v3726_v16   ;;  %v1898_v6 = vmul.f32 0.5, %v1897_v5  ;;  %vm1902_vm12 = vweird.f32 %v5872_v9  ;;  %4071 = vrsqrt.f32 %v5897_v28  ;;  %v904_v31 = vsel %vm5906_vm10, %v5838_v10, %v900_v22 }
 0x15a   :  { %3884 = vst [vmem:[#allocation2 + $0x30] sm:$0xff] %v3676_v7   ;;  %v1914_v26 = vsel %vm5912_vm11, %v5846_v57, %v1910_v3  ;;  %4073 = vrsqrt.f32 %v5900_v63  ;;  %519 = vadd.xlane.f32.xlu2 %v277_v47  ;;  %v229_v18 = vmul.f32 %v101_v59, %v101_v59  ;;  %v5928_v60 = vmax.f32 %v5791_v55, 1e-24  ;;  %v4242_v55 = vld [vmem:[#allocation3 + $0x3d8] sm:$0xff] }
 0x15b   :  { %v1899_v8 = vsub.f32 1.5, %v1898_v6  ;;  %v5931_v30 = vmax.f32 %v5830_v58, 1e-24  ;;  %v5934_v10 = vmax.f32 %v5832_v27, 1e-24  ;;  %vm1901_vm13 = vweird.f32 %v5808_v24  ;;  %v117_v24 = vld [vmem:[#allocation3 + $0x290] sm:$0xff] }
 0x15c   :  { %v5925_v34 = vpop.eup %4069  ;;  %425 = vadd.xlane.f32.xlu1 %v230_v49  ;;  %v5940_v21 = vpop.xlane.xlu2 %531  ;;  %v5942_v45 = vmul.f32 %v4241_v12, %v904_v31  ;;  %v2078_v1 = vmul.f32 %v4242_v55, %v1914_v26  ;;  %vm1903_vm14 = vmor %vm1901_vm13, %vm1902_vm12  ;;  %vm1591_vm15 = vweird.f32 %v5880_v0  ;;  %4075 = vrsqrt.f32 %v5928_v60  ;;  %v4244_v26 = vld [vmem:[#allocation3 + $0x2d8] sm:$0xff] }
 0x15d   :  { %v1900_v19 = vmul.f32 %v5872_v9, %v1899_v8  ;;  %v1586_v57 = vmul.f32 %v5925_v34, %v5880_v0  ;;  %423 = vadd.xlane.f32.xlu0 %v229_v18  ;;  %4077 = vrsqrt.f32 %v5931_v30  ;;  %v246_v52 = vmul.f32 %v118_v15, %v118_v15 }
 0x15e   :  { %vm1581_vm0 = vweird.f32 %v5897_v28  ;;  %4079 = vrsqrt.f32 %v5934_v10  ;;  %v5956_v41 = vmax.f32 %v5870_v56, 1e-24  ;;  %v245_v54 = vmul.f32 %v117_v24, %v117_v24 }
 0x15f   :  { %v1904_v58 = vsel %vm1903_vm14, %v5872_v9, %v1900_v19  ;;  %v1587_v27 = vmul.f32 %v5925_v34, %v1586_v57  ;;  %v5951_v53 = vpop.eup %4071  ;;  %v5958_v51 = vpop.xlane.xlu1 %437  ;;  %v5967_v39 = vmax.f32 %v5887_v42, 1e-24  ;;  %vm911_vm1 = vweird.f32 %v5900_v63 }
 0x160   :  { %v2077_v11 = vmul.f32 %v4243_v38, %v1904_v58  ;;  %v3511_v61 = vld [vmem:[#allocation2 + $0x1f8] sm:$0xff]  ;;  %v5960_v25 = vpop.xlane.xlu0 %435  ;;  %v5962_v48 = vpop.eup %4073  ;;  %v1576_v40 = vmul.f32 %v5951_v53, %v5897_v28  ;;  %v278_v23 = vmul.f32 %v150_v2, %v150_v2  ;;  %4081 = vrsqrt.f32 %v5956_v41 }
 0x161   :  { %v1588_v37 = vmul.f32 0.5, %v1587_v27  ;;  %v3501_v9 = vld [vmem:[#allocation2 + $0x30] sm:$0xff]  ;;  %v906_v56 = vmul.f32 %v5962_v48, %v5900_v63  ;;  %2942 = vmatpush.bf16.xpose.msrb.mxu0 %v3511_v61  ;;  %vm1592_vm2 = vweird.f32 %v5925_v34  ;;  %4083 = vrsqrt.f32 %v5967_v39 }
 0x162   :  { %v3846_v46 = vpack.c.bf16 %v2078_v1, %v2077_v11  ;;  %v1577_v17 = vmul.f32 %v5951_v53, %v1576_v40  ;;  %457 = vadd.xlane.f32.xlu2 %v246_v52  ;;  %2930 = vmatpush.bf16.xpose.msra.mxu3 %v3501_v9  ;;  %v5979_v13 = vpop.eup %4075  ;;  %vm1582_vm3 = vweird.f32 %v5951_v53  ;;  %vm1051_vm4 = vweird.f32 %v5931_v30  ;;  %vm6001_vm6 = vmor %vm1591_vm15, %vm1592_vm2  ;;  %v4245_v27 = vld [vmem:[#allocation3 + $0x2d0] sm:$0xff]  ;;  %v4246_v11 = vld [vmem:[#allocation3 + $0xb8] sm:$0xff] }
 0x163   :  { %v1589_v14 = vsub.f32 1.5, %v1588_v37  ;;  %v907_v36 = vmul.f32 %v5962_v48, %v906_v56  ;;  %v5985_v62 = vmax.f32 %v5889_v44, 1e-24  ;;  %v5987_v32 = vpop.eup %4077  ;;  %vm912_vm5 = vweird.f32 %v5962_v48  ;;  %vm1583_vm10 = vmor %vm1581_vm0, %vm1582_vm3 }
 0x164   :  { %3918 = vst [vmem:[#allocation2 + $0x10] sm:$0xff] %v3846_v46   ;;  %v1578_v4 = vmul.f32 0.5, %v1577_v17  ;;  %v1716_v50 = vmul.f32 %v5979_v13, %v5928_v60  ;;  %455 = vadd.xlane.f32.xlu1 %v245_v54  ;;  %v5993_v29 = vpop.xlane.xlu2 %333  ;;  %v5995_v42 = vpop.eup %4079  ;;  %v1046_v22 = vmul.f32 %v5987_v32, %v5931_v30  ;;  %v2341_v5 = vmul.f32 %v2339_v33, %v2339_v33  ;;  %vm913_vm11 = vmor %vm911_vm1, %vm912_vm5 }
 0x165   :  { %v1590_v43 = vmul.f32 %v5925_v34, %v1589_v14  ;;  %v908_v16 = vmul.f32 0.5, %v907_v36  ;;  %521 = vadd.xlane.f32.xlu0 %v278_v23  ;;  %4085 = vrsqrt.f32 %v5985_v62  ;;  %v1036_v0 = vmul.f32 %v5995_v42, %v5934_v10  ;;  %v132_v36 = vld [vmem:[#allocation3 + $0x308] sm:$0xff] }
 0x166   :  { %v1579_v3 = vsub.f32 1.5, %v1578_v4  ;;  %v1717_v20 = vmul.f32 %v5979_v13, %v1716_v50  ;;  %vm1041_vm7 = vweird.f32 %v5934_v10  ;;  %v6015_v6 = vpop.eup %4081  ;;  %v1047_v49 = vmul.f32 %v5987_v32, %v1046_v22  ;;  %v4247_v50 = vld [vmem:[#allocation3 + $0x128] sm:$0xff]  ;;  %v4248_v22 = vld [vmem:[#allocation3 + $0x120] sm:$0xff] }
 0x167   :  { %v1594_v7 = vsel %vm6001_vm6, %v5925_v34, %v1590_v43  ;;  %v909_v47 = vsub.f32 1.5, %v908_v16  ;;  %vm1211_vm8 = vweird.f32 %v5956_v41  ;;  %vm1201_vm9 = vweird.f32 %v5967_v39  ;;  %v6020_v59 = vpop.xlane.xlu1 %331  ;;  %v6024_v31 = vpop.eup %4083  ;;  %v131_v43 = vld [vmem:[#allocation3 + $0x300] sm:$0xff] }
 0x168   :  { %v6022_v35 = vpop.xlane.xlu0 %533  ;;  %v2046_v8 = vmul.f32 %v4244_v26, %v1594_v7  ;;  %v1580_v15 = vmul.f32 %v5951_v53, %v1579_v3  ;;  %v1037_v34 = vmul.f32 %v5995_v42, %v1036_v0  ;;  %v1206_v18 = vmul.f32 %v6015_v6, %v5956_v41  ;;  %v100_v41 = vld [vmem:[#allocation3 + $0x208] sm:$0xff] }
 0x169   :  { %v910_v19 = vmul.f32 %v5962_v48, %v909_v47  ;;  %v1718_v57 = vmul.f32 0.5, %v1717_v20  ;;  %v1048_v12 = vmul.f32 0.5, %v1047_v49  ;;  %v1196_v55 = vmul.f32 %v6024_v31, %v5967_v39 }
 0x16a   :  { %v1584_v1 = vsel %vm1583_vm10, %v5951_v53, %v1580_v15  ;;  %vm1721_vm12 = vweird.f32 %v5928_v60  ;;  %vm1052_vm13 = vweird.f32 %v5987_v32  ;;  %v1038_v28 = vmul.f32 0.5, %v1037_v34  ;;  %2343 = vadd.xlane.f32.xlu2 %v2341_v5 }
 0x16b   :  { %v1207_v24 = vmul.f32 %v6015_v6, %v1206_v18  ;;  %v6045_v58 = vpop.eup %4085  ;;  %v2045_v52 = vmul.f32 %v4245_v27, %v1584_v1  ;;  %v914_v2 = vsel %vm913_vm11, %v5962_v48, %v910_v19  ;;  %v1049_v53 = vsub.f32 1.5, %v1048_v12  ;;  %vm6056_vm15 = vmor %vm1051_vm4, %vm1052_vm13  ;;  %v4250_v19 = vld [vmem:[#allocation3 + $0x1a0] sm:$0xff] }
 0x16c   :  { %v1197_v38 = vmul.f32 %v6024_v31, %v1196_v55  ;;  %v1978_v63 = vmul.f32 %v4246_v11, %v914_v2  ;;  %v1039_v61 = vsub.f32 1.5, %v1038_v28  ;;  %vm1042_vm14 = vweird.f32 %v5995_v42  ;;  %v99_v55 = vld [vmem:[#allocation3 + $0x200] sm:$0xff] }
 0x16d   :  { %v1208_v37 = vmul.f32 0.5, %v1207_v24  ;;  %v3766_v40 = vpack.c.bf16 %v2046_v8, %v2045_v52  ;;  %v1719_v54 = vsub.f32 1.5, %v1718_v57  ;;  %v1050_v9 = vmul.f32 %v5987_v32, %v1049_v53  ;;  %v6062_v17 = vpop.xlane.xlu2 %359  ;;  %vm1043_vm1 = vmor %vm1041_vm7, %vm1042_vm14  ;;  %v4249_v8 = vld [vmem:[#allocation3 + $0x1a8] sm:$0xff]  ;;  %v115_v53 = vld [vmem:[#allocation3 + $0x280] sm:$0xff] }
 0x16e   :  { %v1198_v46 = vmul.f32 0.5, %v1197_v38  ;;  %v3596_v56 = vpack.c.bf16 %v1978_v63, %v5942_v45  ;;  %v1040_v23 = vmul.f32 %v5995_v42, %v1039_v61  ;;  %vm1212_vm0 = vweird.f32 %v6015_v6  ;;  %v148_v63 = vld [vmem:[#allocation3 + $0x388] sm:$0xff] }
 0x16f   :  { %v1209_v14 = vsub.f32 1.5, %v1208_v37  ;;  %3902 = vst [vmem:[#allocation2 + $0x90] sm:$0xff] %v3766_v40   ;;  %v1054_v45 = vsel %vm6056_vm15, %v5987_v32, %v1050_v9  ;;  %vm1202_vm2 = vweird.f32 %v6024_v31  ;;  %v1726_v33 = vmul.f32 %v6045_v58, %v5985_v62  ;;  %v6072_v4 = vpop.xlane.xlu1 %469  ;;  %vm1213_vm4 = vmor %vm1211_vm8, %vm1212_vm0  ;;  %v4252_v40 = vld [vmem:[#allocation3 + $0x348] sm:$0xff] }
 0x170   :  { %v1199_v30 = vsub.f32 1.5, %v1198_v46  ;;  %3868 = vst [vmem:[#allocation2 + $0x98] sm:$0xff] %v3596_v56   ;;  %vm1722_vm3 = vweird.f32 %v5979_v13  ;;  %v1992_v44 = vmul.f32 %v4247_v50, %v1054_v45  ;;  %v1044_v32 = vsel %vm1043_vm1, %v5995_v42, %v1040_v23  ;;  %v6084_v20 = vpop.xlane.xlu0 %467  ;;  %vm1203_vm5 = vmor %vm1201_vm9, %vm1202_vm2  ;;  %v147_v46 = vld [vmem:[#allocation3 + $0x380] sm:$0xff]  ;;  %v116_v50 = vld [vmem:[#allocation3 + $0x288] sm:$0xff] }
 0x171   :  { %v1210_v10 = vmul.f32 %v6015_v6, %v1209_v14  ;;  %v1720_v16 = vmul.f32 %v5979_v13, %v1719_v54  ;;  %v1991_v5 = vmul.f32 %v4248_v22, %v1044_v32  ;;  %v1727_v3 = vmul.f32 %v6045_v58, %v1726_v33  ;;  %vm6103_vm6 = vmor %vm1721_vm12, %vm1722_vm3 }
 0x172   :  { %v1200_v7 = vmul.f32 %v6024_v31, %v1199_v30  ;;  %v260_v42 = vmul.f32 %v132_v36, %v132_v36  ;;  %v259_v47 = vmul.f32 %v131_v43, %v131_v43  ;;  %v6092_v49 = vmax.f32 %v5940_v21, 1e-24 }
 0x173   :  { %v1214_v0 = vsel %vm1213_vm4, %v6015_v6, %v1210_v10  ;;  %v3631_v26 = vpack.c.bf16 %v1992_v44, %v1991_v5  ;;  %v1728_v18 = vmul.f32 0.5, %v1727_v3  ;;  %v6097_v39 = vmax.f32 %v5958_v51, 1e-24  ;;  %v2340_v51 = vld [vmem:[%s7379_s0 + $0x8] sm:$0xff] }
 0x174   :  { %v2008_v15 = vmul.f32 %v4249_v8, %v1214_v0  ;;  %v1204_v34 = vsel %vm1203_vm5, %v6024_v31, %v1200_v7  ;;  %485 = vadd.xlane.f32.xlu1 %v260_v42  ;;  %483 = vadd.xlane.f32.xlu0 %v259_v47  ;;  %4087 = vrsqrt.f32 %v6092_v49  ;;  %vm1732_vm7 = vweird.f32 %v6045_v58 }
 0x175   :  { %v2007_v57 = vmul.f32 %v4250_v19, %v1204_v34  ;;  %3875 = vst [vmem:[#allocation2 + $0x138] sm:$0xff] %v3631_v26   ;;  %v1729_v6 = vsub.f32 1.5, %v1728_v18  ;;  %v6109_v31 = vmax.f32 %v5960_v25, 1e-24  ;;  %v228_v12 = vmul.f32 %v100_v41, %v100_v41 }
 0x176   :  { %v1724_v60 = vsel %vm6103_vm6, %v5979_v13, %v1720_v16  ;;  %4089 = vrsqrt.f32 %v6097_v39  ;;  %vm1731_vm8 = vweird.f32 %v5985_v62  ;;  %v6122_v25 = vmax.f32 %v5993_v29, 1e-24 }
 0x177   :  { %v3671_v1 = vpack.c.bf16 %v2008_v15, %v2007_v57  ;;  %v1730_v28 = vmul.f32 %v6045_v58, %v1729_v6  ;;  %4091 = vrsqrt.f32 %v6109_v31  ;;  %421 = vadd.xlane.f32.xlu2 %v228_v12  ;;  %v3485_v24 = vld [vmem:[#allocation2 + $0x98] sm:$0xff]  ;;  %vm6126_vm9 = vmor %vm1731_vm8, %vm1732_vm7  ;;  %v227_v13 = vmul.f32 %v99_v55, %v99_v55 }
 0x178   :  { %v2342_v52 = vmul.f32 %v2340_v51, %v2340_v51  ;;  %v6131_v2 = vmax.f32 %v6020_v59, 1e-24  ;;  %v6134_v62 = vmax.f32 %v6022_v35, 1e-24  ;;  %v6136_v38 = vpop.xlane.xlu2 %497  ;;  %v6138_v29 = vpop.xlane.xlu1 %495  ;;  %4093 = vrsqrt.f32 %v6122_v25  ;;  %2902 = vmatpush.bf16.xpose.msra.mxu1 %v3485_v24  ;;  %v4251_v59 = vld [vmem:[#allocation3 + $0x340] sm:$0xff] }
 0x179   :  { %3883 = vst [vmem:[#allocation2 + $0x160] sm:$0xff] %v3671_v1   ;;  %v1734_v11 = vsel %vm6126_vm9, %v6045_v58, %v1730_v28  ;;  %v2059_v37 = vmul.f32 %v4251_v59, %v1724_v60  ;;  %v243_v9 = vmul.f32 %v115_v53, %v115_v53  ;;  %v6151_v58 = vmax.f32 %v6062_v17, 1e-24 }
 0x17a   :  { %v6144_v61 = vpop.eup %4087  ;;  %v2060_v35 = vmul.f32 %v4252_v40, %v1734_v11  ;;  %4095 = vrsqrt.f32 %v6131_v2  ;;  %vm1411_vm10 = vweird.f32 %v6097_v39  ;;  %v276_v14 = vmul.f32 %v148_v63, %v148_v63 }
 0x17b   :  { %v1876_v54 = vmul.f32 %v6144_v61, %v6092_v49  ;;  %4097 = vrsqrt.f32 %v6134_v62  ;;  %v6153_v56 = vpop.xlane.xlu0 %361  ;;  %v6159_v45 = vmax.f32 %v6072_v4, 1e-24  ;;  %vm1881_vm11 = vweird.f32 %v6092_v49 }
 0x17c   :  { %v6155_v48 = vpop.eup %4089  ;;  %v3801_v23 = vpack.c.bf16 %v2060_v35, %v2059_v37  ;;  %419 = vadd.xlane.f32.xlu1 %v227_v13  ;;  %2345 = vadd.xlane.f32.xlu0 %v2342_v52  ;;  %v3492_v30 = vld [vmem:[#allocation2 + $0x138] sm:$0xff]  ;;  %4099 = vrsqrt.f32 %v6151_v58  ;;  %v6169_v43 = vmax.f32 %v6084_v20, 1e-24  ;;  %vm1401_vm12 = vweird.f32 %v6109_v31  ;;  %v4253_v35 = vld [vmem:[#allocation3 + $0x248] sm:$0xff] }
 0x17d   :  { %v6161_v33 = vpop.eup %4091  ;;  %v1877_v36 = vmul.f32 %v6144_v61, %v1876_v54  ;;  %v1406_v17 = vmul.f32 %v6155_v48, %v6097_v39  ;;  %vm891_vm13 = vweird.f32 %v6122_v25  ;;  %v275_v44 = vmul.f32 %v147_v46, %v147_v46  ;;  %2917 = vmatpush.bf16.xpose.msra.mxu2 %v3492_v30 }
 0x17e   :  { %3909 = vst [vmem:[#allocation2 + $0x170] sm:$0xff] %v3801_v23   ;;  %v1396_v4 = vmul.f32 %v6161_v33, %v6109_v31  ;;  %4101 = vrsqrt.f32 %v6159_v45  ;;  %v6176_v32 = vpop.eup %4093  ;;  %vm1882_vm14 = vweird.f32 %v6144_v61  ;;  %vm881_vm15 = vweird.f32 %v6131_v2 }
 0x17f   :  { %v1878_v10 = vmul.f32 0.5, %v1877_v36  ;;  %v1407_v16 = vmul.f32 %v6155_v48, %v1406_v17  ;;  %451 = vadd.xlane.f32.xlu2 %v243_v9  ;;  %vm1412_vm0 = vweird.f32 %v6155_v48  ;;  %v886_v3 = vmul.f32 %v6176_v32, %v6122_v25 }
 0x180   :  { %v3500_v22 = vld [vmem:[#allocation2 + $0x160] sm:$0xff]  ;;  %v6181_v5 = vpop.eup %4095  ;;  %v1397_v7 = vmul.f32 %v6161_v33, %v1396_v4  ;;  %v6187_v20 = vmul.f32 %v116_v50, %v116_v50  ;;  %v6189_v0 = vpop.xlane.xlu2 %431  ;;  %4103 = vrsqrt.f32 %v6169_v43  ;;  %vm1402_vm1 = vweird.f32 %v6161_v33  ;;  %vm1413_vm6 = vmor %vm1411_vm10, %vm1412_vm0 }
 0x181   :  { %v6191_v42 = vpop.eup %4097  ;;  %v1879_v47 = vsub.f32 1.5, %v1878_v10  ;;  %v1408_v41 = vmul.f32 0.5, %v1407_v16  ;;  %v876_v26 = vmul.f32 %v6181_v5, %v6131_v2  ;;  %2931 = vmatpush.bf16.xpose.msra.mxu3 %v3500_v22  ;;  %v887_v15 = vmul.f32 %v6176_v32, %v886_v3  ;;  %v6201_v18 = vpop.xlane.xlu1 %393  ;;  %vm1403_vm8 = vmor %vm1401_vm12, %vm1402_vm1 }
 0x182   :  { %v1398_v8 = vmul.f32 0.5, %v1397_v7  ;;  %v1886_v34 = vmul.f32 %v6191_v42, %v6134_v62  ;;  %vm1891_vm2 = vweird.f32 %v6134_v62  ;;  %v6203_v19 = vpop.eup %4099  ;;  %vm892_vm3 = vweird.f32 %v6176_v32  ;;  %vm6242_vm10 = vmor %vm1881_vm11, %vm1882_vm14 }
 0x183   :  { %v1409_v57 = vsub.f32 1.5, %v1408_v41  ;;  %v877_v21 = vmul.f32 %v6181_v5, %v876_v26  ;;  %vm882_vm4 = vweird.f32 %v6181_v5  ;;  %v888_v55 = vmul.f32 0.5, %v887_v15  ;;  %v6213_v1 = vpop.xlane.xlu0 %391  ;;  %vm893_vm12 = vmor %vm891_vm13, %vm892_vm3  ;;  %v4257_v41 = vld [vmem:[#allocation3 + $0x3c0] sm:$0xff] }
 0x184   :  { %v6208_v6 = vpop.eup %4101  ;;  %v1399_v12 = vsub.f32 1.5, %v1398_v8  ;;  %v1887_v51 = vmul.f32 %v6191_v42, %v1886_v34  ;;  %517 = vadd.xlane.f32.xlu1 %v276_v14  ;;  %515 = vadd.xlane.f32.xlu0 %v275_v44  ;;  %v1016_v60 = vmul.f32 %v6203_v19, %v6151_v58  ;;  %v1880_v28 = vmul.f32 %v6144_v61, %v1879_v47  ;;  %vm883_vm11 = vmor %vm881_vm15, %vm882_vm4  ;;  %v4255_v44 = vld [vmem:[#allocation3 + $0xa8] sm:$0xff] }
 0x185   :  { %v1410_v24 = vmul.f32 %v6155_v48, %v1409_v57  ;;  %v878_v27 = vmul.f32 0.5, %v877_v21  ;;  %vm1892_vm5 = vweird.f32 %v6191_v42  ;;  %v889_v52 = vsub.f32 1.5, %v888_v55 }
 0x186   :  { %v1400_v13 = vmul.f32 %v6161_v33, %v1399_v12  ;;  %v1888_v53 = vmul.f32 0.5, %v1887_v51  ;;  %vm1571_vm7 = vweird.f32 %v6159_v45  ;;  %v6225_v11 = vmax.f32 %v6136_v38, 1e-24  ;;  %v6227_v63 = vpop.eup %4103  ;;  %vm1893_vm13 = vmor %vm1891_vm2, %vm1892_vm5 }
 0x187   :  { %v1414_v59 = vsel %vm1413_vm6, %v6155_v48, %v1410_v24  ;;  %v879_v39 = vsub.f32 1.5, %v878_v27  ;;  %v1017_v37 = vmul.f32 %v6203_v19, %v1016_v60  ;;  %vm1021_vm9 = vweird.f32 %v6151_v58  ;;  %v4254_v48 = vld [vmem:[#allocation3 + $0x240] sm:$0xff] }
 0x188   :  { %v1566_v40 = vmul.f32 %v6208_v6, %v6159_v45  ;;  %v2028_v54 = vmul.f32 %v4253_v35, %v1414_v59  ;;  %v1404_v31 = vsel %vm1403_vm8, %v6161_v33, %v1400_v13  ;;  %v890_v9 = vmul.f32 %v6176_v32, %v889_v52  ;;  %v530_v50 = vpop.xlane.xlu2 %529 }
 0x189   :  { %v1889_v46 = vsub.f32 1.5, %v1888_v53  ;;  %v2027_v23 = vmul.f32 %v4254_v48, %v1404_v31  ;;  %v880_v49 = vmul.f32 %v6181_v5, %v879_v39  ;;  %v1018_v14 = vmul.f32 0.5, %v1017_v37  ;;  %v528_v47 = vpop.xlane.xlu1 %527  ;;  %v4260_v53 = vld [vmem:[#allocation3 + $0x2c0] sm:$0xff] }
 0x18a   :  { %v1567_v30 = vmul.f32 %v6208_v6, %v1566_v40  ;;  %v1884_v36 = vsel %vm6242_vm10, %v6144_v61, %v1880_v28  ;;  %v894_v33 = vsel %vm893_vm12, %v6176_v32, %v890_v9  ;;  %v1556_v25 = vmul.f32 %v6227_v63, %v6169_v43  ;;  %v4256_v32 = vld [vmem:[#allocation3 + $0xa0] sm:$0xff]  ;;  %v4261_v40 = vld [vmem:[#allocation3 + $0x110] sm:$0xff] }
 0x18b   :  { %v1890_v17 = vmul.f32 %v6191_v42, %v1889_v46  ;;  %v3721_v4 = vpack.c.bf16 %v2028_v54, %v2027_v23  ;;  %v1976_v10 = vmul.f32 %v4255_v44, %v894_v33  ;;  %v884_v16 = vsel %vm883_vm11, %v6181_v5, %v880_v49  ;;  %v4258_v5 = vld [vmem:[#allocation3 + $0x3c8] sm:$0xff] }
 0x18c   :  { %v1019_v61 = vsub.f32 1.5, %v1018_v14  ;;  %v1975_v2 = vmul.f32 %v4256_v32, %v884_v16  ;;  %v1568_v7 = vmul.f32 0.5, %v1567_v30  ;;  %v1557_v3 = vmul.f32 %v6227_v63, %v1556_v25  ;;  %453 = vadd.xlane.f32.xlu0 %v6187_v20 }
 0x18d   :  { %v1894_v22 = vsel %vm1893_vm13, %v6191_v42, %v1890_v17  ;;  %v2075_v26 = vmul.f32 %v4257_v41, %v1884_v36  ;;  %3893 = vst [vmem:[#allocation2 + $0x40] sm:$0xff] %v3721_v4   ;;  %vm1022_vm14 = vweird.f32 %v6203_v19  ;;  %4105 = vrsqrt.f32 %v6225_v11  ;;  %v434_v34 = vpop.xlane.xlu0 %433 }
 0x18e   :  { %v2076_v8 = vmul.f32 %v4258_v5, %v1894_v22  ;;  %v3591_v62 = vpack.c.bf16 %v1976_v10, %v1975_v2  ;;  %v1569_v15 = vsub.f32 1.5, %v1568_v7  ;;  %vm1572_vm15 = vweird.f32 %v6208_v6  ;;  %vm6298_vm2 = vmor %vm1021_vm9, %vm1022_vm14 }
 0x18f   :  { %v1558_v42 = vmul.f32 0.5, %v1557_v3  ;;  %v1020_v21 = vmul.f32 %v6203_v19, %v1019_v61  ;;  %v6278_v20 = vmax.f32 %v6138_v29, 1e-24  ;;  %v6281_v12 = vmax.f32 %v6153_v56, 1e-24  ;;  %vm1573_vm1 = vmor %vm1571_vm7, %vm1572_vm15 }
 0x190   :  { %v3841_v57 = vpack.c.bf16 %v2076_v8, %v2075_v26  ;;  %3867 = vst [vmem:[#allocation2 + $0x118] sm:$0xff] %v3591_v62   ;;  %v1570_v55 = vmul.f32 %v6208_v6, %v1569_v15  ;;  %vm1562_vm0 = vweird.f32 %v6227_v63  ;;  %v6286_v60 = vmax.f32 %v6189_v0, 1e-24 }
 0x191   :  { %v1559_v51 = vsub.f32 1.5, %v1558_v42  ;;  %4107 = vrsqrt.f32 %v6278_v20  ;;  %v6292_v29 = vmax.f32 %v6201_v18, 1e-24  ;;  %vm1561_vm3 = vweird.f32 %v6169_v43  ;;  %v4259_v18 = vld [vmem:[#allocation3 + $0x2c8] sm:$0xff]  ;;  %v4262_v42 = vld [vmem:[#allocation3 + $0x338] sm:$0xff] }
 0x192   :  { %3917 = vst [vmem:[#allocation2 + $0x158] sm:$0xff] %v3841_v57   ;;  %v1574_v0 = vsel %vm1573_vm1, %v6208_v6, %v1570_v55  ;;  %4109 = vrsqrt.f32 %v6281_v12  ;;  %vm1563_vm4 = vmor %vm1561_vm3, %vm1562_vm0  ;;  %v6310_v58 = vmax.f32 %v6213_v1, 1e-24  ;;  %v1024_v6 = vsel %vm6298_vm2, %v6203_v19, %v1020_v21 }
 0x193   :  { %v1560_v28 = vmul.f32 %v6227_v63, %v1559_v51  ;;  %v6306_v45 = vpop.eup %4105  ;;  %v2044_v24 = vmul.f32 %v4259_v18, %v1574_v0  ;;  %4111 = vrsqrt.f32 %v6286_v60  ;;  %v6320_v39 = vmax.f32 %v530_v50, 1e-24 }
 0x194   :  { %v1706_v43 = vmul.f32 %v6306_v45, %v6225_v11  ;;  %4113 = vrsqrt.f32 %v6292_v29  ;;  %v3510_v13 = vld [vmem:[#allocation2 + $0x40] sm:$0xff]  ;;  %v464_v52 = vpop.xlane.xlu2 %463  ;;  %v6323_v37 = vmax.f32 %v528_v47, 1e-24  ;;  %v6325_v19 = vpop.xlane.xlu1 %329  ;;  %v6329_v38 = vmul.f32 %v4261_v40, %v1024_v6 }
 0x195   :  { %v1564_v27 = vsel %vm1563_vm4, %v6227_v63, %v1560_v28  ;;  %4115 = vrsqrt.f32 %v6310_v58  ;;  %2943 = vmatpush.bf16.xpose.msrb.mxu0 %v3510_v13  ;;  %vm1711_vm5 = vweird.f32 %v6225_v11  ;;  %vm1701_vm6 = vweird.f32 %v6278_v20  ;;  %v6339_v48 = vpop.xlane.xlu0 %327 }
 0x196   :  { %v2043_v59 = vmul.f32 %v4260_v53, %v1564_v27  ;;  %v1707_v1 = vmul.f32 %v6306_v45, %v1706_v43  ;;  %4117 = vrsqrt.f32 %v6320_v39  ;;  %vm1031_vm7 = vweird.f32 %v6281_v12  ;;  %v4263_v43 = vld [vmem:[#allocation3 + $0x330] sm:$0xff] }
 0x197   :  { %v6327_v63 = vpop.eup %4107  ;;  %v3484_v54 = vld [vmem:[#allocation2 + $0x118] sm:$0xff]  ;;  %4119 = vrsqrt.f32 %v6323_v37  ;;  %vm1191_vm8 = vweird.f32 %v6292_v29  ;;  %v6347_v14 = vmax.f32 %v434_v34, 1e-24  ;;  %vm1712_vm9 = vweird.f32 %v6306_v45 }
 0x198   :  { %v3761_v35 = vpack.c.bf16 %v2044_v24, %v2043_v59  ;;  %v6333_v31 = vpop.eup %4109  ;;  %v1708_v9 = vmul.f32 0.5, %v1707_v1  ;;  %v1696_v46 = vmul.f32 %v6327_v63, %v6278_v20  ;;  %2903 = vmatpush.bf16.xpose.msra.mxu1 %v3484_v54  ;;  %vm1702_vm10 = vweird.f32 %v6327_v63  ;;  %vm6372_vm11 = vmor %vm1711_vm5, %vm1712_vm9 }
 0x199   :  { %v6341_v23 = vpop.eup %4111  ;;  %v1026_v49 = vmul.f32 %v6333_v31, %v6281_v12  ;;  %v6361_v44 = vmax.f32 %v464_v52, 1e-24  ;;  %vm1181_vm12 = vweird.f32 %v6310_v58  ;;  %vm1032_vm13 = vweird.f32 %v6333_v31  ;;  %vm1703_vm0 = vmor %vm1701_vm6, %vm1702_vm10  ;;  %v4264_v12 = vld [vmem:[#allocation3 + $0x118] sm:$0xff] }
 0x19a   :  { %3901 = vst [vmem:[#allocation2 + $0x70] sm:$0xff] %v3761_v35   ;;  %v6349_v30 = vpop.eup %4113  ;;  %v1709_v36 = vsub.f32 1.5, %v1708_v9  ;;  %v1697_v33 = vmul.f32 %v6327_v63, %v1696_v46  ;;  %v1376_v17 = vmul.f32 %v6341_v23, %v6286_v60  ;;  %vm1871_vm14 = vweird.f32 %v6320_v39  ;;  %vm1033_vm1 = vmor %vm1031_vm7, %vm1032_vm13  ;;  %v4265_v46 = vld [vmem:[#allocation3 + $0x198] sm:$0xff] }
 0x19b   :  { %v6355_v25 = vpop.eup %4115  ;;  %v1027_v50 = vmul.f32 %v6333_v31, %v1026_v49  ;;  %v1186_v4 = vmul.f32 %v6349_v30, %v6292_v29  ;;  %4121 = vrsqrt.f32 %v6347_v14  ;;  %vm1192_vm15 = vweird.f32 %v6349_v30 }
 0x19c   :  { %v1710_v10 = vmul.f32 %v6306_v45, %v1709_v36  ;;  %v1698_v16 = vmul.f32 0.5, %v1697_v33  ;;  %v1377_v61 = vmul.f32 %v6341_v23, %v1376_v17  ;;  %v1176_v32 = vmul.f32 %v6355_v25, %v6310_v58  ;;  %v6368_v2 = vpop.eup %4117  ;;  %v6380_v47 = vpop.xlane.xlu2 %357  ;;  %vm1193_vm4 = vmor %vm1191_vm8, %vm1192_vm15  ;;  %v4266_v17 = vld [vmem:[#allocation3 + $0x190] sm:$0xff] }
 0x19d   :  { %v1028_v7 = vmul.f32 0.5, %v1027_v50  ;;  %v1187_v3 = vmul.f32 %v6349_v30, %v1186_v4  ;;  %v6382_v41 = vpop.eup %4119  ;;  %v1866_v15 = vmul.f32 %v6368_v2, %v6320_v39  ;;  %4123 = vrsqrt.f32 %v6361_v44  ;;  %v6393_v51 = vpop.xlane.xlu1 %355 }
 0x19e   :  { %v1714_v11 = vsel %vm6372_vm11, %v6306_v45, %v1710_v10  ;;  %v1699_v26 = vsub.f32 1.5, %v1698_v16  ;;  %v1177_v5 = vmul.f32 %v6355_v25, %v1176_v32  ;;  %v1378_v21 = vmul.f32 0.5, %v1377_v61  ;;  %v466_v6 = vpop.xlane.xlu0 %465 }
 0x19f   :  { %v1029_v8 = vsub.f32 1.5, %v1028_v7  ;;  %v1188_v62 = vmul.f32 0.5, %v1187_v3  ;;  %v2058_v34 = vmul.f32 %v4262_v42, %v1714_v11  ;;  %v1867_v28 = vmul.f32 %v6368_v2, %v1866_v15  ;;  %v4267_v3 = vld [vmem:[#allocation3 + $0x3b8] sm:$0xff] }
 0x1a0   :  { %v1700_v57 = vmul.f32 %v6327_v63, %v1699_v26  ;;  %v1178_v55 = vmul.f32 0.5, %v1177_v5  ;;  %v1856_v45 = vmul.f32 %v6382_v41, %v6323_v37  ;;  %vm1381_vm2 = vweird.f32 %v6286_v60 }
 0x1a1   :  { %v1030_v56 = vmul.f32 %v6333_v31, %v1029_v8  ;;  %v1189_v0 = vsub.f32 1.5, %v1188_v62  ;;  %vm1182_vm3 = vweird.f32 %v6355_v25  ;;  %v6411_v20 = vmax.f32 %v6325_v19, 1e-24  ;;  %v6413_v27 = vpop.eup %4121 }
 0x1a2   :  { %v1704_v18 = vsel %vm1703_vm0, %v6327_v63, %v1700_v57  ;;  %v1179_v24 = vsub.f32 1.5, %v1178_v55  ;;  %v1868_v59 = vmul.f32 0.5, %v1867_v28  ;;  %v1379_v63 = vsub.f32 1.5, %v1378_v21  ;;  %vm1183_vm5 = vmor %vm1181_vm12, %vm1182_vm3 }
 0x1a3   :  { %v2057_v13 = vmul.f32 %v4263_v43, %v1704_v18  ;;  %v1034_v52 = vsel %vm1033_vm1, %v6333_v31, %v1030_v56  ;;  %v1190_v53 = vmul.f32 %v6349_v30, %v1189_v0  ;;  %v1857_v40 = vmul.f32 %v6382_v41, %v1856_v45  ;;  %v6423_v35 = vpop.eup %4123 }
 0x1a4   :  { %v1990_v1 = vmul.f32 %v4264_v12, %v1034_v52  ;;  %v1180_v19 = vmul.f32 %v6355_v25, %v1179_v24  ;;  %v1869_v9 = vsub.f32 1.5, %v1868_v59  ;;  %vm1872_vm6 = vweird.f32 %v6368_v2  ;;  %v388_v4 = vpop.xlane.xlu2 %387  ;;  %v4274_v52 = vld [vmem:[#allocation3 + $0x108] sm:$0xff] }
 0x1a5   :  { %v3796_v54 = vpack.c.bf16 %v2058_v34, %v2057_v13  ;;  %v1194_v31 = vsel %vm1193_vm4, %v6349_v30, %v1190_v53  ;;  %v1858_v33 = vmul.f32 0.5, %v1857_v40  ;;  %vm1861_vm7 = vweird.f32 %v6323_v37  ;;  %vm1873_vm9 = vmor %vm1871_vm14, %vm1872_vm6 }
 0x1a6   :  { %v3626_v29 = vpack.c.bf16 %v1990_v1, %v6329_v38  ;;  %v2006_v49 = vmul.f32 %v4265_v46, %v1194_v31  ;;  %v1184_v36 = vsel %vm1183_vm5, %v6355_v25, %v1180_v19  ;;  %v1870_v30 = vmul.f32 %v6368_v2, %v1869_v9  ;;  %v4271_v46 = vld [vmem:[#allocation3 + $0x2b0] sm:$0xff] }
 0x1a7   :  { %3908 = vst [vmem:[#allocation2 + $0x1c8] sm:$0xff] %v3796_v54   ;;  %v2005_v50 = vmul.f32 %v4266_v17, %v1184_v36  ;;  %v1386_v58 = vmul.f32 %v6413_v27, %v6347_v14  ;;  %vm1382_vm8 = vweird.f32 %v6341_v23  ;;  %v1859_v38 = vsub.f32 1.5, %v1858_v33 }
 0x1a8   :  { %3874 = vst [vmem:[#allocation2 + $0x188] sm:$0xff] %v3626_v29   ;;  %vm1862_vm10 = vweird.f32 %v6382_v41  ;;  %v1536_v25 = vmul.f32 %v6423_v35, %v6361_v44  ;;  %v1874_v16 = vsel %vm1873_vm9, %v6368_v2, %v1870_v30  ;;  %4125 = vrsqrt.f32 %v6411_v20  ;;  %vm6470_vm13 = vmor %vm1381_vm2, %vm1382_vm8 }
 0x1a9   :  { %v3666_v10 = vpack.c.bf16 %v2006_v49, %v2005_v50  ;;  %v1387_v61 = vmul.f32 %v6413_v27, %v1386_v58  ;;  %v1380_v32 = vmul.f32 %v6341_v23, %v1379_v63  ;;  %v1860_v22 = vmul.f32 %v6382_v41, %v1859_v38  ;;  %vm1863_vm11 = vmor %vm1861_vm7, %vm1862_vm10 }
 0x1aa   :  { %vm1391_vm12 = vweird.f32 %v6347_v14  ;;  %v1537_v39 = vmul.f32 %v6423_v35, %v1536_v25  ;;  %v494_v7 = vpop.xlane.xlu1 %493  ;;  %v2074_v11 = vmul.f32 %v4267_v3, %v1874_v16  ;;  %v6455_v26 = vmax.f32 %v6339_v48, 1e-24  ;;  %v4268_v48 = vld [vmem:[#allocation3 + $0x3b0] sm:$0xff]  ;;  %v4270_v14 = vld [vmem:[#allocation3 + $0x238] sm:$0xff] }
 0x1ab   :  { %3882 = vst [vmem:[#allocation2 + $0xf8] sm:$0xff] %v3666_v10   ;;  %v1388_v2 = vmul.f32 0.5, %v1387_v61  ;;  %v6458_v5 = vmax.f32 %v6380_v47, 1e-24  ;;  %v1864_v8 = vsel %vm1863_vm11, %v6382_v41, %v1860_v22  ;;  %v6462_v15 = vmax.f32 %v6393_v51, 1e-24 }
 0x1ac   :  { %v1538_v62 = vmul.f32 0.5, %v1537_v39  ;;  %v6464_v42 = vmax.f32 %v466_v6, 1e-24  ;;  %v492_v34 = vpop.xlane.xlu0 %491  ;;  %v2073_v47 = vmul.f32 %v4268_v48, %v1864_v8  ;;  %vm1392_vm14 = vweird.f32 %v6413_v27  ;;  %v4269_v6 = vld [vmem:[#allocation3 + $0x230] sm:$0xff]  ;;  %v4277_v10 = vld [vmem:[#allocation3 + $0x328] sm:$0xff] }
 0x1ad   :  { %v1389_v57 = vsub.f32 1.5, %v1388_v2  ;;  %4127 = vrsqrt.f32 %v6455_v26  ;;  %v1384_v41 = vsel %vm6470_vm13, %v6341_v23, %v1380_v32  ;;  %vm1541_vm15 = vweird.f32 %v6361_v44  ;;  %vm1393_vm1 = vmor %vm1391_vm12, %vm1392_vm14 }
 0x1ae   :  { %v1539_v21 = vsub.f32 1.5, %v1538_v62  ;;  %4129 = vrsqrt.f32 %v6458_v5  ;;  %v6481_v60 = vpop.eup %4125  ;;  %v3836_v55 = vpack.c.bf16 %v2074_v11, %v2073_v47  ;;  %vm1542_vm0 = vweird.f32 %v6423_v35 }
 0x1af   :  { %v1390_v51 = vmul.f32 %v6413_v27, %v1389_v57  ;;  %4131 = vrsqrt.f32 %v6462_v15  ;;  %v3491_v56 = vld [vmem:[#allocation2 + $0x188] sm:$0xff]  ;;  %v866_v0 = vmul.f32 %v6481_v60, %v6411_v20  ;;  %v6493_v45 = vmax.f32 %v388_v4, 1e-24  ;;  %vm6501_vm2 = vmor %vm1541_vm15, %vm1542_vm0 }
 0x1b0   :  { %v1540_v23 = vmul.f32 %v6423_v35, %v1539_v21  ;;  %4133 = vrsqrt.f32 %v6464_v42  ;;  %3916 = vst [vmem:[#allocation2 + $0x1c0] sm:$0xff] %v3836_v55   ;;  %2918 = vmatpush.bf16.xpose.msra.mxu2 %v3491_v56  ;;  %v6495_v18 = vmax.f32 %v494_v7, 1e-24  ;;  %v430_v24 = vpop.xlane.xlu2 %429  ;;  %v2025_v43 = vmul.f32 %v4269_v6, %v1384_v41  ;;  %v4272_v41 = vld [vmem:[#allocation3 + $0x98] sm:$0xff] }
 0x1b1   :  { %v1394_v28 = vsel %vm1393_vm1, %v6413_v27, %v1390_v51  ;;  %v867_v27 = vmul.f32 %v6481_v60, %v866_v0  ;;  %vm871_vm3 = vweird.f32 %v6411_v20  ;;  %4135 = vrsqrt.f32 %v6493_v45 }
 0x1b2   :  { %v2026_v13 = vmul.f32 %v4270_v14, %v1394_v28  ;;  %v3499_v53 = vld [vmem:[#allocation2 + $0xf8] sm:$0xff]  ;;  %v1544_v12 = vsel %vm6501_vm2, %v6423_v35, %v1540_v23  ;;  %v6513_v1 = vmax.f32 %v492_v34, 1e-24  ;;  %vm861_vm4 = vweird.f32 %v6455_v26  ;;  %v428_v54 = vpop.xlane.xlu1 %427 }
 0x1b3   :  { %v6506_v59 = vpop.eup %4127  ;;  %v868_v19 = vmul.f32 0.5, %v867_v27  ;;  %vm1011_vm5 = vweird.f32 %v6458_v5  ;;  %2932 = vmatpush.bf16.xpose.msra.mxu3 %v3499_v53  ;;  %vm872_vm6 = vweird.f32 %v6481_v60  ;;  %vm1001_vm7 = vweird.f32 %v6462_v15 }
 0x1b4   :  { %v6515_v44 = vpop.eup %4129  ;;  %v3716_v63 = vpack.c.bf16 %v2026_v13, %v2025_v43  ;;  %v856_v40 = vmul.f32 %v6506_v59, %v6455_v26  ;;  %4137 = vrsqrt.f32 %v6495_v18  ;;  %v6528_v9 = vpop.xlane.xlu0 %389  ;;  %v6532_v49 = vmul.f32 %v4271_v46, %v1544_v12  ;;  %vm6552_vm12 = vmor %vm871_vm3, %vm872_vm6  ;;  %v4275_v12 = vld [vmem:[#allocation3 + $0x100] sm:$0xff] }
 0x1b5   :  { %v6521_v35 = vpop.eup %4131  ;;  %v1006_v31 = vmul.f32 %v6515_v44, %v6458_v5  ;;  %v869_v36 = vsub.f32 1.5, %v868_v19  ;;  %vm862_vm8 = vweird.f32 %v6506_v59  ;;  %vm1551_vm9 = vweird.f32 %v6464_v42 }
 0x1b6   :  { %v6530_v29 = vpop.eup %4133  ;;  %3892 = vst [vmem:[#allocation2 + $0xc8] sm:$0xff] %v3716_v63   ;;  %v857_v33 = vmul.f32 %v6506_v59, %v856_v40  ;;  %v996_v17 = vmul.f32 %v6521_v35, %v6462_v15  ;;  %4139 = vrsqrt.f32 %v6513_v1  ;;  %vm1012_vm10 = vweird.f32 %v6515_v44  ;;  %vm863_vm14 = vmor %vm861_vm4, %vm862_vm8  ;;  %v4276_v40 = vld [vmem:[#allocation3 + $0x2b8] sm:$0xff] }
 0x1b7   :  { %v1007_v50 = vmul.f32 %v6515_v44, %v1006_v31  ;;  %v1546_v30 = vmul.f32 %v6530_v29, %v6464_v42  ;;  %v870_v58 = vmul.f32 %v6481_v60, %v869_v36  ;;  %v6546_v25 = vpop.eup %4135  ;;  %vm1002_vm11 = vweird.f32 %v6521_v35  ;;  %vm1013_vm15 = vmor %vm1011_vm5, %vm1012_vm10 }
 0x1b8   :  { %v858_v4 = vmul.f32 0.5, %v857_v33  ;;  %v997_v38 = vmul.f32 %v6521_v35, %v996_v17  ;;  %v6558_v32 = vmax.f32 %v430_v24, 1e-24  ;;  %v1156_v20 = vmul.f32 %v6546_v25, %v6493_v45  ;;  %v6570_v62 = vpop.xlane.xlu2 %459  ;;  %v4273_v24 = vld [vmem:[#allocation3 + $0x90] sm:$0xff]  ;;  %vm1003_vm0 = vmor %vm1001_vm7, %vm1002_vm11 }
 0x1b9   :  { %v1008_v16 = vmul.f32 0.5, %v1007_v50  ;;  %v1547_v61 = vmul.f32 %v6530_v29, %v1546_v30  ;;  %v874_v22 = vsel %vm6552_vm12, %v6481_v60, %v870_v58  ;;  %vm1552_vm13 = vweird.f32 %v6530_v29 }
 0x1ba   :  { %v859_v39 = vsub.f32 1.5, %v858_v4  ;;  %v998_v7 = vmul.f32 0.5, %v997_v38  ;;  %v6565_v3 = vpop.eup %4137  ;;  %v6568_v8 = vmax.f32 %v428_v54, 1e-24  ;;  %v1157_v48 = vmul.f32 %v6546_v25, %v1156_v20  ;;  %v526_v26 = vpop.xlane.xlu1 %525  ;;  %vm1553_vm1 = vmor %vm1551_vm9, %vm1552_vm13 }
 0x1bb   :  { %v1009_v11 = vsub.f32 1.5, %v1008_v16  ;;  %v1548_v2 = vmul.f32 0.5, %v1547_v61  ;;  %v1686_v47 = vmul.f32 %v6565_v3, %v6495_v18  ;;  %v1974_v21 = vmul.f32 %v4272_v41, %v874_v22 }
 0x1bc   :  { %v860_v34 = vmul.f32 %v6506_v59, %v859_v39  ;;  %v999_v37 = vsub.f32 1.5, %v998_v7  ;;  %v6576_v57 = vpop.eup %4139  ;;  %4141 = vrsqrt.f32 %v6558_v32  ;;  %v1158_v0 = vmul.f32 0.5, %v1157_v48  ;;  %v524_v13 = vpop.xlane.xlu0 %523 }
 0x1bd   :  { %v1010_v60 = vmul.f32 %v6515_v44, %v1009_v11  ;;  %v1549_v55 = vsub.f32 1.5, %v1548_v2  ;;  %v3509_v51 = vld [vmem:[#allocation2 + $0xc8] sm:$0xff]  ;;  %v1687_v28 = vmul.f32 %v6565_v3, %v1686_v47  ;;  %v1676_v5 = vmul.f32 %v6576_v57, %v6513_v1 }
 0x1be   :  { %v864_v56 = vsel %vm863_vm14, %v6506_v59, %v860_v34  ;;  %v1000_v23 = vmul.f32 %v6521_v35, %v999_v37  ;;  %2944 = vmatpush.bf16.xpose.msrb.mxu0 %v3509_v51  ;;  %vm1691_vm2 = vweird.f32 %v6495_v18  ;;  %vm1692_vm3 = vweird.f32 %v6565_v3 }
 0x1bf   :  { %v1973_v6 = vmul.f32 %v4273_v24, %v864_v56  ;;  %v1014_v43 = vsel %vm1013_vm15, %v6515_v44, %v1010_v60  ;;  %v1550_v14 = vmul.f32 %v6530_v29, %v1549_v55  ;;  %v1688_v59 = vmul.f32 0.5, %v1687_v28  ;;  %vm1693_vm5 = vmor %vm1691_vm2, %vm1692_vm3  ;;  %v3529_v56 = vld [vmem:[#allocation2 + $0x190] sm:$0xff] }
 0x1c0   :  { %v1988_v27 = vmul.f32 %v4274_v52, %v1014_v43  ;;  %v1004_v53 = vsel %vm1003_vm0, %v6521_v35, %v1000_v23  ;;  %v1677_v19 = vmul.f32 %v6576_v57, %v1676_v5  ;;  %v6609_v35 = vmax.f32 %v6528_v9, 1e-24 }
 0x1c1   :  { %v3586_v15 = vpack.c.bf16 %v1974_v21, %v1973_v6  ;;  %v1987_v44 = vmul.f32 %v4275_v12, %v1004_v53  ;;  %v1554_v63 = vsel %vm1553_vm1, %v6530_v29, %v1550_v14  ;;  %v1689_v31 = vsub.f32 1.5, %v1688_v59 }
 0x1c2   :  { %v2042_v54 = vmul.f32 %v4276_v40, %v1554_v63  ;;  %v6611_v42 = vpop.eup %4141  ;;  %v1159_v36 = vsub.f32 1.5, %v1158_v0  ;;  %v1678_v33 = vmul.f32 0.5, %v1677_v19  ;;  %4143 = vrsqrt.f32 %v6568_v8  ;;  %v4279_v0 = vld [vmem:[#allocation3 + $0x180] sm:$0xff] }
 0x1c3   :  { %3866 = vst [vmem:[#allocation2 + $0x110] sm:$0xff] %v3586_v15   ;;  %v3621_v46 = vpack.c.bf16 %v1988_v27, %v1987_v44  ;;  %v1690_v17 = vmul.f32 %v6565_v3, %v1689_v31  ;;  %v1366_v50 = vmul.f32 %v6611_v42, %v6558_v32  ;;  %vm1161_vm4 = vweird.f32 %v6493_v45  ;;  %v4280_v15 = vld [vmem:[#allocation3 + $0x228] sm:$0xff]  ;;  %v3482_v40 = vld [vmem:[#allocation2 + $0x180] sm:$0xff] }
 0x1c4   :  { %v3756_v29 = vpack.c.bf16 %v2042_v54, %v6532_v49  ;;  %v1679_v9 = vsub.f32 1.5, %v1678_v33  ;;  %vm1681_vm6 = vweird.f32 %v6513_v1  ;;  %vm1682_vm7 = vweird.f32 %v6576_v57 }
 0x1c5   :  { %3873 = vst [vmem:[#allocation2 + $0xe0] sm:$0xff] %v3621_v46   ;;  %v490_v30 = vpop.xlane.xlu2 %489  ;;  %vm1162_vm8 = vweird.f32 %v6546_v25  ;;  %v1694_v49 = vsel %vm1693_vm5, %v6565_v3, %v1690_v17  ;;  %v1367_v58 = vmul.f32 %v6611_v42, %v1366_v50  ;;  %4145 = vrsqrt.f32 %v6609_v35  ;;  %vm1683_vm9 = vmor %vm1681_vm6, %vm1682_vm7 }
 0x1c6   :  { %3900 = vst [vmem:[#allocation2 + $0x78] sm:$0xff] %v3756_v29   ;;  %v1160_v4 = vmul.f32 %v6546_v25, %v1159_v36  ;;  %v1680_v18 = vmul.f32 %v6576_v57, %v1679_v9  ;;  %v6630_v38 = vmax.f32 %v6570_v62, 1e-24  ;;  %v6632_v1 = vmax.f32 %v526_v26, 1e-24  ;;  %vm6646_vm10 = vmor %vm1161_vm4, %vm1162_vm8  ;;  %v4278_v62 = vld [vmem:[#allocation3 + $0x320] sm:$0xff] }
 0x1c7   :  { %v2056_v16 = vmul.f32 %v4277_v10, %v1694_v49  ;;  %v1368_v61 = vmul.f32 0.5, %v1367_v58  ;;  %v6634_v22 = vmax.f32 %v524_v13, 1e-24  ;;  %v488_v39 = vpop.xlane.xlu1 %487  ;;  %v6640_v3 = vmax.f32 %v490_v30, 1e-24  ;;  %v3521_v36 = vld [vmem:[#allocation2 + $0xd0] sm:$0xff] }
 0x1c8   :  { %v6636_v7 = vpop.eup %4143  ;;  %v1684_v20 = vsel %vm1683_vm9, %v6576_v57, %v1680_v18  ;;  %4147 = vrsqrt.f32 %v6630_v38  ;;  %v462_v11 = vpop.xlane.xlu0 %461  ;;  %vm1371_vm12 = vweird.f32 %v6558_v32  ;;  %v1164_v57 = vsel %vm6646_vm10, %v6546_v25, %v1160_v4  ;;  %v4281_v49 = vld [vmem:[#allocation3 + $0x220] sm:$0xff]  ;;  %v3528_v10 = vld [vmem:[#allocation2 + $0x68] sm:$0xff] }
 0x1c9   :  { %v2055_v34 = vmul.f32 %v4278_v62, %v1684_v20  ;;  %v1369_v37 = vsub.f32 1.5, %v1368_v61  ;;  %v1356_v48 = vmul.f32 %v6636_v7, %v6568_v8  ;;  %vm1372_vm11 = vweird.f32 %v6611_v42 }
 0x1ca   :  { %v3483_v47 = vld [vmem:[#allocation2 + $0x110] sm:$0xff]  ;;  %4149 = vrsqrt.f32 %v6632_v1  ;;  %v6658_v45 = vmax.f32 %v488_v39, 1e-24  ;;  %v6668_v28 = vmul.f32 %v4279_v0, %v1164_v57  ;;  %vm6674_vm13 = vmor %vm1371_vm12, %vm1372_vm11  ;;  %v6679_v6 = vmax.f32 %v462_v11, 1e-24 }
 0x1cb   :  { %v6660_v41 = vpop.eup %4145  ;;  %v3791_v21 = vpack.c.bf16 %v2056_v16, %v2055_v34  ;;  %v1370_v60 = vmul.f32 %v6611_v42, %v1369_v37  ;;  %v1357_v55 = vmul.f32 %v6636_v7, %v1356_v48  ;;  %4151 = vrsqrt.f32 %v6634_v22  ;;  %2904 = vmatpush.bf16.xpose.msra.mxu1 %v3483_v47  ;;  %v4282_v37 = vld [vmem:[#allocation3 + $0x188] sm:$0xff] }
 0x1cc   :  { %v3490_v51 = vld [vmem:[#allocation2 + $0xe0] sm:$0xff]  ;;  %v1166_v25 = vmul.f32 %v6660_v41, %v6609_v35  ;;  %4153 = vrsqrt.f32 %v6640_v3  ;;  %vm1361_vm14 = vweird.f32 %v6568_v8  ;;  %vm1362_vm15 = vweird.f32 %v6636_v7 }
 0x1cd   :  { %v520_v23 = vpop.xlane.xlu2 %519  ;;  %3907 = vst [vmem:[#allocation2 + $0xa8] sm:$0xff] %v3791_v21   ;;  %v1358_v24 = vmul.f32 0.5, %v1357_v55  ;;  %4155 = vrsqrt.f32 %v6658_v45  ;;  %2919 = vmatpush.bf16.xpose.msra.mxu2 %v3490_v51  ;;  %v1374_v14 = vsel %vm6674_vm13, %v6611_v42, %v1370_v60  ;;  %vm1171_vm0 = vweird.f32 %v6609_v35  ;;  %vm6712_vm4 = vmor %vm1361_vm14, %vm1362_vm15 }
 0x1ce   :  { %v6681_v43 = vpop.eup %4147  ;;  %v1167_v32 = vmul.f32 %v6660_v41, %v1166_v25  ;;  %v6688_v5 = vmax.f32 %v520_v23, 1e-24  ;;  %4157 = vrsqrt.f32 %v6679_v6  ;;  %vm1172_vm1 = vweird.f32 %v6660_v41 }
 0x1cf   :  { %v1359_v13 = vsub.f32 1.5, %v1358_v24  ;;  %v1516_v52 = vmul.f32 %v6681_v43, %v6630_v38  ;;  %vm1851_vm2 = vweird.f32 %v6632_v1  ;;  %v2024_v12 = vmul.f32 %v4280_v15, %v1374_v14  ;;  %v426_v33 = vpop.xlane.xlu1 %425  ;;  %vm1173_vm10 = vmor %vm1171_vm0, %vm1172_vm1  ;;  %v3520_v14 = vld [vmem:[#allocation2 + $0x1d8] sm:$0xff] }
 0x1d0   :  { %v6694_v27 = vpop.eup %4149  ;;  %v1168_v53 = vmul.f32 0.5, %v1167_v32  ;;  %vm1671_vm3 = vweird.f32 %v6640_v3  ;;  %vm1521_vm5 = vweird.f32 %v6630_v38  ;;  %vm1522_vm6 = vweird.f32 %v6681_v43  ;;  %v6722_v29 = vpop.xlane.xlu0 %423 }
 0x1d1   :  { %v6699_v59 = vpop.eup %4151  ;;  %v1360_v44 = vmul.f32 %v6636_v7, %v1359_v13  ;;  %v1517_v63 = vmul.f32 %v6681_v43, %v1516_v52  ;;  %v1846_v19 = vmul.f32 %v6694_v27, %v6632_v1  ;;  %vm1841_vm7 = vweird.f32 %v6634_v22  ;;  %v4283_v52 = vld [vmem:[#allocation3 + $0x3a8] sm:$0xff] }
 0x1d2   :  { %v6706_v54 = vpop.eup %4153  ;;  %v1169_v42 = vsub.f32 1.5, %v1168_v53  ;;  %v1836_v46 = vmul.f32 %v6699_v59, %v6634_v22  ;;  %4159 = vrsqrt.f32 %v6688_v5  ;;  %vm1852_vm8 = vweird.f32 %v6694_v27 }
 0x1d3   :  { %v6724_v8 = vpop.eup %4155  ;;  %v1364_v17 = vsel %vm6712_vm4, %v6636_v7, %v1360_v44  ;;  %v1518_v50 = vmul.f32 0.5, %v1517_v63  ;;  %v1847_v9 = vmul.f32 %v6694_v27, %v1846_v19  ;;  %v1666_v30 = vmul.f32 %v6706_v54, %v6640_v3  ;;  %2905 = vmatpush.bf16.xpose.msra.mxu1 %v3482_v40  ;;  %vm1853_vm15 = vmor %vm1851_vm2, %vm1852_vm8  ;;  %v3527_v63 = vld [vmem:[#allocation2 + $0x178] sm:$0xff] }
 0x1d4   :  { %v2023_v58 = vmul.f32 %v4281_v49, %v1364_v17  ;;  %v1170_v4 = vmul.f32 %v6660_v41, %v1169_v42  ;;  %v1837_v18 = vmul.f32 %v6699_v59, %v1836_v46  ;;  %vm1661_vm9 = vweird.f32 %v6658_v45  ;;  %v6736_v16 = vpop.eup %4157  ;;  %vm6790_vm4 = vmor %vm1521_vm5, %vm1522_vm6  ;;  %v4285_v46 = vld [vmem:[#allocation3 + $0x318] sm:$0xff] }
 0x1d5   :  { %2968 = vmatpush.bf16.xpose.msrb.mxu2 %v3529_v56  ;;  %v1848_v61 = vmul.f32 0.5, %v1847_v9  ;;  %vm1842_vm12 = vweird.f32 %v6699_v59  ;;  %v1667_v39 = vmul.f32 %v6706_v54, %v1666_v30  ;;  %v1656_v7 = vmul.f32 %v6724_v8, %v6658_v45  ;;  %v458_v34 = vpop.xlane.xlu2 %457 }
 0x1d6   :  { %v3711_v20 = vpack.c.bf16 %v2024_v12, %v2023_v58  ;;  %v1174_v11 = vsel %vm1173_vm10, %v6660_v41, %v1170_v4  ;;  %v1519_v2 = vsub.f32 1.5, %v1518_v50  ;;  %v1838_v62 = vmul.f32 0.5, %v1837_v18  ;;  %vm6771_vm0 = vmor %vm1841_vm7, %vm1842_vm12 }
 0x1d7   :  { %v2004_v48 = vmul.f32 %v4282_v37, %v1174_v11  ;;  %v1849_v47 = vsub.f32 1.5, %v1848_v61  ;;  %v1668_v35 = vmul.f32 0.5, %v1667_v39  ;;  %v6747_v57 = vmax.f32 %v426_v33, 1e-24  ;;  %v456_v12 = vpop.xlane.xlu1 %455 }
 0x1d8   :  { %v6749_v21 = vpop.eup %4159  ;;  %3891 = vst [vmem:[#allocation2 + $0x100] sm:$0xff] %v3711_v20   ;;  %v1839_v60 = vsub.f32 1.5, %v1838_v62  ;;  %vm1672_vm11 = vweird.f32 %v6706_v54  ;;  %v1657_v55 = vmul.f32 %v6724_v8, %v1656_v7  ;;  %v1526_v41 = vmul.f32 %v6736_v16, %v6679_v6  ;;  %v522_v44 = vpop.xlane.xlu0 %521  ;;  %v3519_v7 = vld [vmem:[#allocation2 + $0x90] sm:$0xff] }
 0x1d9   :  { %vm1531_vm13 = vweird.f32 %v6679_v6  ;;  %v3661_v51 = vpack.c.bf16 %v2004_v48, %v6668_v28  ;;  %v1850_v25 = vmul.f32 %v6694_v27, %v1849_v47  ;;  %v1669_v56 = vsub.f32 1.5, %v1668_v35  ;;  %vm1673_vm2 = vmor %vm1671_vm3, %vm1672_vm11  ;;  %v3537_v6 = vld [vmem:[#allocation2 + $0xa0] sm:$0xff] }
 0x1da   :  { %vm1662_vm14 = vweird.f32 %v6724_v8  ;;  %v1520_v23 = vmul.f32 %v6681_v43, %v1519_v2  ;;  %v1840_v0 = vmul.f32 %v6699_v59, %v1839_v60  ;;  %v1658_v26 = vmul.f32 0.5, %v1657_v55  ;;  %v4288_v2 = vld [vmem:[#allocation3 + $0x2a8] sm:$0xff] }
 0x1db   :  { %2954 = vmatpush.bf16.xpose.msrb.mxu1 %v3521_v36  ;;  %v1527_v24 = vmul.f32 %v6736_v16, %v1526_v41  ;;  %3881 = vst [vmem:[#allocation2 + $0x1e8] sm:$0xff] %v3661_v51   ;;  %v1854_v28 = vsel %vm1853_vm15, %v6694_v27, %v1850_v25  ;;  %v1670_v1 = vmul.f32 %v6706_v54, %v1669_v56  ;;  %vm1532_vm1 = vweird.f32 %v6736_v16  ;;  %vm1663_vm3 = vmor %vm1661_vm9, %vm1662_vm14 }
 0x1dc   :  { %v1816_v13 = vmul.f32 %v6749_v21, %v6688_v5  ;;  %v2072_v53 = vmul.f32 %v4283_v52, %v1854_v28  ;;  %v1844_v27 = vsel %vm6771_vm0, %v6699_v59, %v1840_v0  ;;  %v1659_v22 = vsub.f32 1.5, %v1658_v26  ;;  %v4284_v59 = vld [vmem:[#allocation3 + $0x3a0] sm:$0xff]  ;;  %vm1533_vm5 = vmor %vm1531_vm13, %vm1532_vm1 }
 0x1dd   :  { %2969 = vmatpush.bf16.xpose.msrb.mxu2 %v3528_v10  ;;  %v1528_v15 = vmul.f32 0.5, %v1527_v24  ;;  %v2071_v40 = vmul.f32 %v4284_v59, %v1844_v27  ;;  %v1674_v31 = vsel %vm1673_vm2, %v6706_v54, %v1670_v1  ;;  %4161 = vrsqrt.f32 %v6747_v57  ;;  %v2344_v18 = vpop.xlane.xlu2 %2343  ;;  %v4286_v10 = vld [vmem:[#allocation3 + $0x310] sm:$0xff]  ;;  %v3525_v59 = vld [vmem:[#allocation2 + $0x1c8] sm:$0xff] }
 0x1de   :  { %v1817_v3 = vmul.f32 %v6749_v21, %v1816_v13  ;;  %v1524_v42 = vsel %vm6790_vm4, %v6681_v43, %v1520_v23  ;;  %v2054_v36 = vmul.f32 %v4285_v46, %v1674_v31  ;;  %v1660_v38 = vmul.f32 %v6724_v8, %v1659_v22 }
 0x1df   :  { %v1529_v33 = vsub.f32 1.5, %v1528_v15  ;;  %v3831_v17 = vpack.c.bf16 %v2072_v53, %v2071_v40  ;;  %v6806_v50 = vmax.f32 %v6722_v29, 1e-24  ;;  %v6808_v9 = vmax.f32 %v458_v34, 1e-24  ;;  %v3508_v30 = vld [vmem:[#allocation2 + $0x100] sm:$0xff] }
 0x1e0   :  { %v1818_v54 = vmul.f32 0.5, %v1817_v3  ;;  %v1664_v43 = vsel %vm1663_vm3, %v6724_v8, %v1660_v38  ;;  %v6812_v58 = vmax.f32 %v456_v12, 1e-24  ;;  %v6814_v4 = vmax.f32 %v522_v44, 1e-24  ;;  %2945 = vmatpush.bf16.xpose.msrb.mxu0 %v3508_v30  ;;  %v4287_v29 = vld [vmem:[#allocation3 + $0x2a0] sm:$0xff] }
 0x1e1   :  { %v1530_v49 = vmul.f32 %v6736_v16, %v1529_v33  ;;  %3915 = vst [vmem:[#allocation2 + $0xc0] sm:$0xff] %v3831_v17   ;;  %v2053_v45 = vmul.f32 %v4286_v10, %v1664_v43  ;;  %4163 = vrsqrt.f32 %v6806_v50  ;;  %v2039_v8 = vmul.f32 %v4287_v29, %v1524_v42  ;;  %v3518_v53 = vld [vmem:[#allocation2 + $0x70] sm:$0xff]  ;;  %v3536_v12 = vld [vmem:[#allocation2 + $0x58] sm:$0xff] }
 0x1e2   :  { %4165 = vrsqrt.f32 %v6808_v9  ;;  %v3498_v39 = vld [vmem:[#allocation2 + $0x1e8] sm:$0xff]  ;;  %v1819_v34 = vsub.f32 1.5, %v1818_v54  ;;  %v6829_v47 = vmax.f32 %v2344_v18, 1e-24  ;;  %vm1821_vm6 = vweird.f32 %v6688_v5 }
 0x1e3   :  { %2955 = vmatpush.bf16.xpose.msrb.mxu1 %v3520_v14  ;;  %v1534_v61 = vsel %vm1533_vm5, %v6736_v16, %v1530_v49  ;;  %v6823_v20 = vpop.eup %4161  ;;  %v3786_v11 = vpack.c.bf16 %v2054_v36, %v2053_v45  ;;  %4167 = vrsqrt.f32 %v6812_v58  ;;  %2933 = vmatpush.bf16.xpose.msra.mxu3 %v3498_v39  ;;  %v3526_v16 = vld [vmem:[#allocation2 + $0x170] sm:$0xff]  ;;  %vm1822_vm7 = vweird.f32 %v6749_v21 }
 0x1e4   :  { %v2040_v62 = vmul.f32 %v4288_v2, %v1534_v61  ;;  %v1346_v37 = vmul.f32 %v6823_v20, %v6747_v57  ;;  %4169 = vrsqrt.f32 %v6814_v4  ;;  %v6837_v51 = vmul.f32 %v6749_v21, %v1819_v34  ;;  %vm6863_vm11 = vmor %vm1821_vm6, %vm1822_vm7  ;;  %v3517_v34 = vld [vmem:[#allocation2 + $0x78] sm:$0xff] }
 0x1e5   :  { %2970 = vmatpush.bf16.xpose.msrb.mxu2 %v3527_v63  ;;  %3906 = vst [vmem:[#allocation2 + $0x88] sm:$0xff] %v3786_v11   ;;  %4171 = vrsqrt.f32 %v6829_v47  ;;  %vm1351_vm8 = vweird.f32 %v6747_v57  ;;  %vm1341_vm9 = vweird.f32 %v6806_v50  ;;  %vm1511_vm10 = vweird.f32 %v6808_v9 }
 0x1e6   :  { %v3751_v48 = vpack.c.bf16 %v2040_v62, %v2039_v8  ;;  %v1347_v35 = vmul.f32 %v6823_v20, %v1346_v37  ;;  %vm1501_vm12 = vweird.f32 %v6812_v58  ;;  %vm1352_vm13 = vweird.f32 %v6823_v20  ;;  %v4289_v8 = vld [vmem:[#allocation3 + $0x218] sm:$0xff] }
 0x1e7   :  { %v486_v60 = vpop.xlane.xlu1 %485  ;;  %v484_v55 = vpop.xlane.xlu0 %483  ;;  %v1824_v22 = vsel %vm6863_vm11, %v6749_v21, %v6837_v51  ;;  %vm1831_vm14 = vweird.f32 %v6814_v4  ;;  %vm6889_vm0 = vmor %vm1351_vm8, %vm1352_vm13 }
 0x1e8   :  { %v6834_v41 = vpop.eup %4163  ;;  %3899 = vst [vmem:[#allocation2 + $0xe8] sm:$0xff] %v3751_v48   ;;  %v6840_v25 = vmax.f32 %v486_v60, 1e-24  ;;  %v6842_v56 = vmax.f32 %v484_v55, 1e-24  ;;  %v1348_v0 = vmul.f32 0.5, %v1347_v35 }
 0x1e9   :  { %v6844_v23 = vpop.eup %4165  ;;  %v1336_v26 = vmul.f32 %v6834_v41, %v6806_v50  ;;  %vm1342_vm15 = vweird.f32 %v6834_v41  ;;  %v4290_v50 = vld [vmem:[#allocation3 + $0x210] sm:$0xff]  ;;  %v4292_v55 = vld [vmem:[#allocation3 + $0x298] sm:$0xff] }
 0x1ea   :  { %v6850_v24 = vpop.eup %4167  ;;  %v1506_v14 = vmul.f32 %v6844_v23, %v6808_v9  ;;  %4173 = vrsqrt.f32 %v6840_v25  ;;  %v1349_v1 = vsub.f32 1.5, %v1348_v0  ;;  %v422_v27 = vpop.xlane.xlu2 %421  ;;  %vm1512_vm1 = vweird.f32 %v6844_v23  ;;  %vm1343_vm3 = vmor %vm1341_vm9, %vm1342_vm15  ;;  %v3535_v48 = vld [vmem:[#allocation2 + $0x10] sm:$0xff] }
 0x1eb   :  { %2956 = vmatpush.bf16.xpose.msrb.mxu1 %v3519_v7  ;;  %2982 = vmatpush.bf16.xpose.msrb.mxu3 %v3537_v6  ;;  %v6857_v28 = vpop.eup %4169  ;;  %v1337_v13 = vmul.f32 %v6834_v41, %v1336_v26  ;;  %v1496_v52 = vmul.f32 %v6850_v24, %v6812_v58  ;;  %4175 = vrsqrt.f32 %v6842_v56  ;;  %v6895_v42 = vmax.f32 %v422_v27, 1e-24  ;;  %vm1513_vm5 = vmor %vm1511_vm10, %vm1512_vm1  ;;  %v4291_v35 = vld [vmem:[#allocation3 + $0x390] sm:$0xff]  ;;  %v3524_v58 = vld [vmem:[#allocation2 + $0xa8] sm:$0xff] }
 0x1ec   :  { %v1507_v5 = vmul.f32 %v6844_v23, %v1506_v14  ;;  %v1826_v15 = vmul.f32 %v6857_v28, %v6814_v4  ;;  %v1350_v44 = vmul.f32 %v6823_v20, %v1349_v1  ;;  %v6883_v21 = vpop.eup %4171  ;;  %vm1502_vm2 = vweird.f32 %v6850_v24  ;;  %v4293_v26 = vld [vmem:[#allocation3 + $0x290] sm:$0xff] }
 0x1ed   :  { %2971 = vmatpush.bf16.xpose.msrb.mxu2 %v3526_v16  ;;  %v1338_v63 = vmul.f32 0.5, %v1337_v13  ;;  %v1497_v19 = vmul.f32 %v6850_v24, %v1496_v52  ;;  %v2350_v57 = vmul.f32 %v6883_v21, %v6829_v47  ;;  %vm1832_vm4 = vweird.f32 %v6857_v28  ;;  %vm1503_vm6 = vmor %vm1501_vm12, %vm1502_vm2  ;;  %v4294_v13 = vld [vmem:[#allocation3 + $0x398] sm:$0xff] }
 0x1ee   :  { %v1508_v31 = vmul.f32 0.5, %v1507_v5  ;;  %v1827_v3 = vmul.f32 %v6857_v28, %v1826_v15  ;;  %v1354_v46 = vsel %vm6889_vm0, %v6823_v20, %v1350_v44  ;;  %4177 = vrsqrt.f32 %v6895_v42  ;;  %vm1833_vm7 = vmor %vm1831_vm14, %vm1832_vm4 }
 0x1ef   :  { %v1339_v36 = vsub.f32 1.5, %v1338_v63  ;;  %v1498_v38 = vmul.f32 0.5, %v1497_v19  ;;  %v420_v33 = vpop.xlane.xlu1 %419  ;;  %v6902_v17 = vpop.xlane.xlu0 %2345  ;;  %v2351_v10 = vmul.f32 %v6883_v21, %v2350_v57  ;;  %v2022_v61 = vmul.f32 %v4289_v8, %v1354_v46  ;;  %v3516_v46 = vld [vmem:[#allocation2 + $0xe8] sm:$0xff] }
 0x1f0   :  { %v6904_v54 = vpop.eup %4173  ;;  %v1509_v30 = vsub.f32 1.5, %v1508_v31  ;;  %v1828_v43 = vmul.f32 0.5, %v1827_v3  ;;  %v2069_v60 = vmul.f32 %v4291_v35, %v1824_v22  ;;  %vm1651_vm8 = vweird.f32 %v6840_v25 }
 0x1f1   :  { %v1340_v49 = vmul.f32 %v6834_v41, %v1339_v36  ;;  %v1499_v18 = vsub.f32 1.5, %v1498_v38  ;;  %v1646_v45 = vmul.f32 %v6904_v54, %v6840_v25  ;;  %v6912_v29 = vpop.eup %4175  ;;  %v2352_v2 = vmul.f32 0.5, %v2351_v10 }
 0x1f2   :  { %v1510_v39 = vmul.f32 %v6844_v23, %v1509_v30  ;;  %v1829_v7 = vsub.f32 1.5, %v1828_v43  ;;  %v1636_v9 = vmul.f32 %v6912_v29, %v6842_v56  ;;  %vm1652_vm9 = vweird.f32 %v6904_v54  ;;  %v452_v63 = vpop.xlane.xlu2 %451  ;;  %v3534_v30 = vld [vmem:[#allocation2 + $0x158] sm:$0xff]  ;;  %v4295_v43 = vld [vmem:[#allocation3 + $0x308] sm:$0xff] }
 0x1f3   :  { %2957 = vmatpush.bf16.xpose.msrb.mxu1 %v3518_v53  ;;  %2983 = vmatpush.bf16.xpose.msrb.mxu3 %v3536_v12  ;;  %v1344_v20 = vsel %vm1343_vm3, %v6834_v41, %v1340_v49  ;;  %v1500_v11 = vmul.f32 %v6850_v24, %v1499_v18  ;;  %v1647_v62 = vmul.f32 %v6904_v54, %v1646_v45  ;;  %v2353_v22 = vsub.f32 1.5, %v2352_v2  ;;  %vm6956_vm12 = vmor %vm1651_vm8, %vm1652_vm9  ;;  %v3523_v18 = vld [vmem:[#allocation2 + $0x88] sm:$0xff] }
 0x1f4   :  { %v2021_v6 = vmul.f32 %v4290_v50, %v1344_v20  ;;  %v1514_v37 = vsel %vm1513_vm5, %v6844_v23, %v1510_v39  ;;  %v1830_v16 = vmul.f32 %v6857_v28, %v1829_v7  ;;  %v1637_v1 = vmul.f32 %v6912_v29, %v1636_v9  ;;  %v3037_v7 = vld [vmem:[%s7381_s2] sm:$0xff] }
 0x1f5   :  { %2972 = vmatpush.bf16.xpose.msrb.mxu2 %v3525_v59  ;;  %v2038_v41 = vmul.f32 %v4292_v55, %v1514_v37  ;;  %v1504_v51 = vsel %vm1503_vm6, %v6850_v24, %v1500_v11  ;;  %v1648_v23 = vmul.f32 0.5, %v1647_v62  ;;  %v6944_v24 = vpop.eup %4177  ;;  %v6946_v15 = vmax.f32 %v420_v33, 1e-24  ;;  %v4297_v9 = vld [vmem:[%s7379_s0] sm:$0xff] }
 0x1f6   :  { %v3706_v0 = vpack.c.bf16 %v2022_v61, %v2021_v6  ;;  %v2037_v14 = vmul.f32 %v4293_v26, %v1504_v51  ;;  %v1834_v32 = vsel %vm1833_vm7, %v6857_v28, %v1830_v16  ;;  %v1638_v5 = vmul.f32 0.5, %v1637_v1  ;;  %v3533_v55 = vld [vmem:[#allocation2 + $0x1c0] sm:$0xff] }
 0x1f7   :  { %v2070_v52 = vmul.f32 %v4294_v13, %v1834_v32  ;;  %v1649_v53 = vsub.f32 1.5, %v1648_v23  ;;  %v516_v4 = vpop.xlane.xlu0 %515  ;;  %vm2355_vm10 = vweird.f32 %v6829_v47  ;;  %v1326_v44 = vmul.f32 %v6944_v24, %v6895_v42  ;;  %v518_v19 = vpop.xlane.xlu1 %517 }
 0x1f8   :  { %3890 = vst [vmem:[#allocation2 + $0x1d0] sm:$0xff] %v3706_v0   ;;  %v3746_v27 = vpack.c.bf16 %v2038_v41, %v2037_v14  ;;  %v1639_v40 = vsub.f32 1.5, %v1638_v5  ;;  %vm1641_vm11 = vweird.f32 %v6842_v56  ;;  %vm1642_vm13 = vweird.f32 %v6912_v29  ;;  %v4296_v56 = vld [vmem:[#allocation3 + $0x300] sm:$0xff] }
 0x1f9   :  { %v3826_v28 = vpack.c.bf16 %v2070_v52, %v2069_v60  ;;  %v1650_v12 = vmul.f32 %v6904_v54, %v1649_v53  ;;  %4179 = vrsqrt.f32 %v6946_v15  ;;  %vm2356_vm14 = vweird.f32 %v6883_v21  ;;  %vm1643_vm15 = vmor %vm1641_vm11, %vm1642_vm13  ;;  %v4298_v52 = vld [vmem:[#allocation3 + $0x208] sm:$0xff] }
 0x1fa   :  { %3898 = vst [vmem:[#allocation2 + $0x1f0] sm:$0xff] %v3746_v27   ;;  %v1327_v25 = vmul.f32 %v6944_v24, %v1326_v44  ;;  %v6969_v3 = vmax.f32 %v6902_v17, 1e-24  ;;  %v2354_v36 = vmul.f32 %v6883_v21, %v2353_v22  ;;  %v1640_v38 = vmul.f32 %v6912_v29, %v1639_v40  ;;  %vm6990_vm0 = vmor %vm2355_vm10, %vm2356_vm14  ;;  %v3038_v27 = vld [vmem:[%s7381_s2 + $0x8] sm:$0xff] }
 0x1fb   :  { %2958 = vmatpush.bf16.xpose.msrb.mxu1 %v3517_v34  ;;  %2984 = vmatpush.bf16.xpose.msrb.mxu3 %v3535_v48  ;;  %3914 = vst [vmem:[#allocation2 + $0x38] sm:$0xff] %v3826_v28   ;;  %v1654_v31 = vsel %vm6956_vm12, %v6904_v54, %v1650_v12  ;;  %v6973_v57 = vmax.f32 %v452_v63, 1e-24  ;;  %v6975_v33 = vmax.f32 %v518_v19, 1e-24  ;;  %vm1331_vm1 = vweird.f32 %v6895_v42 }
 0x1fc   :  { %v2052_v49 = vmul.f32 %v4295_v43, %v1654_v31  ;;  %v1328_v54 = vmul.f32 0.5, %v1327_v25  ;;  %4181 = vrsqrt.f32 %v6969_v3  ;;  %v6982_v17 = vmax.f32 %v516_v4, 1e-24 }
 0x1fd   :  { %2973 = vmatpush.bf16.xpose.msrb.mxu2 %v3524_v58  ;;  %v1644_v10 = vsel %vm1643_vm15, %v6912_v29, %v1640_v38  ;;  %4183 = vrsqrt.f32 %v6973_v57  ;;  %v2358_v47 = vsel %vm6990_vm0, %v6883_v21, %v2354_v36  ;;  %vm1332_vm2 = vweird.f32 %v6944_v24 }
 0x1fe   :  { %v2051_v8 = vmul.f32 %v4296_v56, %v1644_v10  ;;  %v1329_v61 = vsub.f32 1.5, %v1328_v54  ;;  %4185 = vrsqrt.f32 %v6975_v33  ;;  %v4360_v6 = vmov 0   ;;  %vm7026_vm4 = vmor %vm1331_vm1, %vm1332_vm2  ;;  %v4300_v56 = vld [vmem:[%s7379_s0 + $0x8] sm:$0xff]  ;;  %s4361_s0 = smov [#allocation6]  }
 0x1ff   :  { %v3507_v39 = vld [vmem:[#allocation2 + $0x1d0] sm:$0xff]  ;;  %v454_v29 = vpop.xlane.xlu0 %453  ;;  %v6999_v20 = vpop.eup %4179  ;;  %4187 = vrsqrt.f32 %v6982_v17  ;;  %3928 = vset.pattern.permute.xlu1 %v4360_v6  ;;  %3929 = vset.pattern.permute.xlu2 %v4360_v6  ;;  %v7020_v48 = vmul.f32 %v4297_v9, %v2358_v47  ;;  %vm1321_vm3 = vweird.f32 %v6946_v15  ;;  %vm2365_vm5 = vweird.f32 %v6969_v3  ;;  %s3187_s29 = sshll.u32 %s4361_s0, 4  ;;  %s3188_s29 = int_to_ptr.vmem [resolvable:$true] %s3187_s29 }
 0x200   :  { %v7005_v11 = vmax.f32 %v454_v29, 1e-24  ;;  %v3781_v2 = vpack.c.bf16 %v2052_v49, %v2051_v8  ;;  %v1330_v62 = vmul.f32 %v6944_v24, %v1329_v61  ;;  %v1316_v34 = vmul.f32 %v6999_v20, %v6946_v15  ;;  %2946 = vmatpush.bf16.xpose.msrb.mxu0 %v3507_v39  ;;  %3044 = vperm.xlu1 %3928, %v3037_v7   ;;  %v3532_v15 = vld [vmem:[#allocation2 + $0xc0] sm:$0xff]  ;;  %v4301_v29 = vld [vmem:[#allocation3 + $0x388] sm:$0xff] }
 0x201   :  { %v3515_v50 = vld [vmem:[#allocation2 + $0x1f0] sm:$0xff]  ;;  %3930 = vset.pattern.permute.xlu0 %v4360_v6  ;;  %vm1481_vm6 = vweird.f32 %v6973_v57  ;;  %vm1322_vm7 = vweird.f32 %v6999_v20  ;;  %vm1811_vm8 = vweird.f32 %v6975_v33  ;;  %3047 = vperm.xlu2 %3929, %v3038_v27   ;;  %vm1801_vm0 = vweird.f32 %v6982_v17 }
 0x202   :  { %4189 = vrsqrt.f32 %v7005_v11  ;;  %v7012_v21 = vpop.eup %4181  ;;  %3905 = vst [vmem:[#allocation2 + $0xb8] sm:$0xff] %v3781_v2   ;;  %v1317_v37 = vmul.f32 %v6999_v20, %v1316_v34  ;;  %v1334_v51 = vsel %vm7026_vm4, %v6944_v24, %v1330_v62  ;;  %vm1323_vm9 = vmor %vm1321_vm3, %vm1322_vm7  ;;  %vm1491_vm3 = vweird.f32 %v7005_v11  ;;  %v4302_v2 = vld [vmem:[#allocation3 + $0x380] sm:$0xff] }
 0x203   :  { %2959 = vmatpush.bf16.xpose.msrb.mxu1 %v3516_v46  ;;  %2985 = vmatpush.bf16.xpose.msrb.mxu3 %v3534_v30  ;;  %v7015_v16 = vpop.eup %4183  ;;  %v2360_v60 = vmul.f32 %v7012_v21, %v6969_v3  ;;  %v2020_v53 = vmul.f32 %v4298_v52, %v1334_v51  ;;  %vm2366_vm10 = vweird.f32 %v7012_v21  ;;  %v4299_v46 = vld [vmem:[#allocation3 + $0x200] sm:$0xff] }
 0x204   :  { %v7032_v41 = vpop.eup %4185  ;;  %v1318_v23 = vmul.f32 0.5, %v1317_v37  ;;  %v1476_v42 = vmul.f32 %v7015_v16, %v6973_v57  ;;  %vm1482_vm12 = vweird.f32 %v7015_v16  ;;  %vm2367_vm13 = vmor %vm2365_vm5, %vm2366_vm10  ;;  %v4304_v37 = vld [vmem:[#allocation3 + $0x288] sm:$0xff] }
 0x205   :  { %2974 = vmatpush.bf16.xpose.msrb.mxu2 %v3523_v18  ;;  %v7040_v58 = vpop.eup %4187  ;;  %v2361_v0 = vmul.f32 %v7012_v21, %v2360_v60  ;;  %v1806_v26 = vmul.f32 %v7032_v41, %v6975_v33  ;;  %vm1812_vm11 = vweird.f32 %v7032_v41  ;;  %vm7083_vm15 = vmor %vm1481_vm6, %vm1482_vm12 }
 0x206   :  { %v1319_v14 = vsub.f32 1.5, %v1318_v23  ;;  %v1477_v32 = vmul.f32 %v7015_v16, %v1476_v42  ;;  %v1796_v1 = vmul.f32 %v7040_v58, %v6982_v17  ;;  %vm1802_vm14 = vweird.f32 %v7040_v58  ;;  %vm1813_vm1 = vmor %vm1811_vm8, %vm1812_vm11 }
 0x207   :  { %v2362_v4 = vmul.f32 0.5, %v2361_v0  ;;  %v1807_v24 = vmul.f32 %v7032_v41, %v1806_v26  ;;  %vm1803_vm4 = vmor %vm1801_vm0, %vm1802_vm14 }
 0x208   :  { %v7051_v13 = vpop.eup %4189  ;;  %v1320_v22 = vmul.f32 %v6999_v20, %v1319_v14  ;;  %v1478_v5 = vmul.f32 0.5, %v1477_v32  ;;  %v1797_v28 = vmul.f32 %v7040_v58, %v1796_v1 }
 0x209   :  { %v1486_v12 = vmul.f32 %v7051_v13, %v7005_v11  ;;  %v2363_v44 = vsub.f32 1.5, %v2362_v4  ;;  %v1808_v63 = vmul.f32 0.5, %v1807_v24  ;;  %v3522_v19 = vld [vmem:[#allocation2 + $0xb8] sm:$0xff]  ;;  %vm1492_vm2 = vweird.f32 %v7051_v13 }
 0x20a   :  { %v1324_v59 = vsel %vm1323_vm9, %v6999_v20, %v1320_v22  ;;  %v1479_v40 = vsub.f32 1.5, %v1478_v5  ;;  %v1798_v31 = vmul.f32 0.5, %v1797_v28  ;;  %vm1493_vm5 = vmor %vm1491_vm3, %vm1492_vm2 }
 0x20b   :  { %2960 = vmatpush.bf16.xpose.msrb.mxu1 %v3515_v50  ;;  %2986 = vmatpush.bf16.xpose.msrb.mxu3 %v3533_v55  ;;  %v1487_v25 = vmul.f32 %v7051_v13, %v1486_v12  ;;  %v2019_v36 = vmul.f32 %v4299_v46, %v1324_v59  ;;  %v2364_v38 = vmul.f32 %v7012_v21, %v2363_v44  ;;  %v1809_v30 = vsub.f32 1.5, %v1808_v63  ;;  %v4303_v50 = vld [vmem:[#allocation3 + $0x280] sm:$0xff] }
 0x20c   :  { %v1480_v43 = vmul.f32 %v7015_v16, %v1479_v40  ;;  %v1799_v49 = vsub.f32 1.5, %v1798_v31  ;;  %v3028_v55 = vlaneseq }
 0x20d   :  { %2975 = vmatpush.bf16.xpose.msrb.mxu2 %v3522_v19  ;;  %v1488_v54 = vmul.f32 0.5, %v1487_v25  ;;  %v3701_v18 = vpack.c.bf16 %v2020_v53, %v2019_v36  ;;  %v2368_v10 = vsel %vm2367_vm13, %v7012_v21, %v2364_v38  ;;  %v1810_v3 = vmul.f32 %v7032_v41, %v1809_v30 }
 0x20e   :  { %v2370_v8 = vmul.f32 %v4300_v56, %v2368_v10  ;;  %v1800_v57 = vmul.f32 %v7040_v58, %v1799_v49  ;;  %v1484_v17 = vsel %vm7083_vm15, %v7015_v16, %v1480_v43  ;;  %v3531_v16 = vld [vmem:[#allocation2 + $0x38] sm:$0xff]  ;;  %v7111_v51 = vand.u32 127, %v3028_v55 }
 0x20f   :  { %v1489_v61 = vsub.f32 1.5, %v1488_v54  ;;  %3889 = vst [vmem:[#allocation2 + $0x148] sm:$0xff] %v3701_v18   ;;  %v1814_v39 = vsel %vm1813_vm1, %v7032_v41, %v1810_v3  ;;  %v2035_v6 = vmul.f32 %v4303_v50, %v1484_v17 }
 0x210   :  { %v2371_v33 = vpack.c.bf16 %v2370_v8, %v7020_v48  ;;  %v2068_v7 = vmul.f32 %v4301_v29, %v1814_v39  ;;  %v1804_v20 = vsel %vm1803_vm4, %v7040_v58, %v1800_v57  ;;  %v7116_v42 = vadd.s32 128, %v7111_v51 }
 0x211   :  { %v1490_v47 = vmul.f32 %v7051_v13, %v1489_v61  ;;  %v2067_v62 = vmul.f32 %v4302_v2, %v1804_v20  ;;  %v7123_v26 = vadd.s32 256, %v7111_v51  ;;  %v7139_v53 = vadd.s32 384, %v7111_v51 }
 0x212   :  { %2892 = vmatmul.bf16.vlgmr.msra.gmra.mxu0 %v2371_v33  ;;  %2906 = vmatmul.bf16.vlgmr.msra.gmra.mxu1 %v2371_v33  ;;  %v7156_v5 = vadd.s32 512, %v7111_v51  ;;  %v7183_v38 = vadd.s32 768, %v7111_v51  ;;  %v7188_v30 = vadd.s32 640, %v7111_v51  ;;  %v7225_v61 = vadd.s32 896, %v7111_v51 }
 0x213   :  { %2987 = vmatpush.bf16.xpose.msrb.mxu3 %v3532_v15  ;;  %v1494_v34 = vsel %vm1493_vm5, %v7051_v13, %v1490_v47  ;;  %v3821_v21 = vpack.c.bf16 %v2068_v7, %v2067_v62  ;;  %2920 = vmatmul.bf16.vlgmr.msra.gmra.mxu2 %v2371_v33 }
 0x214   :  { %v2036_v11 = vmul.f32 %v4304_v37, %v1494_v34  ;;  %2934 = vmatmul.bf16.vlgmr.msra.gmra.mxu3 %v2371_v33 }
 0x215   :  { %3913 = vst [vmem:[#allocation2 + $0x198] sm:$0xff] %v3821_v21  }
 0x216   :  { %v3741_v9 = vpack.c.bf16 %v2036_v11, %v2035_v6  ;;  %v3506_v48 = vld [vmem:[#allocation2 + $0x148] sm:$0xff] }
 0x217   :  { %2947 = vmatpush.bf16.xpose.msrb.mxu0 %v3506_v48 }
 0x218   :  { %3897 = vst [vmem:[#allocation2 + $0x1a0] sm:$0xff] %v3741_v9  }
 0x21b   :  { %2988 = vmatpush.bf16.xpose.msrb.mxu3 %v3531_v16 }
 0x21c   :  { %v3530_v35 = vld [vmem:[#allocation2 + $0x198] sm:$0xff] }
 0x21f   :  { %v3514_v60 = vld [vmem:[#allocation2 + $0x1a0] sm:$0xff] }
 0x220   :  { %2961 = vmatpush.bf16.xpose.msrb.mxu1 %v3514_v60 }
 0x222   :  { %2948 = vmatmul.bf16.vlgmr.msrb.gmra.mxu0 %v2371_v33 }
 0x223   :  { %2989 = vmatpush.bf16.xpose.msrb.mxu3 %v3530_v35  ;;  %2976 = vmatmul.bf16.vlgmr.msrb.gmra.mxu2 %v2371_v33 }
 0x227   :  { %2962 = vmatmul.bf16.vlgmr.msrb.gmra.mxu1 %v2371_v33 }
 0x22a   :  { %2990 = vmatmul.bf16.vlgmr.msrb.gmra.mxu3 %v2371_v33 }
 0x25b   :  { %v7153_v22 = vpop.permute.xlu2 %3047 }
 0x25c   :  { %vm3057_vm10 = vcmp.eq.s32.totalorder %v7111_v51, %v7153_v22  ;;  %vm3058_vm12 = vcmp.eq.s32.totalorder %v7116_v42, %v7153_v22  ;;  %vm3059_vm13 = vcmp.eq.s32.totalorder %v7123_v26, %v7153_v22  ;;  %vm3060_vm0 = vcmp.eq.s32.totalorder %v7139_v53, %v7153_v22 }
 0x25d   :  { %vm3061_vm1 = vcmp.eq.s32.totalorder %v7156_v5, %v7153_v22  ;;  %vm7384_vm4 = vcmp.eq.s32.totalorder %v7183_v38, %v7153_v22  ;;  %vm3062_vm3 = vcmp.eq.s32.totalorder %v7188_v30, %v7153_v22  ;;  %vm7383_vm5 = vcmp.eq.s32.totalorder %v7225_v61, %v7153_v22 }
 0x272   :  { %v7118_v58 = vpop.permute.xlu1 %3044 }
 0x273   :  { %vm3049_vm6 = vcmp.eq.s32.totalorder %v7111_v51, %v7118_v58  ;;  %vm3050_vm7 = vcmp.eq.s32.totalorder %v7116_v42, %v7118_v58  ;;  %vm3051_vm8 = vcmp.eq.s32.totalorder %v7123_v26, %v7118_v58  ;;  %vm3052_vm9 = vcmp.eq.s32.totalorder %v7139_v53, %v7118_v58 }
 0x274   :  { %vm3053_vm11 = vcmp.eq.s32.totalorder %v7156_v5, %v7118_v58  ;;  %vm3055_vm14 = vcmp.eq.s32.totalorder %v7183_v38, %v7118_v58  ;;  %vm3054_vm15 = vcmp.eq.s32.totalorder %v7188_v30, %v7118_v58  ;;  %vm3056_vm2 = vcmp.eq.s32.totalorder %v7225_v61, %v7118_v58 }
 0x28f   :  { %v7109_v41 = vpop.f32.mrf.mxu0  ;;  %v7113_v23 = vpop.f32.mrf.mxu1 }
 0x290   :  { %v3458_v32 = vclamps-f32 %v7109_v41, 1.0  ;;  %v3459_v1 = vclamps-f32 %v7113_v23, 1.0 }
 0x292   :  { %v3065_v4 = vsel %vm3049_vm6, %v3458_v32, 0.0  ;;  %v3066_v24 = vsel %vm3050_vm7, %v3459_v1, 0.0 }
 0x293   :  { %v3081_v12 = vadd.f32 %v3066_v24, %v3065_v4 }
 0x296   :  { %v7120_v0 = vpop.f32.mrf.mxu2 }
 0x297   :  { %v7125_v14 = vpop.f32.mrf.mxu3  ;;  %v7129_v13 = vpop.f32.mrf.mxu0  ;;  %v3460_v52 = vclamps-f32 %v7120_v0, 1.0 }
 0x298   :  { %v7151_v27 = vpop.f32.mrf.mxu1  ;;  %v3461_v63 = vclamps-f32 %v7125_v14, 1.0  ;;  %v3466_v19 = vclamps-f32 %v7129_v13, 1.0 }
 0x299   :  { %v3067_v28 = vsel %vm3051_vm8, %v3460_v52, 0.0  ;;  %v3467_v59 = vclamps-f32 %v7151_v27, 1.0 }
 0x29a   :  { %v3082_v31 = vadd.f32 %v3081_v12, %v3067_v28  ;;  %v3068_v15 = vsel %vm3052_vm9, %v3461_v63, 0.0  ;;  %v3073_v43 = vsel %vm3057_vm10, %v3466_v19, 0.0 }
 0x29b   :  { %v3074_v49 = vsel %vm3058_vm12, %v3467_v59, 0.0 }
 0x29c   :  { %v3083_v18 = vadd.f32 %v3082_v31, %v3068_v15  ;;  %v3090_v56 = vadd.f32 %v3074_v49, %v3073_v43 }
 0x29e   :  { %v7165_v44 = vpop.f32.mrf.mxu2 }
 0x29f   :  { %v7172_v40 = vpop.f32.mrf.mxu0  ;;  %v7176_v25 = vpop.f32.mrf.mxu3  ;;  %v3468_v36 = vclamps-f32 %v7165_v44, 1.0 }
 0x2a0   :  { %v3462_v46 = vclamps-f32 %v7172_v40, 1.0  ;;  %v3469_v17 = vclamps-f32 %v7176_v25, 1.0 }
 0x2a1   :  { %v3075_v45 = vsel %vm3059_vm13, %v3468_v36, 0.0 }
 0x2a2   :  { %v3069_v54 = vsel %vm3053_vm11, %v3462_v46, 0.0  ;;  %v3091_v7 = vadd.f32 %v3090_v56, %v3075_v45  ;;  %v3076_v6 = vsel %vm3060_vm0, %v3469_v17, 0.0 }
 0x2a3   :  { %v3084_v8 = vadd.f32 %v3083_v18, %v3069_v54 }
 0x2a4   :  { %v7210_v10 = vpop.f32.mrf.mxu1  ;;  %v3092_v11 = vadd.f32 %v3091_v7, %v3076_v6 }
 0x2a5   :  { %v3463_v3 = vclamps-f32 %v7210_v10, 1.0 }
 0x2a6   :  { %v7220_v57 = vpop.f32.mrf.mxu2 }
 0x2a7   :  { %v3464_v39 = vclamps-f32 %v7220_v57, 1.0  ;;  %v7231_v33 = vpop.f32.mrf.mxu0  ;;  %v3070_v29 = vsel %vm3054_vm15, %v3463_v3, 0.0 }
 0x2a8   :  { %v3470_v20 = vclamps-f32 %v7231_v33, 1.0  ;;  %v3085_v2 = vadd.f32 %v3084_v8, %v3070_v29 }
 0x2a9   :  { %v3071_v62 = vsel %vm3055_vm14, %v3464_v39, 0.0 }
 0x2aa   :  { %v3086_v50 = vadd.f32 %v3085_v2, %v3071_v62  ;;  %v3077_v21 = vsel %vm3061_vm1, %v3470_v20, 0.0 }
 0x2ab   :  { %v3093_v35 = vadd.f32 %v3092_v11, %v3077_v21 }
 0x2ac   :  { %v7266_v16 = vpop.f32.mrf.mxu1 }
 0x2ad   :  { %v7241_v47 = vpop.f32.mrf.mxu3  ;;  %v3471_v48 = vclamps-f32 %v7266_v16, 1.0 }
 0x2ae   :  { %v3465_v34 = vclamps-f32 %v7241_v47, 1.0  ;;  %v7269_v60 = vpop.f32.mrf.mxu2 }
 0x2af   :  { %v3472_v55 = vclamps-f32 %v7269_v60, 1.0  ;;  %v3078_v4 = vsel %vm3062_vm3, %v3471_v48, 0.0 }
 0x2b0   :  { %v3072_v37 = vsel %vm3056_vm2, %v3465_v34, 0.0  ;;  %v3094_v28 = vadd.f32 %v3093_v35, %v3078_v4 }
 0x2b1   :  { %v3087_v9 = vadd.f32 %v3086_v50, %v3072_v37  ;;  %v3079_v12 = vsel %vm7384_vm4, %v3472_v55, 0.0 }
 0x2b2   :  { %v3095_v15 = vadd.f32 %v3094_v28, %v3079_v12 }
 0x2b3   :  { %3088 = vadd.xlane.f32.xlu0 %v3087_v9 }
 0x2b5   :  { %v7281_v24 = vpop.f32.mrf.mxu3 }
 0x2b6   :  { %v7385_v31 = vclamps-f32 %v7281_v24, 1.0 }
 0x2b8   :  { %v3080_v43 = vsel %vm7383_vm5, %v7385_v31, 0.0 }
 0x2b9   :  { %v3096_v49 = vadd.f32 %v3095_v15, %v3080_v43 }
 0x2bb   :  { %3097 = vadd.xlane.f32.xlu0 %v3096_v49 }
 0x326   :  { %v3089_v54 = vpop.xlane.xlu0 %3088 }
 0x327   :  { %v3099_v18 = vmul.f32 %v3089_v54, %v3089_v54 }
 0x329   :  { %v3101_v45 = vsub.f32 1.0, %v3099_v18  ;;  %v3129_v18 = vmul.f32 0.87758255, %v3089_v54 }
 0x32b   :  { %v3103_v56 = vmax.f32 %v3101_v45, 0.0 }
 0x32d   :  { %4191 = vrsqrt.f32 %v3103_v56  ;;  %vm3112_vm5 = vcmp.eq.f32.partialorder %v3103_v56, inf  ;;  %v3115_v12 = vand.u32 2147483648, %v3103_v56  ;;  %vm3114_vm4 = vcmp.eq.f32.partialorder %v3103_v56, 0.0 }
 0x32e   :  { %v3098_v8 = vpop.xlane.xlu0 %3097 }
 0x32f   :  { %v3100_v29 = vmul.f32 %v3098_v8, %v3098_v8  ;;  %v3130_v47 = vmul.f32 0.87758255, %v3098_v8 }
 0x331   :  { %v3102_v7 = vsub.f32 1.0, %v3100_v29 }
 0x333   :  { %v4192_v2 = vpop.eup %4191  ;;  %v3104_v62 = vmax.f32 %v3102_v7, 0.0 }
 0x334   :  { %v3106_v50 = vmul.f32 %v4192_v2, %v3103_v56 }
 0x335   :  { %4193 = vrsqrt.f32 %v3104_v62 }
 0x336   :  { %v3107_v6 = vmul.f32 %v4192_v2, %v3106_v50 }
 0x338   :  { %v3108_v21 = vmul.f32 0.5, %v3107_v6 }
 0x33a   :  { %v3109_v37 = vsub.f32 1.5, %v3108_v21 }
 0x33b   :  { %v4194_v11 = vpop.eup %4193 }
 0x33c   :  { %v3110_v9 = vmul.f32 %v4192_v2, %v3109_v37  ;;  %v3118_v35 = vmul.f32 %v4194_v11, %v3104_v62 }
 0x33e   :  { %v3111_v4 = vmul.f32 %v3110_v9, %v3103_v56  ;;  %v3119_v28 = vmul.f32 %v4194_v11, %v3118_v35 }
 0x340   :  { %v3113_v15 = vsel %vm3112_vm5, %v3103_v56, %v3111_v4  ;;  %v3120_v43 = vmul.f32 0.5, %v3119_v28  ;;  %v3127_v56 = vand.u32 2147483648, %v3104_v62 }
 0x341   :  { %v3116_v49 = vsel %vm3114_vm4, %v3115_v12, %v3113_v15 }
 0x342   :  { %v3131_v45 = vmul.f32 0.47942555, %v3116_v49  ;;  %v3121_v29 = vsub.f32 1.5, %v3120_v43 }
 0x344   :  { %v3133_v7 = vsub.f32 %v3129_v18, %v3131_v45  ;;  %v3122_v31 = vmul.f32 %v4194_v11, %v3121_v29 }
 0x346   :  { %v3135_v2 = vsel %vm3049_vm6, %v3133_v7, %v3458_v32  ;;  %v3136_v50 = vsel %vm3050_vm7, %v3133_v7, %v3459_v1  ;;  %v3137_v54 = vsel %vm3051_vm8, %v3133_v7, %v3460_v52  ;;  %v3138_v41 = vsel %vm3052_vm9, %v3133_v7, %v3461_v63 }
 0x347   :  { %v3139_v23 = vsel %vm3053_vm11, %v3133_v7, %v3462_v46  ;;  %v3140_v0 = vsel %vm3054_vm15, %v3133_v7, %v3463_v3  ;;  %v3151_v32 = vmul.f32 64.0, %v3135_v2  ;;  %v3152_v1 = vmul.f32 64.0, %v3136_v50 }
 0x348   :  { %v3153_v52 = vmul.f32 64.0, %v3137_v54  ;;  %v3141_v14 = vsel %vm3055_vm14, %v3133_v7, %v3464_v39  ;;  %v3154_v63 = vmul.f32 64.0, %v3138_v41  ;;  %v3142_v40 = vsel %vm3056_vm2, %v3133_v7, %v3465_v34 }
 0x349   :  { %v3155_v46 = vmul.f32 64.0, %v3139_v23  ;;  %3167 = vst [vmem:[#allocation6] sm:$0xff] %v3151_v32  ;;  %v3123_v10 = vmul.f32 %v3122_v31, %v3104_v62  ;;  %v3156_v3 = vmul.f32 64.0, %v3140_v0  ;;  %vm3124_vm6 = vcmp.eq.f32.partialorder %v3104_v62, inf }
 0x34a   :  { %3168 = vst [vmem:[#allocation6 + $0x8] sm:$0xff] %v3152_v1  ;;  %v3157_v6 = vmul.f32 64.0, %v3141_v14  ;;  %vm3126_vm7 = vcmp.eq.f32.partialorder %v3104_v62, 0.0  ;;  %v3158_v21 = vmul.f32 64.0, %v3142_v40  ;;  %vm7484_vm8 = vcmp.eq.s32.totalorder %v7183_v38, %v7153_v22 }
 0x34b   :  { %3169 = vst [vmem:[#allocation6 + $0x10] sm:$0xff] %v3153_v52  ;;  %v3125_v57 = vsel %vm3124_vm6, %v3104_v62, %v3123_v10  ;;  %vm7486_vm9 = vcmp.eq.s32.totalorder %v7225_v61, %v7153_v22 }
 0x34c   :  { %3170 = vst [vmem:[#allocation6 + $0x18] sm:$0xff] %v3154_v63  ;;  %v3128_v39 = vsel %vm3126_vm7, %v3127_v56, %v3125_v57 }
 0x34d   :  { %3171 = vst [vmem:[#allocation6 + $0x20] sm:$0xff] %v3155_v46  ;;  %v3132_v37 = vmul.f32 0.47942555, %v3128_v39 }
 0x34e   :  { %3172 = vst [vmem:[#allocation6 + $0x28] sm:$0xff] %v3156_v3 }
 0x34f   :  { %3173 = vst [vmem:[#allocation6 + $0x30] sm:$0xff] %v3157_v6  ;;  %v3134_v58 = vsub.f32 %v3130_v47, %v3132_v37 }
 0x350   :  { %3174 = vst [vmem:[#allocation6 + $0x38] sm:$0xff] %v3158_v21 }
 0x351   :  { %v3143_v34 = vsel %vm3057_vm10, %v3134_v58, %v3466_v19  ;;  %v3144_v31 = vsel %vm3058_vm12, %v3134_v58, %v3467_v59  ;;  %v3145_v8 = vsel %vm3059_vm13, %v3134_v58, %v3468_v36  ;;  %v3146_v13 = vsel %vm3060_vm0, %v3134_v58, %v3469_v17 }
 0x352   :  { %v3147_v51 = vsel %vm3061_vm1, %v3134_v58, %v3470_v20  ;;  %v3148_v42 = vsel %vm3062_vm3, %v3134_v58, %v3471_v48  ;;  %v3159_v26 = vmul.f32 64.0, %v3143_v34  ;;  %v3160_v27 = vmul.f32 64.0, %v3144_v31 }
 0x353   :  { %v3161_v44 = vmul.f32 64.0, %v3145_v8  ;;  %v3149_v53 = vsel %vm7484_vm8, %v3134_v58, %v3472_v55  ;;  %v3162_v19 = vmul.f32 64.0, %v3146_v13  ;;  %v7485_v59 = vclamps-f32 %v7281_v24, 1.0 }
 0x354   :  { %v3163_v25 = vmul.f32 64.0, %v3147_v51  ;;  %3175 = vst [vmem:[#allocation6 + $0x40] sm:$0xff] %v3159_v26  ;;  %v3164_v36 = vmul.f32 64.0, %v3148_v42  ;;  %v3165_v30 = vmul.f32 64.0, %v3149_v53 }
 0x355   :  { %v3150_v5 = vsel %vm7486_vm9, %v3134_v58, %v7485_v59  ;;  %3176 = vst [vmem:[#allocation6 + $0x48] sm:$0xff] %v3160_v27 }
 0x356   :  { %3177 = vst [vmem:[#allocation6 + $0x50] sm:$0xff] %v3161_v44  ;;  %v3166_v38 = vmul.f32 64.0, %v3150_v5 }
 0x357   :  { %3178 = vst [vmem:[#allocation6 + $0x58] sm:$0xff] %v3162_v19 }
 0x358   :  { %3179 = vst [vmem:[#allocation6 + $0x60] sm:$0xff] %v3163_v25 }
 0x359   :  { %3180 = vst [vmem:[#allocation6 + $0x68] sm:$0xff] %v3164_v36 }
 0x35a   :  { %3181 = vst [vmem:[#allocation6 + $0x70] sm:$0xff] %v3165_v30 }
 0x35b   :  { %3182 = vst [vmem:[#allocation6 + $0x78] sm:$0xff] %v3166_v38 }
 0x35c   :  { %3195 = dma.vmem_to_hbm [thread:$0]  %s3188_s29, 2048, %s3190_s5, [#allocation5], %s4362_s6, %s4362_s6, %s4363_s7  }
 0x35d   :  { %4355 = dma.done.wait [#allocation5], 2048  }
 0x35e   :  { %4356 = vsyncadd [#allocation5], 4294965248 }
 0x35f   :  { %3200 = vsyncpa [#allocation4], 1 }
 0x360   :  { %3201 = vsyncpa [#allocation5], 1 }

</bundles_post_ra>
